<compile_context>
chip_gen: v5e
topology: v5e:2x2
jax: 0.10.0
libtpu: 0.0.40
codegen_flags: <defaults>
</compile_context>

<pallas_src>
import functools

import numpy as np
import jax
import jax.numpy as jnp
from jax.experimental import pallas as pl
from jax.experimental.pallas import tpu as pltpu

EPS = 1e-5
INV = float(1.0 / np.sqrt(1.0 + EPS))  # eval BN with fresh stats: (x - 0) / sqrt(1 + eps)


def _round_up(x, m):
    return (x + m - 1) // m * m


# ---------------------------------------------------------------------------
# Pallas kernel: (tm, K) @ (K, N) + shift[N] -> activation, single shot per M tile.
# BN scale is pre-folded into B; operands are bf16, accumulation + epilogue are f32.
# ---------------------------------------------------------------------------
def _fused_matmul_kernel(a_ref, b_ref, t_ref, o_ref, *, act):
    y = jnp.dot(a_ref[...], b_ref[...], preferred_element_type=jnp.float32)
    y = y + t_ref[...]
    if act == "relu":
        y = jnp.maximum(y, 0.0)
    elif act == "sigmoid":
        y = jax.nn.sigmoid(y)
    o_ref[...] = y.astype(o_ref.dtype)


def _pick_tm(M):
    # Prefer a >=2-way split along M (keeps a parallel grid axis for v7x's 2 TCs);
    # otherwise use the full dimension (full-dim blocks are layout-exempt).
    for tm in (256, 128, 64):
        if M % tm == 0 and M // tm >= 2:
            return tm
    return M


def fused_matmul(a, b, shift, act="none"):
    """(M,K) @ (K,N) + shift[N], then activation.  Whole-K / whole-N blocks,
    1-D grid over M only.  a/b are cast to bf16 for the MXU; math stays f32."""
    M, K = a.shape
    K2, N = b.shape
    assert K == K2
    # Only the contraction dim is zero-padded (to a lane multiple) so the MXU never
    # sees uninitialized padding lanes; M and N stay unpadded full-dim blocks.
    Kp = _round_up(K, 128)
    if Kp != K:
        a = jnp.pad(a, ((0, 0), (0, Kp - K)))
        b = jnp.pad(b, ((0, Kp - K), (0, 0)))

    tm = _pick_tm(M)
    grid = (M // tm,)

    a16 = a.astype(jnp.bfloat16)
    b16 = b.astype(jnp.bfloat16)
    t = shift.reshape(1, N).astype(jnp.float32)

    kernel = functools.partial(_fused_matmul_kernel, act=act)
    return pl.pallas_call(
        kernel,
        out_shape=jax.ShapeDtypeStruct((M, N), jnp.float32),
        grid_spec=pltpu.PrefetchScalarGridSpec(
            num_scalar_prefetch=0,
            grid=grid,
            in_specs=[
                pl.BlockSpec((tm, Kp), lambda i: (i, 0)),
                pl.BlockSpec((Kp, N), lambda i: (0, 0)),   # resident across M steps
                pl.BlockSpec((1, N), lambda i: (0, 0)),
            ],
            out_specs=pl.BlockSpec((tm, N), lambda i: (i, 0)),
        ),
        compiler_params=pltpu.CompilerParams(
            dimension_semantics=("parallel",)),
    )(a16, b16, t)


# ---------------------------------------------------------------------------
# Conv helpers (glue: im2col / reshapes in XLA; the matmul + BN + act in Pallas)
# ---------------------------------------------------------------------------
def _im2col(x, kh, kw, pad, dil):
    N, H, W, C = x.shape
    xp = jnp.pad(x, ((0, 0), (pad, pad), (pad, pad), (0, 0)))
    cols = []
    for i in range(kh):
        for j in range(kw):
            cols.append(xp[:, i * dil:i * dil + H, j * dil:j * dil + W, :])
    return jnp.concatenate(cols, axis=-1).reshape(N * H * W, kh * kw * C)


def conv2d(x, w, scale, shift, act, pad=0, dil=1):
    """x: NHWC, w: (Cout, Cin, kh, kw) PyTorch layout, stride=1.  The per-channel
    BN scale is folded into the weight matrix before the kernel (one fewer DMA)."""
    N, H, W, C = x.shape
    Cout, Cin, kh, kw = w.shape
    if kh == 1 and kw == 1:
        patches = x.reshape(N * H * W, C)
        wm = w.reshape(Cout, Cin).T
    else:
        patches = _im2col(x, kh, kw, pad, dil)
        wm = jnp.transpose(w, (2, 3, 1, 0)).reshape(kh * kw * Cin, Cout)
    wm = wm * scale.reshape(1, Cout).astype(wm.dtype)
    y = fused_matmul(patches, wm, shift, act)
    return y.reshape(N, H, W, Cout)


def conv_transpose2x2(x, w, scale, shift, act):
    """ConvTranspose2d(kernel=2, stride=2).  x: NHWC, w: (Cin, Cout, 2, 2)."""
    N, H, W, C = x.shape
    Cin, Cout = w.shape[0], w.shape[1]
    wm = w.reshape(Cin, Cout * 4) * jnp.repeat(scale, 4).reshape(1, Cout * 4)
    t = jnp.repeat(shift, 4)
    y = fused_matmul(x.reshape(N * H * W, C), wm, t, act)
    y = y.reshape(N, H, W, Cout, 2, 2)
    y = jnp.transpose(y, (0, 1, 4, 2, 5, 3)).reshape(N, 2 * H, 2 * W, Cout)
    return y


# ---------------------------------------------------------------------------
# Model pieces
# ---------------------------------------------------------------------------
def _basic_conv(x, w, relu, pad=0, dil=1):
    """BasicConv: conv(bias=False) + BN(eval, gamma=1, beta=0) + optional ReLU."""
    cout = w.shape[0]
    scale = jnp.full((cout,), INV, jnp.float32)
    shift = jnp.zeros((cout,), jnp.float32)
    return conv2d(x, w, scale, shift, "relu" if relu else "none", pad, dil)


def rfb_forward(x, p):
    N, H, W, _ = x.shape

    # Fused stem: the three branch-entry 1x1 convs share the same 256-ch input and
    # all have BN+ReLU -> one Cout=128 conv (exact, no wasted lanes), then slice.
    stem_w = jnp.concatenate([p["b0_0"], p["b1_0"], p["b2_0"]], axis=0)  # (128,256,1,1)
    stem = _basic_conv(x, stem_w, True)
    x0 = stem[..., 0:64]
    x1 = stem[..., 64:96]
    x2 = stem[..., 96:128]

    x0 = _basic_conv(x0, p["b0_1"], False, pad=1, dil=1)
    x1 = _basic_conv(x1, p["b1_1"], True, pad=1)
    x1 = _basic_conv(x1, p["b1_2"], False, pad=2, dil=2)
    x2 = _basic_conv(x2, p["b2_1"], True, pad=1)
    x2 = _basic_conv(x2, p["b2_2"], True, pad=1)
    x2 = _basic_conv(x2, p["b2_3"], False, pad=3, dil=3)

    # Fused ConvLinear + shortcut + residual + relu (both BNs have beta=0):
    #   relu(0.1 * BN(ConvLinear(cat)) + BN(shortcut(x)))
    #     = relu([cat, x] @ [0.1*INV*Wc ; INV*Ws])
    cat = jnp.concatenate([x0, x1, x2, x], axis=-1)            # 192 + 256 = 448 channels
    wc = p["convlinear"].reshape(256, 192).T * (0.1 * INV)     # (192, 256)
    ws = p["shortcut"].reshape(256, 256).T * INV               # (256, 256)
    wm = jnp.concatenate([wc, ws], axis=0)                     # (448, 256)
    y = fused_matmul(cat.reshape(N * H * W, 448), wm,
                     jnp.zeros((256,), jnp.float32), "relu")
    return y.reshape(N, H, W, 256)


def heads_forward(x, pb, pt):
    """binarize + thresh heads fused stage-by-stage (halves launches, fills lanes).
    Head BNs have gamma=1, beta=1e-4 (weights_init) with fresh eval running stats."""
    # stage 0: 3x3 conv (256 -> 64 || 64) + BN + ReLU — exact Cout-concat fusion.
    w0 = jnp.concatenate([pb["conv0_w"], pt["conv0_w"]], axis=0)        # (128,256,3,3)
    b0b = pb["conv0_b"] if pb["conv0_b"] is not None else jnp.zeros((64,), jnp.float32)
    b0t = pt["conv0_b"] if pt["conv0_b"] is not None else jnp.zeros((64,), jnp.float32)
    scale0 = jnp.full((128,), INV, jnp.float32)
    shift0 = jnp.concatenate([b0b, b0t]) * INV + 1e-4
    y = conv2d(x, w0, scale0, shift0, "relu", pad=1)                    # (N,H,W,128)

    # stage 1: two ConvT2x2 (64->64) as one block-diagonal (128->128) + BN + ReLU.
    z64 = jnp.zeros((64, 64, 2, 2), jnp.float32)
    ct1_w = jnp.concatenate(
        [jnp.concatenate([pb["ct1_w"], z64], axis=1),
         jnp.concatenate([z64, pt["ct1_w"]], axis=1)], axis=0)          # (128,128,2,2)
    scale1 = jnp.full((128,), INV, jnp.float32)
    shift1 = jnp.concatenate([pb["ct1_b"], pt["ct1_b"]]) * INV + 1e-4
    y = conv_transpose2x2(y, ct1_w, scale1, shift1, "relu")             # (N,2H,2W,128)

    # stage 2: two ConvT2x2 (64->1) as one block-diagonal (128->2) + Sigmoid.
    z1 = jnp.zeros((64, 1, 2, 2), jnp.float32)
    ct2_w = jnp.concatenate(
        [jnp.concatenate([pb["ct2_w"], z1], axis=1),
         jnp.concatenate([z1, pt["ct2_w"]], axis=1)], axis=0)           # (128,2,2,2)
    shift2 = jnp.concatenate([pb["ct2_b"], pt["ct2_b"]])                # (2,)
    y = conv_transpose2x2(y, ct2_w, jnp.ones((2,), jnp.float32),
                          shift2, "sigmoid")                            # (N,4H,4W,2)
    return y


def edbhead_forward(x_nchw, params):
    x = jnp.transpose(x_nchw, (0, 2, 3, 1)).astype(jnp.float32)   # NCHW -> NHWC
    enhance = rfb_forward(x, params["rfb"])
    y = heads_forward(enhance, params["binarize"], params["thresh"])  # (N,4H,4W,2)
    # channel 0 = shrink (binarize), channel 1 = threshold: eval-mode concat order.
    return jnp.transpose(y, (0, 3, 1, 2))                         # back to NCHW


# ---------------------------------------------------------------------------
# Deterministic parameter construction (shapes from the PyTorch __init__)
# ---------------------------------------------------------------------------
def init_params(key):
    cnt = [0]

    def nk():
        cnt[0] += 1
        return jax.random.fold_in(key, cnt[0])

    def conv_w(cout, cin, kh, kw):
        fan_in = cin * kh * kw
        return jax.random.normal(nk(), (cout, cin, kh, kw),
                                 jnp.float32) * np.sqrt(2.0 / fan_in)

    def convT_w(cin, cout, kh, kw):
        fan_in = cout * kh * kw
        return jax.random.normal(nk(), (cin, cout, kh, kw),
                                 jnp.float32) * np.sqrt(2.0 / fan_in)

    def bias_v(n, fan_in):
        bound = 1.0 / np.sqrt(fan_in)
        return jax.random.uniform(nk(), (n,), jnp.float32, -bound, bound)

    # BasicRFB(256, 256): inter_planes = 32
    rfb = {
        "b0_0": conv_w(64, 256, 1, 1),
        "b0_1": conv_w(64, 64, 3, 3),
        "b1_0": conv_w(32, 256, 1, 1),
        "b1_1": conv_w(64, 32, 3, 3),
        "b1_2": conv_w(64, 64, 3, 3),
        "b2_0": conv_w(32, 256, 1, 1),
        "b2_1": conv_w(48, 32, 3, 3),
        "b2_2": conv_w(64, 48, 3, 3),
        "b2_3": conv_w(64, 64, 3, 3),
        "convlinear": conv_w(256, 192, 1, 1),
        "shortcut": conv_w(256, 256, 1, 1),
    }
    # binarize: Conv2d(256,64,3,pad=1,bias=True), ConvT(64,64,2,2), ConvT(64,1,2,2)
    binarize = {
        "conv0_w": conv_w(64, 256, 3, 3), "conv0_b": bias_v(64, 256 * 9),
        "ct1_w": convT_w(64, 64, 2, 2), "ct1_b": bias_v(64, 64 * 4),
        "ct2_w": convT_w(64, 1, 2, 2), "ct2_b": bias_v(1, 4),
    }
    # thresh: same structure, but the first conv has bias=False
    thresh = {
        "conv0_w": conv_w(64, 256, 3, 3), "conv0_b": None,
        "ct1_w": convT_w(64, 64, 2, 2), "ct1_b": bias_v(64, 64 * 4),
        "ct2_w": convT_w(64, 1, 2, 2), "ct2_b": bias_v(1, 4),
    }
    return {"rfb": rfb, "binarize": binarize, "thresh": thresh}


if __name__ == "__main__":
    key = jax.random.PRNGKey(0)
    params = init_params(key)

    # rfb is hard-coded BasicRFB(256, 256) in the module, so in_channels must be 256.
    N, C, H, W = 2, 256, 8, 8
    x = jax.random.normal(jax.random.fold_in(key, 9999), (N, C, H, W), jnp.float32)

    y = jax.jit(edbhead_forward)(x, params)
    y = jax.block_until_ready(y)

    assert y.shape == (N, 2, 4 * H, 4 * W), y.shape
    assert bool(jnp.all(jnp.isfinite(y)))
    assert bool(jnp.all((y >= 0.0) & (y <= 1.0)))  # both maps are sigmoid outputs
    print("KERNEL_OK")
</pallas_src>

<mosaic_0001>
module attributes {stable_mosaic.version = 11 : i64} {
  func.func @_fused_matmul_kernel(%arg0: i32, %arg1: memref<64x256xbf16, #tpu.memory_space<vmem>>, %arg2: memref<256x128xbf16, #tpu.memory_space<vmem>>, %arg3: memref<1x128xf32, #tpu.memory_space<vmem>>, %arg4: memref<64x128xf32, #tpu.memory_space<vmem>>) attributes {dimension_semantics = [#tpu.dimension_semantics<parallel>], iteration_bounds = array<i64: 2>, scalar_prefetch = 0 : i64, scratch_operands = 0 : i64, tpu.core_type = #tpu.core_type<tc>, window_params = [{transform_indices = @transform_0, window_bounds = array<i64: 64, 256>}, {pipeline_mode = #tpu.pipeline_mode<synchronous>, transform_indices = @transform_1, window_bounds = array<i64: 256, 128>}, {pipeline_mode = #tpu.pipeline_mode<synchronous>, transform_indices = @transform_2, window_bounds = array<i64: 1, 128>}, {transform_indices = @transform_3, window_bounds = array<i64: 64, 128>}]} {
    %c0 = arith.constant 0 : index
    %c0_0 = arith.constant 0 : index
    %0 = vector.load %arg1[%c0, %c0_0] : memref<64x256xbf16, #tpu.memory_space<vmem>>, vector<64x256xbf16>
    %c0_1 = arith.constant 0 : index
    %c0_2 = arith.constant 0 : index
    %1 = vector.load %arg2[%c0_1, %c0_2] : memref<256x128xbf16, #tpu.memory_space<vmem>>, vector<256x128xbf16>
    %cst = arith.constant dense<0.000000e+00> : vector<64x128xf32>
    %2 = tpu.matmul %0, %1, %cst {dimension_numbers = #tpu.dot_dimension_numbers<[1], [0], [0], [1], [0, 0, 1, 1], [], []>} : vector<64x256xbf16>, vector<256x128xbf16>, vector<64x128xf32> -> vector<64x128xf32>
    %c0_3 = arith.constant 0 : index
    %c0_4 = arith.constant 0 : index
    %3 = vector.load %arg3[%c0_3, %c0_4] : memref<1x128xf32, #tpu.memory_space<vmem>>, vector<1x128xf32>
    %4 = vector.broadcast %3 : vector<1x128xf32> to vector<64x128xf32>
    %5 = arith.addf %2, %4 : vector<64x128xf32>
    %cst_5 = arith.constant 0.000000e+00 : f32
    %6 = vector.broadcast %cst_5 : f32 to vector<64x128xf32>
    %7 = arith.maximumf %5, %6 : vector<64x128xf32>
    %c0_6 = arith.constant 0 : index
    %c0_7 = arith.constant 0 : index
    %8 = vector.load %arg4[%c0_6, %c0_7] : memref<64x128xf32, #tpu.memory_space<vmem>>, vector<64x128xf32>
    tpu.vector_store %arg4[%c0_6, %c0_7], %7 {strides = array<i32>} : memref<64x128xf32, #tpu.memory_space<vmem>>, vector<64x128xf32>,
    return
  }
  func.func @transform_0(%arg0: i32) -> (i32, i32) {
    %c0_i32 = arith.constant 0 : i32
    %c0_i32_0 = arith.constant 0 : i32
    return %arg0, %c0_i32 : i32, i32
  }
  func.func @transform_1(%arg0: i32) -> (i32, i32) {
    %c0_i32 = arith.constant 0 : i32
    %c0_i32_0 = arith.constant 0 : i32
    %c0_i32_1 = arith.constant 0 : i32
    return %c0_i32, %c0_i32_0 : i32, i32
  }
  func.func @transform_2(%arg0: i32) -> (i32, i32) {
    %c0_i32 = arith.constant 0 : i32
    %c0_i32_0 = arith.constant 0 : i32
    %c0_i32_1 = arith.constant 0 : i32
    return %c0_i32, %c0_i32_0 : i32, i32
  }
  func.func @transform_3(%arg0: i32) -> (i32, i32) {
    %c0_i32 = arith.constant 0 : i32
    %c0_i32_0 = arith.constant 0 : i32
    return %arg0, %c0_i32 : i32, i32
  }
}

module attributes {stable_mosaic.version = 11 : i64} {
  func.func @_fused_matmul_kernel(%arg0: i32, %arg1: memref<64x384xbf16, #tpu.memory_space<vmem>>, %arg2: memref<384x64xbf16, #tpu.memory_space<vmem>>, %arg3: memref<1x64xf32, #tpu.memory_space<vmem>>, %arg4: memref<64x64xf32, #tpu.memory_space<vmem>>) attributes {dimension_semantics = [#tpu.dimension_semantics<parallel>], iteration_bounds = array<i64: 2>, scalar_prefetch = 0 : i64, scratch_operands = 0 : i64, tpu.core_type = #tpu.core_type<tc>, window_params = [{transform_indices = @transform_0, window_bounds = array<i64: 64, 384>}, {pipeline_mode = #tpu.pipeline_mode<synchronous>, transform_indices = @transform_1, window_bounds = array<i64: 384, 64>}, {pipeline_mode = #tpu.pipeline_mode<synchronous>, transform_indices = @transform_2, window_bounds = array<i64: 1, 64>}, {transform_indices = @transform_3, window_bounds = array<i64: 64, 64>}]} {
    %c0 = arith.constant 0 : index
    %c0_0 = arith.constant 0 : index
    %0 = vector.load %arg1[%c0, %c0_0] : memref<64x384xbf16, #tpu.memory_space<vmem>>, vector<64x384xbf16>
    %c0_1 = arith.constant 0 : index
    %c0_2 = arith.constant 0 : index
    %1 = vector.load %arg2[%c0_1, %c0_2] : memref<384x64xbf16, #tpu.memory_space<vmem>>, vector<384x64xbf16>
    %cst = arith.constant dense<0.000000e+00> : vector<64x64xf32>
    %2 = tpu.matmul %0, %1, %cst {dimension_numbers = #tpu.dot_dimension_numbers<[1], [0], [0], [1], [0, 0, 1, 1], [], []>} : vector<64x384xbf16>, vector<384x64xbf16>, vector<64x64xf32> -> vector<64x64xf32>
    %c0_3 = arith.constant 0 : index
    %c0_4 = arith.constant 0 : index
    %3 = vector.load %arg3[%c0_3, %c0_4] : memref<1x64xf32, #tpu.memory_space<vmem>>, vector<1x64xf32>
    %4 = vector.broadcast %3 : vector<1x64xf32> to vector<64x64xf32>
    %5 = arith.addf %2, %4 : vector<64x64xf32>
    %cst_5 = arith.constant 0.000000e+00 : f32
    %6 = vector.broadcast %cst_5 : f32 to vector<64x64xf32>
    %7 = arith.maximumf %5, %6 : vector<64x64xf32>
    %c0_6 = arith.constant 0 : index
    %c0_7 = arith.constant 0 : index
    %8 = vector.load %arg4[%c0_6, %c0_7] : memref<64x64xf32, #tpu.memory_space<vmem>>, vector<64x64xf32>
    tpu.vector_store %arg4[%c0_6, %c0_7], %7 {strides = array<i32>} : memref<64x64xf32, #tpu.memory_space<vmem>>, vector<64x64xf32>,
    return
  }
  func.func @transform_0(%arg0: i32) -> (i32, i32) {
    %c0_i32 = arith.constant 0 : i32
    %c0_i32_0 = arith.constant 0 : i32
    return %arg0, %c0_i32 : i32, i32
  }
  func.func @transform_1(%arg0: i32) -> (i32, i32) {
    %c0_i32 = arith.constant 0 : i32
    %c0_i32_0 = arith.constant 0 : i32
    %c0_i32_1 = arith.constant 0 : i32
    return %c0_i32, %c0_i32_0 : i32, i32
  }
  func.func @transform_2(%arg0: i32) -> (i32, i32) {
    %c0_i32 = arith.constant 0 : i32
    %c0_i32_0 = arith.constant 0 : i32
    %c0_i32_1 = arith.constant 0 : i32
    return %c0_i32, %c0_i32_0 : i32, i32
  }
  func.func @transform_3(%arg0: i32) -> (i32, i32) {
    %c0_i32 = arith.constant 0 : i32
    %c0_i32_0 = arith.constant 0 : i32
    return %arg0, %c0_i32 : i32, i32
  }
}

module attributes {stable_mosaic.version = 11 : i64} {
  func.func @_fused_matmul_kernel(%arg0: i32, %arg1: memref<64x640xbf16, #tpu.memory_space<vmem>>, %arg2: memref<640x64xbf16, #tpu.memory_space<vmem>>, %arg3: memref<1x64xf32, #tpu.memory_space<vmem>>, %arg4: memref<64x64xf32, #tpu.memory_space<vmem>>) attributes {dimension_semantics = [#tpu.dimension_semantics<parallel>], iteration_bounds = array<i64: 2>, scalar_prefetch = 0 : i64, scratch_operands = 0 : i64, tpu.core_type = #tpu.core_type<tc>, window_params = [{transform_indices = @transform_0, window_bounds = array<i64: 64, 640>}, {pipeline_mode = #tpu.pipeline_mode<synchronous>, transform_indices = @transform_1, window_bounds = array<i64: 640, 64>}, {pipeline_mode = #tpu.pipeline_mode<synchronous>, transform_indices = @transform_2, window_bounds = array<i64: 1, 64>}, {transform_indices = @transform_3, window_bounds = array<i64: 64, 64>}]} {
    %c0 = arith.constant 0 : index
    %c0_0 = arith.constant 0 : index
    %0 = vector.load %arg1[%c0, %c0_0] : memref<64x640xbf16, #tpu.memory_space<vmem>>, vector<64x640xbf16>
    %c0_1 = arith.constant 0 : index
    %c0_2 = arith.constant 0 : index
    %1 = vector.load %arg2[%c0_1, %c0_2] : memref<640x64xbf16, #tpu.memory_space<vmem>>, vector<640x64xbf16>
    %cst = arith.constant dense<0.000000e+00> : vector<64x64xf32>
    %2 = tpu.matmul %0, %1, %cst {dimension_numbers = #tpu.dot_dimension_numbers<[1], [0], [0], [1], [0, 0, 1, 1], [], []>} : vector<64x640xbf16>, vector<640x64xbf16>, vector<64x64xf32> -> vector<64x64xf32>
    %c0_3 = arith.constant 0 : index
    %c0_4 = arith.constant 0 : index
    %3 = vector.load %arg3[%c0_3, %c0_4] : memref<1x64xf32, #tpu.memory_space<vmem>>, vector<1x64xf32>
    %4 = vector.broadcast %3 : vector<1x64xf32> to vector<64x64xf32>
    %5 = arith.addf %2, %4 : vector<64x64xf32>
    %c0_5 = arith.constant 0 : index
    %c0_6 = arith.constant 0 : index
    %6 = vector.load %arg4[%c0_5, %c0_6] : memref<64x64xf32, #tpu.memory_space<vmem>>, vector<64x64xf32>
    tpu.vector_store %arg4[%c0_5, %c0_6], %5 {strides = array<i32>} : memref<64x64xf32, #tpu.memory_space<vmem>>, vector<64x64xf32>,
    return
  }
  func.func @transform_0(%arg0: i32) -> (i32, i32) {
    %c0_i32 = arith.constant 0 : i32
    %c0_i32_0 = arith.constant 0 : i32
    return %arg0, %c0_i32 : i32, i32
  }
  func.func @transform_1(%arg0: i32) -> (i32, i32) {
    %c0_i32 = arith.constant 0 : i32
    %c0_i32_0 = arith.constant 0 : i32
    %c0_i32_1 = arith.constant 0 : i32
    return %c0_i32, %c0_i32_0 : i32, i32
  }
  func.func @transform_2(%arg0: i32) -> (i32, i32) {
    %c0_i32 = arith.constant 0 : i32
    %c0_i32_0 = arith.constant 0 : i32
    %c0_i32_1 = arith.constant 0 : i32
    return %c0_i32, %c0_i32_0 : i32, i32
  }
  func.func @transform_3(%arg0: i32) -> (i32, i32) {
    %c0_i32 = arith.constant 0 : i32
    %c0_i32_0 = arith.constant 0 : i32
    return %arg0, %c0_i32 : i32, i32
  }
}

module attributes {stable_mosaic.version = 11 : i64} {
  func.func @_fused_matmul_kernel(%arg0: i32, %arg1: memref<64x384xbf16, #tpu.memory_space<vmem>>, %arg2: memref<384x48xbf16, #tpu.memory_space<vmem>>, %arg3: memref<1x48xf32, #tpu.memory_space<vmem>>, %arg4: memref<64x48xf32, #tpu.memory_space<vmem>>) attributes {dimension_semantics = [#tpu.dimension_semantics<parallel>], iteration_bounds = array<i64: 2>, scalar_prefetch = 0 : i64, scratch_operands = 0 : i64, tpu.core_type = #tpu.core_type<tc>, window_params = [{transform_indices = @transform_0, window_bounds = array<i64: 64, 384>}, {pipeline_mode = #tpu.pipeline_mode<synchronous>, transform_indices = @transform_1, window_bounds = array<i64: 384, 48>}, {pipeline_mode = #tpu.pipeline_mode<synchronous>, transform_indices = @transform_2, window_bounds = array<i64: 1, 48>}, {transform_indices = @transform_3, window_bounds = array<i64: 64, 48>}]} {
    %c0 = arith.constant 0 : index
    %c0_0 = arith.constant 0 : index
    %0 = vector.load %arg1[%c0, %c0_0] : memref<64x384xbf16, #tpu.memory_space<vmem>>, vector<64x384xbf16>
    %c0_1 = arith.constant 0 : index
    %c0_2 = arith.constant 0 : index
    %1 = vector.load %arg2[%c0_1, %c0_2] : memref<384x48xbf16, #tpu.memory_space<vmem>>, vector<384x48xbf16>
    %cst = arith.constant dense<0.000000e+00> : vector<64x48xf32>
    %2 = tpu.matmul %0, %1, %cst {dimension_numbers = #tpu.dot_dimension_numbers<[1], [0], [0], [1], [0, 0, 1, 1], [], []>} : vector<64x384xbf16>, vector<384x48xbf16>, vector<64x48xf32> -> vector<64x48xf32>
    %c0_3 = arith.constant 0 : index
    %c0_4 = arith.constant 0 : index
    %3 = vector.load %arg3[%c0_3, %c0_4] : memref<1x48xf32, #tpu.memory_space<vmem>>, vector<1x48xf32>
    %4 = vector.broadcast %3 : vector<1x48xf32> to vector<64x48xf32>
    %5 = arith.addf %2, %4 : vector<64x48xf32>
    %cst_5 = arith.constant 0.000000e+00 : f32
    %6 = vector.broadcast %cst_5 : f32 to vector<64x48xf32>
    %7 = arith.maximumf %5, %6 : vector<64x48xf32>
    %c0_6 = arith.constant 0 : index
    %c0_7 = arith.constant 0 : index
    %8 = vector.load %arg4[%c0_6, %c0_7] : memref<64x48xf32, #tpu.memory_space<vmem>>, vector<64x48xf32>
    tpu.vector_store %arg4[%c0_6, %c0_7], %7 {strides = array<i32>} : memref<64x48xf32, #tpu.memory_space<vmem>>, vector<64x48xf32>,
    return
  }
  func.func @transform_0(%arg0: i32) -> (i32, i32) {
    %c0_i32 = arith.constant 0 : i32
    %c0_i32_0 = arith.constant 0 : i32
    return %arg0, %c0_i32 : i32, i32
  }
  func.func @transform_1(%arg0: i32) -> (i32, i32) {
    %c0_i32 = arith.constant 0 : i32
    %c0_i32_0 = arith.constant 0 : i32
    %c0_i32_1 = arith.constant 0 : i32
    return %c0_i32, %c0_i32_0 : i32, i32
  }
  func.func @transform_2(%arg0: i32) -> (i32, i32) {
    %c0_i32 = arith.constant 0 : i32
    %c0_i32_0 = arith.constant 0 : i32
    %c0_i32_1 = arith.constant 0 : i32
    return %c0_i32, %c0_i32_0 : i32, i32
  }
  func.func @transform_3(%arg0: i32) -> (i32, i32) {
    %c0_i32 = arith.constant 0 : i32
    %c0_i32_0 = arith.constant 0 : i32
    return %arg0, %c0_i32 : i32, i32
  }
}

module attributes {stable_mosaic.version = 11 : i64} {
  func.func @_fused_matmul_kernel(%arg0: i32, %arg1: memref<64x512xbf16, #tpu.memory_space<vmem>>, %arg2: memref<512x64xbf16, #tpu.memory_space<vmem>>, %arg3: memref<1x64xf32, #tpu.memory_space<vmem>>, %arg4: memref<64x64xf32, #tpu.memory_space<vmem>>) attributes {dimension_semantics = [#tpu.dimension_semantics<parallel>], iteration_bounds = array<i64: 2>, scalar_prefetch = 0 : i64, scratch_operands = 0 : i64, tpu.core_type = #tpu.core_type<tc>, window_params = [{transform_indices = @transform_0, window_bounds = array<i64: 64, 512>}, {pipeline_mode = #tpu.pipeline_mode<synchronous>, transform_indices = @transform_1, window_bounds = array<i64: 512, 64>}, {pipeline_mode = #tpu.pipeline_mode<synchronous>, transform_indices = @transform_2, window_bounds = array<i64: 1, 64>}, {transform_indices = @transform_3, window_bounds = array<i64: 64, 64>}]} {
    %c0 = arith.constant 0 : index
    %c0_0 = arith.constant 0 : index
    %0 = vector.load %arg1[%c0, %c0_0] : memref<64x512xbf16, #tpu.memory_space<vmem>>, vector<64x512xbf16>
    %c0_1 = arith.constant 0 : index
    %c0_2 = arith.constant 0 : index
    %1 = vector.load %arg2[%c0_1, %c0_2] : memref<512x64xbf16, #tpu.memory_space<vmem>>, vector<512x64xbf16>
    %cst = arith.constant dense<0.000000e+00> : vector<64x64xf32>
    %2 = tpu.matmul %0, %1, %cst {dimension_numbers = #tpu.dot_dimension_numbers<[1], [0], [0], [1], [0, 0, 1, 1], [], []>} : vector<64x512xbf16>, vector<512x64xbf16>, vector<64x64xf32> -> vector<64x64xf32>
    %c0_3 = arith.constant 0 : index
    %c0_4 = arith.constant 0 : index
    %3 = vector.load %arg3[%c0_3, %c0_4] : memref<1x64xf32, #tpu.memory_space<vmem>>, vector<1x64xf32>
    %4 = vector.broadcast %3 : vector<1x64xf32> to vector<64x64xf32>
    %5 = arith.addf %2, %4 : vector<64x64xf32>
    %cst_5 = arith.constant 0.000000e+00 : f32
    %6 = vector.broadcast %cst_5 : f32 to vector<64x64xf32>
    %7 = arith.maximumf %5, %6 : vector<64x64xf32>
    %c0_6 = arith.constant 0 : index
    %c0_7 = arith.constant 0 : index
    %8 = vector.load %arg4[%c0_6, %c0_7] : memref<64x64xf32, #tpu.memory_space<vmem>>, vector<64x64xf32>
    tpu.vector_store %arg4[%c0_6, %c0_7], %7 {strides = array<i32>} : memref<64x64xf32, #tpu.memory_space<vmem>>, vector<64x64xf32>,
    return
  }
  func.func @transform_0(%arg0: i32) -> (i32, i32) {
    %c0_i32 = arith.constant 0 : i32
    %c0_i32_0 = arith.constant 0 : i32
    return %arg0, %c0_i32 : i32, i32
  }
  func.func @transform_1(%arg0: i32) -> (i32, i32) {
    %c0_i32 = arith.constant 0 : i32
    %c0_i32_0 = arith.constant 0 : i32
    %c0_i32_1 = arith.constant 0 : i32
    return %c0_i32, %c0_i32_0 : i32, i32
  }
  func.func @transform_2(%arg0: i32) -> (i32, i32) {
    %c0_i32 = arith.constant 0 : i32
    %c0_i32_0 = arith.constant 0 : i32
    %c0_i32_1 = arith.constant 0 : i32
    return %c0_i32, %c0_i32_0 : i32, i32
  }
  func.func @transform_3(%arg0: i32) -> (i32, i32) {
    %c0_i32 = arith.constant 0 : i32
    %c0_i32_0 = arith.constant 0 : i32
    return %arg0, %c0_i32 : i32, i32
  }
}

module attributes {stable_mosaic.version = 11 : i64} {
  func.func @_fused_matmul_kernel(%arg0: i32, %arg1: memref<64x512xbf16, #tpu.memory_space<vmem>>, %arg2: memref<512x256xbf16, #tpu.memory_space<vmem>>, %arg3: memref<1x256xf32, #tpu.memory_space<vmem>>, %arg4: memref<64x256xf32, #tpu.memory_space<vmem>>) attributes {dimension_semantics = [#tpu.dimension_semantics<parallel>], iteration_bounds = array<i64: 2>, scalar_prefetch = 0 : i64, scratch_operands = 0 : i64, tpu.core_type = #tpu.core_type<tc>, window_params = [{transform_indices = @transform_0, window_bounds = array<i64: 64, 512>}, {pipeline_mode = #tpu.pipeline_mode<synchronous>, transform_indices = @transform_1, window_bounds = array<i64: 512, 256>}, {pipeline_mode = #tpu.pipeline_mode<synchronous>, transform_indices = @transform_2, window_bounds = array<i64: 1, 256>}, {transform_indices = @transform_3, window_bounds = array<i64: 64, 256>}]} {
    %c0 = arith.constant 0 : index
    %c0_0 = arith.constant 0 : index
    %0 = vector.load %arg1[%c0, %c0_0] : memref<64x512xbf16, #tpu.memory_space<vmem>>, vector<64x512xbf16>
    %c0_1 = arith.constant 0 : index
    %c0_2 = arith.constant 0 : index
    %1 = vector.load %arg2[%c0_1, %c0_2] : memref<512x256xbf16, #tpu.memory_space<vmem>>, vector<512x256xbf16>
    %cst = arith.constant dense<0.000000e+00> : vector<64x256xf32>
    %2 = tpu.matmul %0, %1, %cst {dimension_numbers = #tpu.dot_dimension_numbers<[1], [0], [0], [1], [0, 0, 1, 1], [], []>} : vector<64x512xbf16>, vector<512x256xbf16>, vector<64x256xf32> -> vector<64x256xf32>
    %c0_3 = arith.constant 0 : index
    %c0_4 = arith.constant 0 : index
    %3 = vector.load %arg3[%c0_3, %c0_4] : memref<1x256xf32, #tpu.memory_space<vmem>>, vector<1x256xf32>
    %4 = vector.broadcast %3 : vector<1x256xf32> to vector<64x256xf32>
    %5 = arith.addf %2, %4 : vector<64x256xf32>
    %cst_5 = arith.constant 0.000000e+00 : f32
    %6 = vector.broadcast %cst_5 : f32 to vector<64x256xf32>
    %7 = arith.maximumf %5, %6 : vector<64x256xf32>
    %c0_6 = arith.constant 0 : index
    %c0_7 = arith.constant 0 : index
    %8 = vector.load %arg4[%c0_6, %c0_7] : memref<64x256xf32, #tpu.memory_space<vmem>>, vector<64x256xf32>
    tpu.vector_store %arg4[%c0_6, %c0_7], %7 {strides = array<i32>} : memref<64x256xf32, #tpu.memory_space<vmem>>, vector<64x256xf32>,
    return
  }
  func.func @transform_0(%arg0: i32) -> (i32, i32) {
    %c0_i32 = arith.constant 0 : i32
    %c0_i32_0 = arith.constant 0 : i32
    return %arg0, %c0_i32 : i32, i32
  }
  func.func @transform_1(%arg0: i32) -> (i32, i32) {
    %c0_i32 = arith.constant 0 : i32
    %c0_i32_0 = arith.constant 0 : i32
    %c0_i32_1 = arith.constant 0 : i32
    return %c0_i32, %c0_i32_0 : i32, i32
  }
  func.func @transform_2(%arg0: i32) -> (i32, i32) {
    %c0_i32 = arith.constant 0 : i32
    %c0_i32_0 = arith.constant 0 : i32
    %c0_i32_1 = arith.constant 0 : i32
    return %c0_i32, %c0_i32_0 : i32, i32
  }
  func.func @transform_3(%arg0: i32) -> (i32, i32) {
    %c0_i32 = arith.constant 0 : i32
    %c0_i32_0 = arith.constant 0 : i32
    return %arg0, %c0_i32 : i32, i32
  }
}

module attributes {stable_mosaic.version = 11 : i64} {
  func.func @_fused_matmul_kernel(%arg0: i32, %arg1: memref<64x2304xbf16, #tpu.memory_space<vmem>>, %arg2: memref<2304x128xbf16, #tpu.memory_space<vmem>>, %arg3: memref<1x128xf32, #tpu.memory_space<vmem>>, %arg4: memref<64x128xf32, #tpu.memory_space<vmem>>) attributes {dimension_semantics = [#tpu.dimension_semantics<parallel>], iteration_bounds = array<i64: 2>, scalar_prefetch = 0 : i64, scratch_operands = 0 : i64, tpu.core_type = #tpu.core_type<tc>, window_params = [{transform_indices = @transform_0, window_bounds = array<i64: 64, 2304>}, {pipeline_mode = #tpu.pipeline_mode<synchronous>, transform_indices = @transform_1, window_bounds = array<i64: 2304, 128>}, {pipeline_mode = #tpu.pipeline_mode<synchronous>, transform_indices = @transform_2, window_bounds = array<i64: 1, 128>}, {transform_indices = @transform_3, window_bounds = array<i64: 64, 128>}]} {
    %c0 = arith.constant 0 : index
    %c0_0 = arith.constant 0 : index
    %0 = vector.load %arg1[%c0, %c0_0] : memref<64x2304xbf16, #tpu.memory_space<vmem>>, vector<64x2304xbf16>
    %c0_1 = arith.constant 0 : index
    %c0_2 = arith.constant 0 : index
    %1 = vector.load %arg2[%c0_1, %c0_2] : memref<2304x128xbf16, #tpu.memory_space<vmem>>, vector<2304x128xbf16>
    %cst = arith.constant dense<0.000000e+00> : vector<64x128xf32>
    %2 = tpu.matmul %0, %1, %cst {dimension_numbers = #tpu.dot_dimension_numbers<[1], [0], [0], [1], [0, 0, 1, 1], [], []>} : vector<64x2304xbf16>, vector<2304x128xbf16>, vector<64x128xf32> -> vector<64x128xf32>
    %c0_3 = arith.constant 0 : index
    %c0_4 = arith.constant 0 : index
    %3 = vector.load %arg3[%c0_3, %c0_4] : memref<1x128xf32, #tpu.memory_space<vmem>>, vector<1x128xf32>
    %4 = vector.broadcast %3 : vector<1x128xf32> to vector<64x128xf32>
    %5 = arith.addf %2, %4 : vector<64x128xf32>
    %cst_5 = arith.constant 0.000000e+00 : f32
    %6 = vector.broadcast %cst_5 : f32 to vector<64x128xf32>
    %7 = arith.maximumf %5, %6 : vector<64x128xf32>
    %c0_6 = arith.constant 0 : index
    %c0_7 = arith.constant 0 : index
    %8 = vector.load %arg4[%c0_6, %c0_7] : memref<64x128xf32, #tpu.memory_space<vmem>>, vector<64x128xf32>
    tpu.vector_store %arg4[%c0_6, %c0_7], %7 {strides = array<i32>} : memref<64x128xf32, #tpu.memory_space<vmem>>, vector<64x128xf32>,
    return
  }
  func.func @transform_0(%arg0: i32) -> (i32, i32) {
    %c0_i32 = arith.constant 0 : i32
    %c0_i32_0 = arith.constant 0 : i32
    return %arg0, %c0_i32 : i32, i32
  }
  func.func @transform_1(%arg0: i32) -> (i32, i32) {
    %c0_i32 = arith.constant 0 : i32
    %c0_i32_0 = arith.constant 0 : i32
    %c0_i32_1 = arith.constant 0 : i32
    return %c0_i32, %c0_i32_0 : i32, i32
  }
  func.func @transform_2(%arg0: i32) -> (i32, i32) {
    %c0_i32 = arith.constant 0 : i32
    %c0_i32_0 = arith.constant 0 : i32
    %c0_i32_1 = arith.constant 0 : i32
    return %c0_i32, %c0_i32_0 : i32, i32
  }
  func.func @transform_3(%arg0: i32) -> (i32, i32) {
    %c0_i32 = arith.constant 0 : i32
    %c0_i32_0 = arith.constant 0 : i32
    return %arg0, %c0_i32 : i32, i32
  }
}

module attributes {stable_mosaic.version = 11 : i64} {
  func.func @_fused_matmul_kernel(%arg0: i32, %arg1: memref<64x128xbf16, #tpu.memory_space<vmem>>, %arg2: memref<128x512xbf16, #tpu.memory_space<vmem>>, %arg3: memref<1x512xf32, #tpu.memory_space<vmem>>, %arg4: memref<64x512xf32, #tpu.memory_space<vmem>>) attributes {dimension_semantics = [#tpu.dimension_semantics<parallel>], iteration_bounds = array<i64: 2>, scalar_prefetch = 0 : i64, scratch_operands = 0 : i64, tpu.core_type = #tpu.core_type<tc>, window_params = [{transform_indices = @transform_0, window_bounds = array<i64: 64, 128>}, {pipeline_mode = #tpu.pipeline_mode<synchronous>, transform_indices = @transform_1, window_bounds = array<i64: 128, 512>}, {pipeline_mode = #tpu.pipeline_mode<synchronous>, transform_indices = @transform_2, window_bounds = array<i64: 1, 512>}, {transform_indices = @transform_3, window_bounds = array<i64: 64, 512>}]} {
    %c0 = arith.constant 0 : index
    %c0_0 = arith.constant 0 : index
    %0 = vector.load %arg1[%c0, %c0_0] : memref<64x128xbf16, #tpu.memory_space<vmem>>, vector<64x128xbf16>
    %c0_1 = arith.constant 0 : index
    %c0_2 = arith.constant 0 : index
    %1 = vector.load %arg2[%c0_1, %c0_2] : memref<128x512xbf16, #tpu.memory_space<vmem>>, vector<128x512xbf16>
    %cst = arith.constant dense<0.000000e+00> : vector<64x512xf32>
    %2 = tpu.matmul %0, %1, %cst {dimension_numbers = #tpu.dot_dimension_numbers<[1], [0], [0], [1], [0, 0, 1, 1], [], []>} : vector<64x128xbf16>, vector<128x512xbf16>, vector<64x512xf32> -> vector<64x512xf32>
    %c0_3 = arith.constant 0 : index
    %c0_4 = arith.constant 0 : index
    %3 = vector.load %arg3[%c0_3, %c0_4] : memref<1x512xf32, #tpu.memory_space<vmem>>, vector<1x512xf32>
    %4 = vector.broadcast %3 : vector<1x512xf32> to vector<64x512xf32>
    %5 = arith.addf %2, %4 : vector<64x512xf32>
    %cst_5 = arith.constant 0.000000e+00 : f32
    %6 = vector.broadcast %cst_5 : f32 to vector<64x512xf32>
    %7 = arith.maximumf %5, %6 : vector<64x512xf32>
    %c0_6 = arith.constant 0 : index
    %c0_7 = arith.constant 0 : index
    %8 = vector.load %arg4[%c0_6, %c0_7] : memref<64x512xf32, #tpu.memory_space<vmem>>, vector<64x512xf32>
    tpu.vector_store %arg4[%c0_6, %c0_7], %7 {strides = array<i32>} : memref<64x512xf32, #tpu.memory_space<vmem>>, vector<64x512xf32>,
    return
  }
  func.func @transform_0(%arg0: i32) -> (i32, i32) {
    %c0_i32 = arith.constant 0 : i32
    %c0_i32_0 = arith.constant 0 : i32
    return %arg0, %c0_i32 : i32, i32
  }
  func.func @transform_1(%arg0: i32) -> (i32, i32) {
    %c0_i32 = arith.constant 0 : i32
    %c0_i32_0 = arith.constant 0 : i32
    %c0_i32_1 = arith.constant 0 : i32
    return %c0_i32, %c0_i32_0 : i32, i32
  }
  func.func @transform_2(%arg0: i32) -> (i32, i32) {
    %c0_i32 = arith.constant 0 : i32
    %c0_i32_0 = arith.constant 0 : i32
    %c0_i32_1 = arith.constant 0 : i32
    return %c0_i32, %c0_i32_0 : i32, i32
  }
  func.func @transform_3(%arg0: i32) -> (i32, i32) {
    %c0_i32 = arith.constant 0 : i32
    %c0_i32_0 = arith.constant 0 : i32
    return %arg0, %c0_i32 : i32, i32
  }
}

module attributes {stable_mosaic.version = 11 : i64} {
  func.func @_fused_matmul_kernel(%arg0: i32, %arg1: memref<256x128xbf16, #tpu.memory_space<vmem>>, %arg2: memref<128x8xbf16, #tpu.memory_space<vmem>>, %arg3: memref<1x8xf32, #tpu.memory_space<vmem>>, %arg4: memref<256x8xf32, #tpu.memory_space<vmem>>) attributes {dimension_semantics = [#tpu.dimension_semantics<parallel>], iteration_bounds = array<i64: 2>, scalar_prefetch = 0 : i64, scratch_operands = 0 : i64, tpu.core_type = #tpu.core_type<tc>, window_params = [{transform_indices = @transform_0, window_bounds = array<i64: 256, 128>}, {pipeline_mode = #tpu.pipeline_mode<synchronous>, transform_indices = @transform_1, window_bounds = array<i64: 128, 8>}, {pipeline_mode = #tpu.pipeline_mode<synchronous>, transform_indices = @transform_2, window_bounds = array<i64: 1, 8>}, {transform_indices = @transform_3, window_bounds = array<i64: 256, 8>}]} {
    %c0 = arith.constant 0 : index
    %c0_0 = arith.constant 0 : index
    %0 = vector.load %arg1[%c0, %c0_0] : memref<256x128xbf16, #tpu.memory_space<vmem>>, vector<256x128xbf16>
    %c0_1 = arith.constant 0 : index
    %c0_2 = arith.constant 0 : index
    %1 = vector.load %arg2[%c0_1, %c0_2] : memref<128x8xbf16, #tpu.memory_space<vmem>>, vector<128x8xbf16>
    %cst = arith.constant dense<0.000000e+00> : vector<256x8xf32>
    %2 = tpu.matmul %0, %1, %cst {dimension_numbers = #tpu.dot_dimension_numbers<[1], [0], [0], [1], [0, 0, 1, 1], [], []>} : vector<256x128xbf16>, vector<128x8xbf16>, vector<256x8xf32> -> vector<256x8xf32>
    %c0_3 = arith.constant 0 : index
    %c0_4 = arith.constant 0 : index
    %3 = vector.load %arg3[%c0_3, %c0_4] : memref<1x8xf32, #tpu.memory_space<vmem>>, vector<1x8xf32>
    %4 = vector.broadcast %3 : vector<1x8xf32> to vector<256x8xf32>
    %5 = arith.addf %2, %4 : vector<256x8xf32>
    %6 = arith.negf %5 : vector<256x8xf32>
    %7 = math.exp %6 : vector<256x8xf32>
    %cst_5 = arith.constant 1.000000e+00 : f32
    %8 = vector.broadcast %cst_5 : f32 to vector<256x8xf32>
    %9 = arith.addf %8, %7 : vector<256x8xf32>
    %10 = arith.divf %8, %9 : vector<256x8xf32>
    %c0_6 = arith.constant 0 : index
    %c0_7 = arith.constant 0 : index
    %11 = vector.load %arg4[%c0_6, %c0_7] : memref<256x8xf32, #tpu.memory_space<vmem>>, vector<256x8xf32>
    tpu.vector_store %arg4[%c0_6, %c0_7], %10 {strides = array<i32>} : memref<256x8xf32, #tpu.memory_space<vmem>>, vector<256x8xf32>,
    return
  }
  func.func @transform_0(%arg0: i32) -> (i32, i32) {
    %c0_i32 = arith.constant 0 : i32
    %c0_i32_0 = arith.constant 0 : i32
    return %arg0, %c0_i32 : i32, i32
  }
  func.func @transform_1(%arg0: i32) -> (i32, i32) {
    %c0_i32 = arith.constant 0 : i32
    %c0_i32_0 = arith.constant 0 : i32
    %c0_i32_1 = arith.constant 0 : i32
    return %c0_i32, %c0_i32_0 : i32, i32
  }
  func.func @transform_2(%arg0: i32) -> (i32, i32) {
    %c0_i32 = arith.constant 0 : i32
    %c0_i32_0 = arith.constant 0 : i32
    %c0_i32_1 = arith.constant 0 : i32
    return %c0_i32, %c0_i32_0 : i32, i32
  }
  func.func @transform_3(%arg0: i32) -> (i32, i32) {
    %c0_i32 = arith.constant 0 : i32
    %c0_i32_0 = arith.constant 0 : i32
    return %arg0, %c0_i32 : i32, i32
  }
}

</mosaic_0001>

<bundles_post_ra>
// kernel: edbhead_forward.11
= control target key start
LH: loop header
LB: loop body
LE: loop exit
PB: predicated region body
PF: predicated region fallthrough
CT: control target
= control target key end

     0   :  { %s673_s12 = smov 0   ;;  %s776_s0 = inlined_call_operand.vmem [shape: bf16[128,256], index: 0, kind: input, shape index: {}]   ;;  %s777_s1 = inlined_call_operand.vmem [shape: bf16[256,128], index: 1, kind: input, shape index: {}]   ;;  %s778_s2 = inlined_call_operand.vmem [shape: f32[1,128], index: 2, kind: input, shape index: {}]   ;;  %s779_s3 = inlined_call_operand.vmem [shape: f32[128,128], index: 3, kind: output, shape index: {}]  }
   0x1 LB: > { %s487_s13 = sadd.s32 4294967295, %s651_s12   ;;  %p491_p0 = scmp.ge.s32.totalorder %s651_s12, 1  ;;  %s651_s12 = sphi %s673_s12, %s13_s12  }
   0x2   : > { %p139_p1 = scmp.lt.s32.totalorder %s651_s12, 3 }
   0x4   : > { %p140_p2 = pnand %p491_p0, %p139_p1 }
   0x5   : > { %s492_s26 = sshll.u32 (!%p140_p2), %s487_s13, 3 }
   0x6   : > { %143 = sbr.rel (%p140_p2) target bundleno = 206 (0xce), region = 32  ;;  %p165_p3 = scmp.lt.s32.totalorder (!%p140_p2), %s492_s26, 15 }
   0xb   : > { %v611_v0 = vld [vmem:[%s777_s1 + $0x38] sm:$0xff]  ;;  %v610_v2 = vld [vmem:[%s777_s1 + $0x30] sm:$0xff]  ;;  %v609_v4 = vld [vmem:[%s777_s1 + $0x28] sm:$0xff]  ;;  %s781_s26 = smov (!%p165_p3, %s492_s26), 15 }
   0xc   : > { %v619_v1 = vld [vmem:[%s777_s1 + $0x78] sm:$0xff]  ;;  %357 = vmatpush.bf16.msra.mxu0 %v611_v0  ;;  %620 = vmatpush.bf16.msra.mxu2 %v611_v0  ;;  %v618_v3 = vld [vmem:[%s777_s1 + $0x70] sm:$0xff]  ;;  %v617_v5 = vld [vmem:[%s777_s1 + $0x68] sm:$0xff]  ;;  %s595_s13 = sshll.u32 %s781_s26, 3 }
   0xd   : > { %386 = vmatpush.bf16.msra.mxu1 %v619_v1  ;;  %628 = vmatpush.bf16.msra.mxu3 %v619_v1  ;;  %v608_v6 = vld [vmem:[%s777_s1 + $0x20] sm:$0xff]  ;;  %v607_v8 = vld [vmem:[%s777_s1 + $0x18] sm:$0xff]  ;;  %v606_v10 = vld [vmem:[%s777_s1 + $0x10] sm:$0xff]  ;;  %s728_s18 = scalar_lea.vmem %s776_s0, %s595_s13  ;;  %s763_s30 = scalar_lea.vmem %s779_s3, %s595_s13 }
   0xe   : > { %v616_v7 = vld [vmem:[%s777_s1 + $0x60] sm:$0xff]  ;;  %v615_v9 = vld [vmem:[%s777_s1 + $0x58] sm:$0xff]  ;;  %v614_v11 = vld [vmem:[%s777_s1 + $0x50] sm:$0xff] }
   0xf   : > { %v605_v12 = vld [vmem:[%s777_s1 + $0x8] sm:$0xff]  ;;  %v604_v14 = vld [vmem:[%s777_s1] sm:$0xff]  ;;  %v507_v28 = vld [vmem:[%s728_s18 + $0x10] sm:$0xf] }
  0x10   : > { %358 = vmatpush.bf16.msra.mxu0 %v610_v2  ;;  %621 = vmatpush.bf16.msra.mxu2 %v610_v2  ;;  %v613_v13 = vld [vmem:[%s777_s1 + $0x48] sm:$0xff]  ;;  %v612_v15 = vld [vmem:[%s777_s1 + $0x40] sm:$0xff]  ;;  %v599_v29 = vld [vmem:[%s728_s18 + $0x14] sm:$0xf0] }
  0x11   : > { %387 = vmatpush.bf16.msra.mxu1 %v618_v3  ;;  %629 = vmatpush.bf16.msra.mxu3 %v618_v3  ;;  %v499_v16 = vld [vmem:[%s728_s18] sm:$0xf]  ;;  %v597_v17 = vld [vmem:[%s728_s18 + $0x4] sm:$0xf0]  ;;  %v596_v20 = vld [vmem:[%s728_s18 + $0x4] sm:$0xf]  ;;  %v508_v36 = vor.u32 %v599_v29, %v507_v28 }
  0x12   : > { %v515_v18 = vld [vmem:[%s728_s18 + $0x20] sm:$0xf]  ;;  %v601_v19 = vld [vmem:[%s728_s18 + $0x24] sm:$0xf0]  ;;  %v501_v21 = vld [vmem:[%s728_s18 + $0x8] sm:$0xf0]  ;;  %v500_v24 = vor.u32 %v597_v17, %v499_v16 }
  0x13   : > { %v600_v22 = vld [vmem:[%s728_s18 + $0x24] sm:$0xf]  ;;  %v517_v23 = vld [vmem:[%s728_s18 + $0x28] sm:$0xf0]  ;;  %v516_v25 = vor.u32 %v601_v19, %v515_v18  ;;  %v504_v26 = vor.u32 %v596_v20, %v501_v21  ;;  %v523_v30 = vld [vmem:[%s728_s18 + $0x30] sm:$0xf] }
  0x14   : > { %359 = vmatpush.bf16.msra.mxu0 %v609_v4  ;;  %622 = vmatpush.bf16.msra.mxu2 %v609_v4  ;;  %v520_v27 = vor.u32 %v600_v22, %v517_v23  ;;  %v603_v31 = vld [vmem:[%s728_s18 + $0x34] sm:$0xf0]  ;;  %v598_v32 = vld [vmem:[%s728_s18 + $0x14] sm:$0xf]  ;;  %v509_v33 = vld [vmem:[%s728_s18 + $0x18] sm:$0xf0] }
  0x15   : > { %388 = vmatpush.bf16.msra.mxu1 %v617_v5  ;;  %630 = vmatpush.bf16.msra.mxu3 %v617_v5  ;;  %v602_v34 = vld [vmem:[%s728_s18 + $0x34] sm:$0xf]  ;;  %v525_v35 = vld [vmem:[%s728_s18 + $0x38] sm:$0xf0]  ;;  %v524_v37 = vor.u32 %v603_v31, %v523_v30  ;;  %v512_v38 = vor.u32 %v598_v32, %v509_v33  ;;  %v644_v40 = vld [vmem:[%s778_s2] ss:$0 sm:$0xff] }
  0x16   : > { %v528_v39 = vor.u32 %v602_v34, %v525_v35 }
  0x18   : > { %360 = vmatpush.bf16.msra.mxu0 %v608_v6  ;;  %623 = vmatpush.bf16.msra.mxu2 %v608_v6 }
  0x19   : > { %389 = vmatpush.bf16.msra.mxu1 %v616_v7  ;;  %631 = vmatpush.bf16.msra.mxu3 %v616_v7 }
  0x1c   : > { %361 = vmatpush.bf16.msra.mxu0 %v607_v8  ;;  %624 = vmatpush.bf16.msra.mxu2 %v607_v8 }
  0x1d   : > { %390 = vmatpush.bf16.msra.mxu1 %v615_v9  ;;  %632 = vmatpush.bf16.msra.mxu3 %v615_v9 }
  0x20   : > { %362 = vmatpush.bf16.msra.mxu0 %v606_v10  ;;  %625 = vmatpush.bf16.msra.mxu2 %v606_v10 }
  0x21   : > { %391 = vmatpush.bf16.msra.mxu1 %v614_v11  ;;  %633 = vmatpush.bf16.msra.mxu3 %v614_v11 }
  0x24   : > { %363 = vmatpush.bf16.msra.mxu0 %v605_v12  ;;  %626 = vmatpush.bf16.msra.mxu2 %v605_v12 }
  0x25   : > { %392 = vmatpush.bf16.msra.mxu1 %v613_v13  ;;  %634 = vmatpush.bf16.msra.mxu3 %v613_v13 }
  0x28   : > { %364 = vmatpush.bf16.msra.mxu0 %v604_v14  ;;  %627 = vmatpush.bf16.msra.mxu2 %v604_v14 }
  0x29   : > { %393 = vmatpush.bf16.msra.mxu1 %v612_v15  ;;  %635 = vmatpush.bf16.msra.mxu3 %v612_v15 }
  0x2b   : > { %365 = vmatmul.bf16.vlgmr.msra.gmra.mxu0 %v500_v24  ;;  %375 = vmatmul.bf16.vlgmr.msra.gmra.mxu2 %v516_v25 }
  0x2c   : > { %394 = vmatmul.bf16.vlgmr.msra.gmra.mxu1 %v504_v26  ;;  %404 = vmatmul.bf16.vlgmr.msra.gmra.mxu3 %v520_v27 }
  0x3b   : > { %370 = vmatmul.bf16.gmra.mxu0 %v508_v36  ;;  %380 = vmatmul.bf16.gmra.mxu2 %v524_v37 }
  0x3c   : > { %399 = vmatmul.bf16.gmra.mxu1 %v512_v38  ;;  %409 = vmatmul.bf16.gmra.mxu3 %v528_v39 }
  0xa8   : > { %v366_v41 = vpop.f32.mrf.mxu0 }
  0xa9   : > { %v367_v42 = vadd.f32 %v644_v40, %v366_v41  ;;  %v395_v43 = vpop.f32.mrf.mxu1 }
  0xab   : > { %v396_v44 = vadd.f32 %v395_v43, %v367_v42 }
  0xad   : > { %v415_v45 = vmax.f32 %v396_v44, 0.0 }
  0xae   : > { %v376_v46 = vpop.f32.mrf.mxu2 }
  0xaf   : > { %423 = vst [vmem:[%s763_s30] sm:$0xff] %v415_v45  ;;  %v377_v47 = vadd.f32 %v644_v40, %v376_v46  ;;  %v405_v48 = vpop.f32.mrf.mxu3 }
  0xb0   : > { %v368_v49 = vpop.f32.mrf.mxu0 }
  0xb1   : > { %v406_v50 = vadd.f32 %v405_v48, %v377_v47  ;;  %v369_v51 = vadd.f32 %v644_v40, %v368_v49  ;;  %v397_v52 = vpop.f32.mrf.mxu1 }
  0xb3   : > { %v419_v53 = vmax.f32 %v406_v50, 0.0  ;;  %v398_v54 = vadd.f32 %v397_v52, %v369_v51 }
  0xb5   : > { %427 = vst [vmem:[%s763_s30 + $0x20] sm:$0xff] %v419_v53  ;;  %v416_v55 = vmax.f32 %v398_v54, 0.0 }
  0xb6   : > { %v378_v56 = vpop.f32.mrf.mxu2 }
  0xb7   : > { %424 = vst [vmem:[%s763_s30 + $0x8] sm:$0xff] %v416_v55  ;;  %v379_v57 = vadd.f32 %v644_v40, %v378_v56  ;;  %v407_v58 = vpop.f32.mrf.mxu3 }
  0xb8   : > { %v371_v59 = vpop.f32.mrf.mxu0 }
  0xb9   : > { %v408_v60 = vadd.f32 %v407_v58, %v379_v57  ;;  %v372_v61 = vadd.f32 %v644_v40, %v371_v59  ;;  %v400_v62 = vpop.f32.mrf.mxu1 }
  0xbb   : > { %v420_v63 = vmax.f32 %v408_v60, 0.0  ;;  %v401_v0 = vadd.f32 %v400_v62, %v372_v61 }
  0xbd   : > { %428 = vst [vmem:[%s763_s30 + $0x28] sm:$0xff] %v420_v63  ;;  %v417_v1 = vmax.f32 %v401_v0, 0.0 }
  0xbe   : > { %v381_v2 = vpop.f32.mrf.mxu2 }
  0xbf   : > { %425 = vst [vmem:[%s763_s30 + $0x10] sm:$0xff] %v417_v1  ;;  %v382_v3 = vadd.f32 %v644_v40, %v381_v2  ;;  %v410_v4 = vpop.f32.mrf.mxu3 }
  0xc0   : > { %v373_v5 = vpop.f32.mrf.mxu0 }
  0xc1   : > { %v411_v6 = vadd.f32 %v410_v4, %v382_v3  ;;  %v374_v7 = vadd.f32 %v644_v40, %v373_v5  ;;  %v402_v8 = vpop.f32.mrf.mxu1 }
  0xc3   : > { %v421_v9 = vmax.f32 %v411_v6, 0.0  ;;  %v403_v10 = vadd.f32 %v402_v8, %v374_v7 }
  0xc5   : > { %429 = vst [vmem:[%s763_s30 + $0x30] sm:$0xff] %v421_v9  ;;  %v418_v11 = vmax.f32 %v403_v10, 0.0 }
  0xc6   : > { %v383_v12 = vpop.f32.mrf.mxu2 }
  0xc7   : > { %426 = vst [vmem:[%s763_s30 + $0x18] sm:$0xff] %v418_v11  ;;  %v384_v13 = vadd.f32 %v644_v40, %v383_v12  ;;  %v412_v14 = vpop.f32.mrf.mxu3 }
  0xc9   : > { %v413_v15 = vadd.f32 %v412_v14, %v384_v13 }
  0xcb   : > { %v422_v16 = vmax.f32 %v413_v15, 0.0 }
  0xcd   : > { %430 = vst [vmem:[%s763_s30 + $0x38] sm:$0xff] %v422_v16 }
  0xce PF: > { %s13_s12 = sadd.s32 1, %s651_s12  }
  0xcf   : > { %p10_p4 = scmp.ge.s32.totalorder %s13_s12, 4  }
  0xd1   :  { %12 = sbr.rel (!%p10_p4) target bundleno = 1 (0x1), region = 62 }

// kernel: edbhead_forward.13
= control target key start
LH: loop header
LB: loop body
LE: loop exit
PB: predicated region body
PF: predicated region fallthrough
CT: control target
= control target key end

     0   :  { %s850_s12 = smov 0   ;;  %s990_s0 = inlined_call_operand.vmem [shape: bf16[128,384], index: 0, kind: input, shape index: {}]   ;;  %s991_s1 = inlined_call_operand.vmem [shape: bf16[384,64], index: 1, kind: input, shape index: {}]   ;;  %s992_s2 = inlined_call_operand.vmem [shape: f32[1,64], index: 2, kind: input, shape index: {}]   ;;  %s993_s3 = inlined_call_operand.vmem [shape: f32[128,64], index: 3, kind: output, shape index: {}]  }
   0x1 LB: > { %s613_s13 = sadd.s32 4294967295, %s828_s12   ;;  %p617_p0 = scmp.ge.s32.totalorder %s828_s12, 1  ;;  %s828_s12 = sphi %s850_s12, %s13_s12  }
   0x2   : > { %p139_p1 = scmp.lt.s32.totalorder %s828_s12, 3 }
   0x4   : > { %p140_p2 = pnand %p617_p0, %p139_p1 }
   0x5   : > { %s618_s5 = sshll.u32 (!%p140_p2), %s613_s13, 3 }
   0x6   : > { %143 = sbr.rel (%p140_p2) target bundleno = 238 (0xee), region = 32  ;;  %p165_p3 = scmp.lt.s32.totalorder (!%p140_p2), %s618_s5, 15 }
   0xb   : > { %v787_v0 = vld [vmem:[%s991_s1 + $0x38] sm:$0xff]  ;;  %v786_v3 = vld [vmem:[%s991_s1 + $0x30] sm:$0xff]  ;;  %v785_v6 = vld [vmem:[%s991_s1 + $0x28] sm:$0xff]  ;;  %s995_s5 = smov (!%p165_p3, %s618_s5), 15  ;;  %vm548_vm0 = vcmask 523264  }
   0xc   : > { %v795_v1 = vld [vmem:[%s991_s1 + $0x78] sm:$0xff]  ;;  %453 = vmatpush.bf16.msra.mxu0 %v787_v0  ;;  %v794_v4 = vld [vmem:[%s991_s1 + $0x70] sm:$0xff]  ;;  %804 = vmatpush.bf16.msra.mxu3 %v787_v0  ;;  %v793_v7 = vld [vmem:[%s991_s1 + $0x68] sm:$0xff]  ;;  %s812_s23 = smul.u32 12, %s995_s5  ;;  %s621_s18 = sshll.u32 %s995_s5, 3 }
   0xd   : > { %v803_v2 = vld [vmem:[%s991_s1 + $0xb8] sm:$0xff]  ;;  %482 = vmatpush.bf16.msra.mxu1 %v795_v1  ;;  %v802_v5 = vld [vmem:[%s991_s1 + $0xb0] sm:$0xff]  ;;  %v801_v8 = vld [vmem:[%s991_s1 + $0xa8] sm:$0xff]  ;;  %s969_s21 = scalar_lea.vmem %s993_s3, %s621_s18 }
   0xe   : > { %511 = vmatpush.bf16.msra.mxu2 %v803_v2  ;;  %v784_v9 = vld [vmem:[%s991_s1 + $0x20] sm:$0xff]  ;;  %v783_v12 = vld [vmem:[%s991_s1 + $0x18] sm:$0xff]  ;;  %v782_v15 = vld [vmem:[%s991_s1 + $0x10] sm:$0xff]  ;;  %s924_s6 = scalar_lea.vmem %s990_s0, %s812_s23 }
   0xf   : > { %v792_v10 = vld [vmem:[%s991_s1 + $0x60] sm:$0xff]  ;;  %v791_v13 = vld [vmem:[%s991_s1 + $0x58] sm:$0xff]  ;;  %v790_v16 = vld [vmem:[%s991_s1 + $0x50] sm:$0xff] }
  0x10   : > { %454 = vmatpush.bf16.msra.mxu0 %v786_v3  ;;  %805 = vmatpush.bf16.msra.mxu3 %v786_v3  ;;  %v800_v11 = vld [vmem:[%s991_s1 + $0xa0] sm:$0xff]  ;;  %v799_v14 = vld [vmem:[%s991_s1 + $0x98] sm:$0xff]  ;;  %v798_v17 = vld [vmem:[%s991_s1 + $0x90] sm:$0xff] }
  0x11   : > { %483 = vmatpush.bf16.msra.mxu1 %v794_v4  ;;  %v781_v18 = vld [vmem:[%s991_s1 + $0x8] sm:$0xff]  ;;  %v780_v21 = vld [vmem:[%s991_s1] sm:$0xff]  ;;  %v626_v27 = vld [vmem:[%s924_s6 + $0xc] sm:$0xf0] }
  0x12   : > { %512 = vmatpush.bf16.msra.mxu2 %v802_v5  ;;  %v789_v19 = vld [vmem:[%s991_s1 + $0x48] sm:$0xff]  ;;  %v788_v22 = vld [vmem:[%s991_s1 + $0x40] sm:$0xff]  ;;  %v770_v29 = vld [vmem:[%s924_s6 + $0x10] sm:$0xf0] }
  0x13   : > { %v797_v20 = vld [vmem:[%s991_s1 + $0x88] sm:$0xff]  ;;  %v796_v23 = vld [vmem:[%s991_s1 + $0x80] sm:$0xff]  ;;  %v636_v30 = vld [vmem:[%s924_s6 + $0x18] sm:$0xf] }
  0x14   : > { %455 = vmatpush.bf16.msra.mxu0 %v785_v6  ;;  %806 = vmatpush.bf16.msra.mxu3 %v785_v6  ;;  %v624_v24 = vld [vmem:[%s924_s6] sm:$0xf]  ;;  %v769_v25 = vld [vmem:[%s924_s6 + $0x8] sm:$0xf0]  ;;  %v768_v26 = vld [vmem:[%s924_s6 + $0x4] sm:$0xf] }
  0x15   : > { %484 = vmatpush.bf16.msra.mxu1 %v793_v7  ;;  %v632_v28 = vld [vmem:[%s924_s6 + $0x8] sm:$0xf]  ;;  %v772_v31 = vld [vmem:[%s924_s6 + $0x20] sm:$0xf0]  ;;  %v625_v32 = vor.u32 %v769_v25, %v624_v24  ;;  %v629_v33 = vor.u32 %v768_v26, %v626_v27  ;;  %v771_v36 = vld [vmem:[%s924_s6 + $0x1c] sm:$0xf] }
  0x16   : > { %513 = vmatpush.bf16.msra.mxu2 %v801_v8  ;;  %v633_v34 = vor.u32 %v770_v29, %v632_v28  ;;  %v637_v35 = vor.u32 %v772_v31, %v636_v30  ;;  %v638_v37 = vld [vmem:[%s924_s6 + $0x24] sm:$0xf0]  ;;  %v644_v38 = vld [vmem:[%s924_s6 + $0x20] sm:$0xf]  ;;  %v773_v39 = vld [vmem:[%s924_s6 + $0x28] sm:$0xf0] }
  0x17   : > { %v648_v40 = vld [vmem:[%s924_s6 + $0x30] sm:$0xf]  ;;  %v775_v41 = vld [vmem:[%s924_s6 + $0x38] sm:$0xf0]  ;;  %v641_v42 = vor.u32 %v771_v36, %v638_v37  ;;  %v645_v43 = vor.u32 %v773_v39, %v644_v38  ;;  %v774_v45 = vld [vmem:[%s924_s6 + $0x34] sm:$0xf] }
  0x18   : > { %456 = vmatpush.bf16.msra.mxu0 %v784_v9  ;;  %807 = vmatpush.bf16.msra.mxu3 %v784_v9  ;;  %v649_v44 = vor.u32 %v775_v41, %v648_v40  ;;  %v650_v46 = vld [vmem:[%s924_s6 + $0x3c] sm:$0xf0]  ;;  %v656_v47 = vld [vmem:[%s924_s6 + $0x38] sm:$0xf]  ;;  %v776_v48 = vld [vmem:[%s924_s6 + $0x40] sm:$0xf0] }
  0x19   : > { %485 = vmatpush.bf16.msra.mxu1 %v792_v10  ;;  %v660_v49 = vld [vmem:[%s924_s6 + $0x48] sm:$0xf]  ;;  %v778_v50 = vld [vmem:[%s924_s6 + $0x50] sm:$0xf0]  ;;  %v653_v51 = vor.u32 %v774_v45, %v650_v46  ;;  %v657_v52 = vor.u32 %v776_v48, %v656_v47  ;;  %v777_v54 = vld [vmem:[%s924_s6 + $0x4c] sm:$0xf] }
  0x1a   : > { %514 = vmatpush.bf16.msra.mxu2 %v800_v11  ;;  %v661_v53 = vor.u32 %v778_v50, %v660_v49  ;;  %v662_v55 = vld [vmem:[%s924_s6 + $0x54] sm:$0xf0]  ;;  %v668_v56 = vld [vmem:[%s924_s6 + $0x50] sm:$0xf]  ;;  %v779_v57 = vld [vmem:[%s924_s6 + $0x58] sm:$0xf0] }
  0x1b   : > { %v665_v58 = vor.u32 %v777_v54, %v662_v55  ;;  %v669_v59 = vor.u32 %v779_v57, %v668_v56  ;;  %v821_v60 = vld [vmem:[%s992_s2] ss:$0 sm:$0xff] }
  0x1c   : > { %457 = vmatpush.bf16.msra.mxu0 %v783_v12  ;;  %808 = vmatpush.bf16.msra.mxu3 %v783_v12 }
  0x1d   : > { %486 = vmatpush.bf16.msra.mxu1 %v791_v13 }
  0x1e   : > { %515 = vmatpush.bf16.msra.mxu2 %v799_v14 }
  0x20   : > { %458 = vmatpush.bf16.msra.mxu0 %v782_v15  ;;  %809 = vmatpush.bf16.msra.mxu3 %v782_v15 }
  0x21   : > { %487 = vmatpush.bf16.msra.mxu1 %v790_v16 }
  0x22   : > { %516 = vmatpush.bf16.msra.mxu2 %v798_v17 }
  0x24   : > { %459 = vmatpush.bf16.msra.mxu0 %v781_v18  ;;  %810 = vmatpush.bf16.msra.mxu3 %v781_v18 }
  0x25   : > { %488 = vmatpush.bf16.msra.mxu1 %v789_v19 }
  0x26   : > { %517 = vmatpush.bf16.msra.mxu2 %v797_v20 }
  0x28   : > { %460 = vmatpush.bf16.msra.mxu0 %v780_v21  ;;  %811 = vmatpush.bf16.msra.mxu3 %v780_v21 }
  0x29   : > { %489 = vmatpush.bf16.msra.mxu1 %v788_v22 }
  0x2a   : > { %518 = vmatpush.bf16.msra.mxu2 %v796_v23 }
  0x2b   : > { %461 = vmatmul.bf16.vlgmr.msra.gmra.mxu0 %v625_v32  ;;  %466 = vmatmul.bf16.vlgmr.msra.gmra.mxu3 %v637_v35 }
  0x2c   : > { %490 = vmatmul.bf16.vlgmr.msra.gmra.mxu1 %v629_v33 }
  0x2d   : > { %519 = vmatmul.bf16.vlgmr.msra.gmra.mxu2 %v633_v34 }
  0x3b   : > { %471 = vmatmul.bf16.gmra.mxu3 %v649_v44 }
  0x3c   : > { %495 = vmatmul.bf16.gmra.mxu1 %v641_v42 }
  0x3d   : > { %524 = vmatmul.bf16.gmra.mxu2 %v645_v43 }
  0x4b   : > { %476 = vmatmul.bf16.gmra.mxu3 %v661_v53 }
  0x4c   : > { %500 = vmatmul.bf16.gmra.mxu1 %v653_v51 }
  0x4d   : > { %529 = vmatmul.bf16.gmra.mxu2 %v657_v52 }
  0x5c   : > { %505 = vmatmul.bf16.gmra.mxu1 %v665_v58 }
  0x5d   : > { %534 = vmatmul.bf16.gmra.mxu2 %v669_v59 }
  0xa8   : > { %v462_v61 = vpop.f32.mrf.mxu0 }
  0xa9   : > { %v491_v62 = vpop.f32.mrf.mxu1  ;;  %v463_v63 = vadd.f32 %v821_v60, %v462_v61 }
  0xab   : > { %v492_v0 = vadd.f32 %v491_v62, %v463_v63 }
  0xae   : > { %v467_v2 = vpop.f32.mrf.mxu3 }
  0xaf   : > { %v468_v10 = vadd.f32 %v821_v60, %v467_v2 }
  0xb0   : > { %v520_v1 = vpop.f32.mrf.mxu2  ;;  %v464_v4 = vpop.f32.mrf.mxu0 }
  0xb1   : > { %v521_v3 = vadd.f32 %v520_v1, %v492_v0  ;;  %v493_v5 = vpop.f32.mrf.mxu1  ;;  %v465_v7 = vadd.f32 %v821_v60, %v464_v4 }
  0xb3   : > { %v540_v6 = vmax.f32 %v521_v3, 0.0  ;;  %v494_v8 = vadd.f32 %v493_v5, %v465_v7 }
  0xb5   : > { %549 = vst.msk [vmem:[%s969_s21] sm:$0xff] %vm548_vm0, %v540_v6 }
  0xb6   : > { %v469_v13 = vpop.f32.mrf.mxu3 }
  0xb7   : > { %v470_v21 = vadd.f32 %v821_v60, %v469_v13 }
  0xb8   : > { %v522_v9 = vpop.f32.mrf.mxu2 }
  0xb9   : > { %v523_v11 = vadd.f32 %v522_v9, %v494_v8  ;;  %v496_v12 = vpop.f32.mrf.mxu1 }
  0xba   : > { %v497_v15 = vadd.f32 %v496_v12, %v468_v10 }
  0xbb   : > { %v541_v14 = vmax.f32 %v523_v11, 0.0 }
  0xbd   : > { %550 = vst.msk [vmem:[%s969_s21 + $0x8] sm:$0xff] %vm548_vm0, %v541_v14 }
  0xbe   : > { %v472_v20 = vpop.f32.mrf.mxu3 }
  0xbf   : > { %v473_v24 = vadd.f32 %v821_v60, %v472_v20 }
  0xc0   : > { %v525_v16 = vpop.f32.mrf.mxu2 }
  0xc1   : > { %v526_v17 = vadd.f32 %v525_v16, %v497_v15  ;;  %v498_v18 = vpop.f32.mrf.mxu1 }
  0xc2   : > { %v499_v22 = vadd.f32 %v498_v18, %v470_v21 }
  0xc3   : > { %v542_v19 = vmax.f32 %v526_v17, 0.0 }
  0xc5   : > { %551 = vst.msk [vmem:[%s969_s21 + $0x10] sm:$0xff] %vm548_vm0, %v542_v19 }
  0xc6   : > { %v474_v29 = vpop.f32.mrf.mxu3 }
  0xc7   : > { %v475_v34 = vadd.f32 %v821_v60, %v474_v29 }
  0xc8   : > { %v527_v23 = vpop.f32.mrf.mxu2 }
  0xc9   : > { %v528_v25 = vadd.f32 %v527_v23, %v499_v22  ;;  %v501_v26 = vpop.f32.mrf.mxu1 }
  0xca   : > { %v502_v28 = vadd.f32 %v501_v26, %v473_v24 }
  0xcb   : > { %v543_v27 = vmax.f32 %v528_v25, 0.0 }
  0xcd   : > { %552 = vst.msk [vmem:[%s969_s21 + $0x18] sm:$0xff] %vm548_vm0, %v543_v27 }
  0xce   : > { %v477_v36 = vpop.f32.mrf.mxu3 }
  0xcf   : > { %v478_v38 = vadd.f32 %v821_v60, %v477_v36 }
  0xd0   : > { %v530_v30 = vpop.f32.mrf.mxu2 }
  0xd1   : > { %v531_v31 = vadd.f32 %v530_v30, %v502_v28  ;;  %v503_v32 = vpop.f32.mrf.mxu1 }
  0xd2   : > { %v504_v35 = vadd.f32 %v503_v32, %v475_v34 }
  0xd3   : > { %v544_v33 = vmax.f32 %v531_v31, 0.0 }
  0xd5   : > { %553 = vst.msk [vmem:[%s969_s21 + $0x20] sm:$0xff] %vm548_vm0, %v544_v33 }
  0xd6   : > { %v479_v45 = vpop.f32.mrf.mxu3 }
  0xd7   : > { %v480_v48 = vadd.f32 %v821_v60, %v479_v45 }
  0xd8   : > { %v532_v37 = vpop.f32.mrf.mxu2 }
  0xd9   : > { %v533_v39 = vadd.f32 %v532_v37, %v504_v35  ;;  %v506_v40 = vpop.f32.mrf.mxu1 }
  0xda   : > { %v507_v42 = vadd.f32 %v506_v40, %v478_v38 }
  0xdb   : > { %v545_v41 = vmax.f32 %v533_v39, 0.0 }
  0xdd   : > { %554 = vst.msk [vmem:[%s969_s21 + $0x28] sm:$0xff] %vm548_vm0, %v545_v41 }
  0xe0   : > { %v535_v43 = vpop.f32.mrf.mxu2 }
  0xe1   : > { %v536_v44 = vadd.f32 %v535_v43, %v507_v42  ;;  %v508_v47 = vpop.f32.mrf.mxu1 }
  0xe2   : > { %v509_v49 = vadd.f32 %v508_v47, %v480_v48 }
  0xe3   : > { %v546_v46 = vmax.f32 %v536_v44, 0.0 }
  0xe5   : > { %555 = vst.msk [vmem:[%s969_s21 + $0x30] sm:$0xff] %vm548_vm0, %v546_v46 }
  0xe8   : > { %v537_v50 = vpop.f32.mrf.mxu2 }
  0xe9   : > { %v538_v51 = vadd.f32 %v537_v50, %v509_v49 }
  0xeb   : > { %v547_v52 = vmax.f32 %v538_v51, 0.0 }
  0xed   : > { %556 = vst.msk [vmem:[%s969_s21 + $0x38] sm:$0xff] %vm548_vm0, %v547_v52 }
  0xee PF: > { %s13_s12 = sadd.s32 1, %s828_s12  }
  0xef   : > { %p10_p4 = scmp.ge.s32.totalorder %s13_s12, 4  }
  0xf1   :  { %12 = sbr.rel (!%p10_p4) target bundleno = 1 (0x1), region = 62 }

// kernel: edbhead_forward.15
= control target key start
LH: loop header
LB: loop body
LE: loop exit
PB: predicated region body
PF: predicated region fallthrough
CT: control target
= control target key end

     0   :  { %s850_s12 = smov 0   ;;  %s990_s0 = inlined_call_operand.vmem [shape: bf16[128,384], index: 0, kind: input, shape index: {}]   ;;  %s991_s1 = inlined_call_operand.vmem [shape: bf16[384,48], index: 1, kind: input, shape index: {}]   ;;  %s992_s2 = inlined_call_operand.vmem [shape: f32[1,48], index: 2, kind: input, shape index: {}]   ;;  %s993_s3 = inlined_call_operand.vmem [shape: f32[128,48], index: 3, kind: output, shape index: {}]  }
   0x1 LB: > { %s613_s13 = sadd.s32 4294967295, %s828_s12   ;;  %p617_p0 = scmp.ge.s32.totalorder %s828_s12, 1  ;;  %s828_s12 = sphi %s850_s12, %s13_s12  }
   0x2   : > { %p139_p1 = scmp.lt.s32.totalorder %s828_s12, 3 }
   0x4   : > { %p140_p2 = pnand %p617_p0, %p139_p1 }
   0x5   : > { %s618_s5 = sshll.u32 (!%p140_p2), %s613_s13, 3 }
   0x6   : > { %143 = sbr.rel (%p140_p2) target bundleno = 238 (0xee), region = 32  ;;  %p165_p3 = scmp.lt.s32.totalorder (!%p140_p2), %s618_s5, 15 }
   0xb   : > { %v787_v0 = vld [vmem:[%s991_s1 + $0x38] sm:$0xff]  ;;  %v786_v3 = vld [vmem:[%s991_s1 + $0x30] sm:$0xff]  ;;  %v785_v6 = vld [vmem:[%s991_s1 + $0x28] sm:$0xff]  ;;  %s995_s5 = smov (!%p165_p3, %s618_s5), 15  ;;  %vm548_vm0 = vcmask 392192  }
   0xc   : > { %v795_v1 = vld [vmem:[%s991_s1 + $0x78] sm:$0xff]  ;;  %453 = vmatpush.bf16.msra.mxu0 %v787_v0  ;;  %v794_v4 = vld [vmem:[%s991_s1 + $0x70] sm:$0xff]  ;;  %804 = vmatpush.bf16.msra.mxu3 %v787_v0  ;;  %v793_v7 = vld [vmem:[%s991_s1 + $0x68] sm:$0xff]  ;;  %s812_s23 = smul.u32 12, %s995_s5  ;;  %s621_s18 = sshll.u32 %s995_s5, 3 }
   0xd   : > { %v803_v2 = vld [vmem:[%s991_s1 + $0xb8] sm:$0xff]  ;;  %482 = vmatpush.bf16.msra.mxu1 %v795_v1  ;;  %v802_v5 = vld [vmem:[%s991_s1 + $0xb0] sm:$0xff]  ;;  %v801_v8 = vld [vmem:[%s991_s1 + $0xa8] sm:$0xff]  ;;  %s969_s21 = scalar_lea.vmem %s993_s3, %s621_s18 }
   0xe   : > { %511 = vmatpush.bf16.msra.mxu2 %v803_v2  ;;  %v784_v9 = vld [vmem:[%s991_s1 + $0x20] sm:$0xff]  ;;  %v783_v12 = vld [vmem:[%s991_s1 + $0x18] sm:$0xff]  ;;  %v782_v15 = vld [vmem:[%s991_s1 + $0x10] sm:$0xff]  ;;  %s924_s6 = scalar_lea.vmem %s990_s0, %s812_s23 }
   0xf   : > { %v792_v10 = vld [vmem:[%s991_s1 + $0x60] sm:$0xff]  ;;  %v791_v13 = vld [vmem:[%s991_s1 + $0x58] sm:$0xff]  ;;  %v790_v16 = vld [vmem:[%s991_s1 + $0x50] sm:$0xff] }
  0x10   : > { %454 = vmatpush.bf16.msra.mxu0 %v786_v3  ;;  %805 = vmatpush.bf16.msra.mxu3 %v786_v3  ;;  %v800_v11 = vld [vmem:[%s991_s1 + $0xa0] sm:$0xff]  ;;  %v799_v14 = vld [vmem:[%s991_s1 + $0x98] sm:$0xff]  ;;  %v798_v17 = vld [vmem:[%s991_s1 + $0x90] sm:$0xff] }
  0x11   : > { %483 = vmatpush.bf16.msra.mxu1 %v794_v4  ;;  %v781_v18 = vld [vmem:[%s991_s1 + $0x8] sm:$0xff]  ;;  %v780_v21 = vld [vmem:[%s991_s1] sm:$0xff]  ;;  %v626_v27 = vld [vmem:[%s924_s6 + $0xc] sm:$0xf0] }
  0x12   : > { %512 = vmatpush.bf16.msra.mxu2 %v802_v5  ;;  %v789_v19 = vld [vmem:[%s991_s1 + $0x48] sm:$0xff]  ;;  %v788_v22 = vld [vmem:[%s991_s1 + $0x40] sm:$0xff]  ;;  %v770_v29 = vld [vmem:[%s924_s6 + $0x10] sm:$0xf0] }
  0x13   : > { %v797_v20 = vld [vmem:[%s991_s1 + $0x88] sm:$0xff]  ;;  %v796_v23 = vld [vmem:[%s991_s1 + $0x80] sm:$0xff]  ;;  %v636_v30 = vld [vmem:[%s924_s6 + $0x18] sm:$0xf] }
  0x14   : > { %455 = vmatpush.bf16.msra.mxu0 %v785_v6  ;;  %806 = vmatpush.bf16.msra.mxu3 %v785_v6  ;;  %v624_v24 = vld [vmem:[%s924_s6] sm:$0xf]  ;;  %v769_v25 = vld [vmem:[%s924_s6 + $0x8] sm:$0xf0]  ;;  %v768_v26 = vld [vmem:[%s924_s6 + $0x4] sm:$0xf] }
  0x15   : > { %484 = vmatpush.bf16.msra.mxu1 %v793_v7  ;;  %v632_v28 = vld [vmem:[%s924_s6 + $0x8] sm:$0xf]  ;;  %v772_v31 = vld [vmem:[%s924_s6 + $0x20] sm:$0xf0]  ;;  %v625_v32 = vor.u32 %v769_v25, %v624_v24  ;;  %v629_v33 = vor.u32 %v768_v26, %v626_v27  ;;  %v771_v36 = vld [vmem:[%s924_s6 + $0x1c] sm:$0xf] }
  0x16   : > { %513 = vmatpush.bf16.msra.mxu2 %v801_v8  ;;  %v633_v34 = vor.u32 %v770_v29, %v632_v28  ;;  %v637_v35 = vor.u32 %v772_v31, %v636_v30  ;;  %v638_v37 = vld [vmem:[%s924_s6 + $0x24] sm:$0xf0]  ;;  %v644_v38 = vld [vmem:[%s924_s6 + $0x20] sm:$0xf]  ;;  %v773_v39 = vld [vmem:[%s924_s6 + $0x28] sm:$0xf0] }
  0x17   : > { %v648_v40 = vld [vmem:[%s924_s6 + $0x30] sm:$0xf]  ;;  %v775_v41 = vld [vmem:[%s924_s6 + $0x38] sm:$0xf0]  ;;  %v641_v42 = vor.u32 %v771_v36, %v638_v37  ;;  %v645_v43 = vor.u32 %v773_v39, %v644_v38  ;;  %v774_v45 = vld [vmem:[%s924_s6 + $0x34] sm:$0xf] }
  0x18   : > { %456 = vmatpush.bf16.msra.mxu0 %v784_v9  ;;  %807 = vmatpush.bf16.msra.mxu3 %v784_v9  ;;  %v649_v44 = vor.u32 %v775_v41, %v648_v40  ;;  %v650_v46 = vld [vmem:[%s924_s6 + $0x3c] sm:$0xf0]  ;;  %v656_v47 = vld [vmem:[%s924_s6 + $0x38] sm:$0xf]  ;;  %v776_v48 = vld [vmem:[%s924_s6 + $0x40] sm:$0xf0] }
  0x19   : > { %485 = vmatpush.bf16.msra.mxu1 %v792_v10  ;;  %v660_v49 = vld [vmem:[%s924_s6 + $0x48] sm:$0xf]  ;;  %v778_v50 = vld [vmem:[%s924_s6 + $0x50] sm:$0xf0]  ;;  %v653_v51 = vor.u32 %v774_v45, %v650_v46  ;;  %v657_v52 = vor.u32 %v776_v48, %v656_v47  ;;  %v777_v54 = vld [vmem:[%s924_s6 + $0x4c] sm:$0xf] }
  0x1a   : > { %514 = vmatpush.bf16.msra.mxu2 %v800_v11  ;;  %v661_v53 = vor.u32 %v778_v50, %v660_v49  ;;  %v662_v55 = vld [vmem:[%s924_s6 + $0x54] sm:$0xf0]  ;;  %v668_v56 = vld [vmem:[%s924_s6 + $0x50] sm:$0xf]  ;;  %v779_v57 = vld [vmem:[%s924_s6 + $0x58] sm:$0xf0] }
  0x1b   : > { %v665_v58 = vor.u32 %v777_v54, %v662_v55  ;;  %v669_v59 = vor.u32 %v779_v57, %v668_v56  ;;  %v821_v60 = vld [vmem:[%s992_s2] ss:$0 sm:$0xff] }
  0x1c   : > { %457 = vmatpush.bf16.msra.mxu0 %v783_v12  ;;  %808 = vmatpush.bf16.msra.mxu3 %v783_v12 }
  0x1d   : > { %486 = vmatpush.bf16.msra.mxu1 %v791_v13 }
  0x1e   : > { %515 = vmatpush.bf16.msra.mxu2 %v799_v14 }
  0x20   : > { %458 = vmatpush.bf16.msra.mxu0 %v782_v15  ;;  %809 = vmatpush.bf16.msra.mxu3 %v782_v15 }
  0x21   : > { %487 = vmatpush.bf16.msra.mxu1 %v790_v16 }
  0x22   : > { %516 = vmatpush.bf16.msra.mxu2 %v798_v17 }
  0x24   : > { %459 = vmatpush.bf16.msra.mxu0 %v781_v18  ;;  %810 = vmatpush.bf16.msra.mxu3 %v781_v18 }
  0x25   : > { %488 = vmatpush.bf16.msra.mxu1 %v789_v19 }
  0x26   : > { %517 = vmatpush.bf16.msra.mxu2 %v797_v20 }
  0x28   : > { %460 = vmatpush.bf16.msra.mxu0 %v780_v21  ;;  %811 = vmatpush.bf16.msra.mxu3 %v780_v21 }
  0x29   : > { %489 = vmatpush.bf16.msra.mxu1 %v788_v22 }
  0x2a   : > { %518 = vmatpush.bf16.msra.mxu2 %v796_v23 }
  0x2b   : > { %461 = vmatmul.bf16.vlgmr.msra.gmra.mxu0 %v625_v32  ;;  %466 = vmatmul.bf16.vlgmr.msra.gmra.mxu3 %v637_v35 }
  0x2c   : > { %490 = vmatmul.bf16.vlgmr.msra.gmra.mxu1 %v629_v33 }
  0x2d   : > { %519 = vmatmul.bf16.vlgmr.msra.gmra.mxu2 %v633_v34 }
  0x3b   : > { %471 = vmatmul.bf16.gmra.mxu3 %v649_v44 }
  0x3c   : > { %495 = vmatmul.bf16.gmra.mxu1 %v641_v42 }
  0x3d   : > { %524 = vmatmul.bf16.gmra.mxu2 %v645_v43 }
  0x4b   : > { %476 = vmatmul.bf16.gmra.mxu3 %v661_v53 }
  0x4c   : > { %500 = vmatmul.bf16.gmra.mxu1 %v653_v51 }
  0x4d   : > { %529 = vmatmul.bf16.gmra.mxu2 %v657_v52 }
  0x5c   : > { %505 = vmatmul.bf16.gmra.mxu1 %v665_v58 }
  0x5d   : > { %534 = vmatmul.bf16.gmra.mxu2 %v669_v59 }
  0xa8   : > { %v462_v61 = vpop.f32.mrf.mxu0 }
  0xa9   : > { %v491_v62 = vpop.f32.mrf.mxu1  ;;  %v463_v63 = vadd.f32 %v821_v60, %v462_v61 }
  0xab   : > { %v492_v0 = vadd.f32 %v491_v62, %v463_v63 }
  0xae   : > { %v467_v2 = vpop.f32.mrf.mxu3 }
  0xaf   : > { %v468_v10 = vadd.f32 %v821_v60, %v467_v2 }
  0xb0   : > { %v520_v1 = vpop.f32.mrf.mxu2  ;;  %v464_v4 = vpop.f32.mrf.mxu0 }
  0xb1   : > { %v521_v3 = vadd.f32 %v520_v1, %v492_v0  ;;  %v493_v5 = vpop.f32.mrf.mxu1  ;;  %v465_v7 = vadd.f32 %v821_v60, %v464_v4 }
  0xb3   : > { %v540_v6 = vmax.f32 %v521_v3, 0.0  ;;  %v494_v8 = vadd.f32 %v493_v5, %v465_v7 }
  0xb5   : > { %549 = vst.msk [vmem:[%s969_s21] sm:$0xff] %vm548_vm0, %v540_v6 }
  0xb6   : > { %v469_v13 = vpop.f32.mrf.mxu3 }
  0xb7   : > { %v470_v21 = vadd.f32 %v821_v60, %v469_v13 }
  0xb8   : > { %v522_v9 = vpop.f32.mrf.mxu2 }
  0xb9   : > { %v523_v11 = vadd.f32 %v522_v9, %v494_v8  ;;  %v496_v12 = vpop.f32.mrf.mxu1 }
  0xba   : > { %v497_v15 = vadd.f32 %v496_v12, %v468_v10 }
  0xbb   : > { %v541_v14 = vmax.f32 %v523_v11, 0.0 }
  0xbd   : > { %550 = vst.msk [vmem:[%s969_s21 + $0x8] sm:$0xff] %vm548_vm0, %v541_v14 }
  0xbe   : > { %v472_v20 = vpop.f32.mrf.mxu3 }
  0xbf   : > { %v473_v24 = vadd.f32 %v821_v60, %v472_v20 }
  0xc0   : > { %v525_v16 = vpop.f32.mrf.mxu2 }
  0xc1   : > { %v526_v17 = vadd.f32 %v525_v16, %v497_v15  ;;  %v498_v18 = vpop.f32.mrf.mxu1 }
  0xc2   : > { %v499_v22 = vadd.f32 %v498_v18, %v470_v21 }
  0xc3   : > { %v542_v19 = vmax.f32 %v526_v17, 0.0 }
  0xc5   : > { %551 = vst.msk [vmem:[%s969_s21 + $0x10] sm:$0xff] %vm548_vm0, %v542_v19 }
  0xc6   : > { %v474_v29 = vpop.f32.mrf.mxu3 }
  0xc7   : > { %v475_v34 = vadd.f32 %v821_v60, %v474_v29 }
  0xc8   : > { %v527_v23 = vpop.f32.mrf.mxu2 }
  0xc9   : > { %v528_v25 = vadd.f32 %v527_v23, %v499_v22  ;;  %v501_v26 = vpop.f32.mrf.mxu1 }
  0xca   : > { %v502_v28 = vadd.f32 %v501_v26, %v473_v24 }
  0xcb   : > { %v543_v27 = vmax.f32 %v528_v25, 0.0 }
  0xcd   : > { %552 = vst.msk [vmem:[%s969_s21 + $0x18] sm:$0xff] %vm548_vm0, %v543_v27 }
  0xce   : > { %v477_v36 = vpop.f32.mrf.mxu3 }
  0xcf   : > { %v478_v38 = vadd.f32 %v821_v60, %v477_v36 }
  0xd0   : > { %v530_v30 = vpop.f32.mrf.mxu2 }
  0xd1   : > { %v531_v31 = vadd.f32 %v530_v30, %v502_v28  ;;  %v503_v32 = vpop.f32.mrf.mxu1 }
  0xd2   : > { %v504_v35 = vadd.f32 %v503_v32, %v475_v34 }
  0xd3   : > { %v544_v33 = vmax.f32 %v531_v31, 0.0 }
  0xd5   : > { %553 = vst.msk [vmem:[%s969_s21 + $0x20] sm:$0xff] %vm548_vm0, %v544_v33 }
  0xd6   : > { %v479_v45 = vpop.f32.mrf.mxu3 }
  0xd7   : > { %v480_v48 = vadd.f32 %v821_v60, %v479_v45 }
  0xd8   : > { %v532_v37 = vpop.f32.mrf.mxu2 }
  0xd9   : > { %v533_v39 = vadd.f32 %v532_v37, %v504_v35  ;;  %v506_v40 = vpop.f32.mrf.mxu1 }
  0xda   : > { %v507_v42 = vadd.f32 %v506_v40, %v478_v38 }
  0xdb   : > { %v545_v41 = vmax.f32 %v533_v39, 0.0 }
  0xdd   : > { %554 = vst.msk [vmem:[%s969_s21 + $0x28] sm:$0xff] %vm548_vm0, %v545_v41 }
  0xe0   : > { %v535_v43 = vpop.f32.mrf.mxu2 }
  0xe1   : > { %v536_v44 = vadd.f32 %v535_v43, %v507_v42  ;;  %v508_v47 = vpop.f32.mrf.mxu1 }
  0xe2   : > { %v509_v49 = vadd.f32 %v508_v47, %v480_v48 }
  0xe3   : > { %v546_v46 = vmax.f32 %v536_v44, 0.0 }
  0xe5   : > { %555 = vst.msk [vmem:[%s969_s21 + $0x30] sm:$0xff] %vm548_vm0, %v546_v46 }
  0xe8   : > { %v537_v50 = vpop.f32.mrf.mxu2 }
  0xe9   : > { %v538_v51 = vadd.f32 %v537_v50, %v509_v49 }
  0xeb   : > { %v547_v52 = vmax.f32 %v538_v51, 0.0 }
  0xed   : > { %556 = vst.msk [vmem:[%s969_s21 + $0x38] sm:$0xff] %vm548_vm0, %v547_v52 }
  0xee PF: > { %s13_s12 = sadd.s32 1, %s828_s12  }
  0xef   : > { %p10_p4 = scmp.ge.s32.totalorder %s13_s12, 4  }
  0xf1   :  { %12 = sbr.rel (!%p10_p4) target bundleno = 1 (0x1), region = 62 }

// kernel: edbhead_forward.14
= control target key start
LH: loop header
LB: loop body
LE: loop exit
PB: predicated region body
PF: predicated region fallthrough
CT: control target
= control target key end

     0   :  { %s1204_s12 = smov 0   ;;  %s1424_s0 = inlined_call_operand.vmem [shape: bf16[128,640], index: 0, kind: input, shape index: {}]   ;;  %s1425_s1 = inlined_call_operand.vmem [shape: bf16[640,64], index: 1, kind: input, shape index: {}]   ;;  %s1426_s2 = inlined_call_operand.vmem [shape: f32[1,64], index: 2, kind: input, shape index: {}]   ;;  %s1427_s3 = inlined_call_operand.vmem [shape: f32[128,64], index: 3, kind: output, shape index: {}]  }
   0x1 LB: > { %s839_s13 = sadd.s32 4294967295, %s1182_s12   ;;  %p843_p0 = scmp.ge.s32.totalorder %s1182_s12, 1  ;;  %s1182_s12 = sphi %s1204_s12, %s13_s12  }
   0x2   : > { %p139_p1 = scmp.lt.s32.totalorder %s1182_s12, 3 }
   0x4   : > { %p140_p2 = pnand %p843_p0, %p139_p1 }
   0x5   : > { %s844_s30 = sshll.u32 (!%p140_p2), %s839_s13, 3 }
   0x6   : > { %143 = sbr.rel (%p140_p2) target bundleno = 266 (0x10a), region = 32  ;;  %p165_p3 = scmp.lt.s32.totalorder (!%p140_p2), %s844_s30, 15 }
   0xb   : > { %v1117_v0 = vld [vmem:[%s1425_s1 + $0x38] sm:$0xff]  ;;  %v1116_v2 = vld [vmem:[%s1425_s1 + $0x30] sm:$0xff]  ;;  %v1115_v6 = vld [vmem:[%s1425_s1 + $0x28] sm:$0xff]  ;;  %s1429_s30 = smov (!%p165_p3, %s844_s30), 15  ;;  %vm774_vm0 = vcmask 523264  }
   0xc   : > { %v1133_v1 = vld [vmem:[%s1425_s1 + $0xb8] sm:$0xff]  ;;  %1150 = vmatpush.bf16.msra.mxu1 %v1117_v0  ;;  %629 = vmatpush.bf16.msra.mxu0 %v1117_v0  ;;  %v1132_v3 = vld [vmem:[%s1425_s1 + $0xb0] sm:$0xff]  ;;  %v1131_v7 = vld [vmem:[%s1425_s1 + $0xa8] sm:$0xff]  ;;  %s1166_s21 = smul.u32 20, %s1429_s30 }
   0xd   : > { %687 = vmatpush.bf16.msra.mxu2 %v1133_v1  ;;  %v1141_v4 = vld [vmem:[%s1425_s1 + $0xf8] sm:$0xff]  ;;  %v1140_v5 = vld [vmem:[%s1425_s1 + $0xf0] sm:$0xff]  ;;  %v1139_v8 = vld [vmem:[%s1425_s1 + $0xe8] sm:$0xff] }
   0xe   : > { %716 = vmatpush.bf16.msra.mxu3 %v1141_v4  ;;  %v1114_v9 = vld [vmem:[%s1425_s1 + $0x20] sm:$0xff]  ;;  %v1113_v12 = vld [vmem:[%s1425_s1 + $0x18] sm:$0xff]  ;;  %v1112_v15 = vld [vmem:[%s1425_s1 + $0x10] sm:$0xff]  ;;  %s1275_s4 = scalar_lea.vmem %s1424_s0, %s1166_s21 }
   0xf   : > { %v1130_v10 = vld [vmem:[%s1425_s1 + $0xa0] sm:$0xff]  ;;  %v1129_v13 = vld [vmem:[%s1425_s1 + $0x98] sm:$0xff]  ;;  %v1128_v16 = vld [vmem:[%s1425_s1 + $0x90] sm:$0xff] }
  0x10   : > { %1151 = vmatpush.bf16.msra.mxu1 %v1116_v2  ;;  %630 = vmatpush.bf16.msra.mxu0 %v1116_v2  ;;  %v1138_v11 = vld [vmem:[%s1425_s1 + $0xe0] sm:$0xff]  ;;  %v1137_v14 = vld [vmem:[%s1425_s1 + $0xd8] sm:$0xff]  ;;  %v1136_v17 = vld [vmem:[%s1425_s1 + $0xd0] sm:$0xff] }
  0x11   : > { %688 = vmatpush.bf16.msra.mxu2 %v1132_v3  ;;  %v1111_v18 = vld [vmem:[%s1425_s1 + $0x8] sm:$0xff]  ;;  %v1110_v20 = vld [vmem:[%s1425_s1] sm:$0xff]  ;;  %v890_v21 = vld [vmem:[%s1275_s4 + $0x50] sm:$0xf] }
  0x12   : > { %717 = vmatpush.bf16.msra.mxu3 %v1140_v5  ;;  %v1127_v19 = vld [vmem:[%s1425_s1 + $0x88] sm:$0xff]  ;;  %v1125_v22 = vld [vmem:[%s1425_s1 + $0x78] sm:$0xff]  ;;  %v1102_v24 = vld [vmem:[%s1275_s4 + $0x60] sm:$0xf0] }
  0x13   : > { %v1135_v23 = vld [vmem:[%s1425_s1 + $0xc8] sm:$0xff]  ;;  %v850_v25 = vld [vmem:[%s1275_s4] sm:$0xf]  ;;  %v1092_v26 = vld [vmem:[%s1275_s4 + $0x10] sm:$0xf0]  ;;  %v891_v31 = vor.u32 %v1102_v24, %v890_v21 }
  0x14   : > { %1152 = vmatpush.bf16.msra.mxu1 %v1115_v6  ;;  %631 = vmatpush.bf16.msra.mxu0 %v1115_v6  ;;  %v1126_v27 = vld [vmem:[%s1425_s1 + $0x80] sm:$0xff]  ;;  %v858_v28 = vld [vmem:[%s1275_s4 + $0x8] sm:$0xf]  ;;  %v1093_v29 = vld [vmem:[%s1275_s4 + $0x18] sm:$0xf0]  ;;  %v851_v32 = vor.u32 %v1092_v26, %v850_v25 }
  0x15   : > { %689 = vmatpush.bf16.msra.mxu2 %v1131_v7  ;;  %v1149_v30 = vld [vmem:[%s1425_s1 + $0x138] sm:$0xff]  ;;  %v859_v33 = vor.u32 %v1093_v29, %v858_v28  ;;  %v1134_v34 = vld [vmem:[%s1425_s1 + $0xc0] sm:$0xff]  ;;  %v1091_v35 = vld [vmem:[%s1275_s4 + $0xc] sm:$0xf] }
  0x16   : > { %718 = vmatpush.bf16.msra.mxu3 %v1139_v8  ;;  %v860_v36 = vld [vmem:[%s1275_s4 + $0x1c] sm:$0xf0]  ;;  %v1124_v37 = vld [vmem:[%s1425_s1 + $0x70] sm:$0xff]  ;;  %v1123_v40 = vld [vmem:[%s1425_s1 + $0x68] sm:$0xff] }
  0x17   : > { %v1148_v38 = vld [vmem:[%s1425_s1 + $0x130] sm:$0xff]  ;;  %v863_v39 = vor.u32 %v1091_v35, %v860_v36  ;;  %v1147_v41 = vld [vmem:[%s1425_s1 + $0x128] sm:$0xff]  ;;  %v1122_v42 = vld [vmem:[%s1425_s1 + $0x60] sm:$0xff] }
  0x18   : > { %1153 = vmatpush.bf16.msra.mxu1 %v1114_v9  ;;  %632 = vmatpush.bf16.msra.mxu0 %v1114_v9  ;;  %v1146_v43 = vld [vmem:[%s1425_s1 + $0x120] sm:$0xff]  ;;  %v910_v44 = vld [vmem:[%s1275_s4 + $0x78] sm:$0xf]  ;;  %v1107_v45 = vld [vmem:[%s1275_s4 + $0x88] sm:$0xf0] }
  0x19   : > { %690 = vmatpush.bf16.msra.mxu2 %v1130_v10  ;;  %v870_v46 = vld [vmem:[%s1275_s4 + $0x28] sm:$0xf]  ;;  %v1097_v47 = vld [vmem:[%s1275_s4 + $0x38] sm:$0xf0]  ;;  %v878_v49 = vld [vmem:[%s1275_s4 + $0x30] sm:$0xf]  ;;  %v911_v52 = vor.u32 %v1107_v45, %v910_v44 }
  0x1a   : > { %719 = vmatpush.bf16.msra.mxu3 %v1138_v11  ;;  %v1121_v48 = vld [vmem:[%s1425_s1 + $0x58] sm:$0xff]  ;;  %v1098_v50 = vld [vmem:[%s1275_s4 + $0x40] sm:$0xf0]  ;;  %v871_v53 = vor.u32 %v1097_v47, %v870_v46  ;;  %v1096_v55 = vld [vmem:[%s1275_s4 + $0x34] sm:$0xf] }
  0x1b   : > { %v1145_v51 = vld [vmem:[%s1425_s1 + $0x118] sm:$0xff]  ;;  %v879_v54 = vor.u32 %v1098_v50, %v878_v49  ;;  %v880_v56 = vld [vmem:[%s1275_s4 + $0x44] sm:$0xf0]  ;;  %v1120_v57 = vld [vmem:[%s1425_s1 + $0x50] sm:$0xff] }
  0x1c   : > { %1154 = vmatpush.bf16.msra.mxu1 %v1113_v12  ;;  %633 = vmatpush.bf16.msra.mxu0 %v1113_v12  ;;  %v1144_v58 = vld [vmem:[%s1425_s1 + $0x110] sm:$0xff]  ;;  %v883_v59 = vor.u32 %v1096_v55, %v880_v56  ;;  %v1119_v60 = vld [vmem:[%s1425_s1 + $0x48] sm:$0xff]  ;;  %v1118_v62 = vld [vmem:[%s1425_s1 + $0x40] sm:$0xff] }
  0x1d   : > { %691 = vmatpush.bf16.msra.mxu2 %v1129_v13  ;;  %v1143_v61 = vld [vmem:[%s1425_s1 + $0x108] sm:$0xff]  ;;  %v1142_v63 = vld [vmem:[%s1425_s1 + $0x100] sm:$0xff]  ;;  %v852_v1 = vld [vmem:[%s1275_s4 + $0x14] sm:$0xf0] }
  0x1e   : > { %720 = vmatpush.bf16.msra.mxu3 %v1137_v14  ;;  %v1090_v0 = vld [vmem:[%s1275_s4 + $0x4] sm:$0xf]  ;;  %v866_v2 = vld [vmem:[%s1275_s4 + $0x10] sm:$0xf]  ;;  %v898_v4 = vld [vmem:[%s1275_s4 + $0x58] sm:$0xf] }
  0x1f   : > { %v1094_v3 = vld [vmem:[%s1275_s4 + $0x20] sm:$0xf0]  ;;  %v1103_v5 = vld [vmem:[%s1275_s4 + $0x68] sm:$0xf0]  ;;  %v855_v6 = vor.u32 %v1090_v0, %v852_v1  ;;  %v1101_v9 = vld [vmem:[%s1275_s4 + $0x5c] sm:$0xf] }
  0x20   : > { %1155 = vmatpush.bf16.msra.mxu1 %v1112_v15  ;;  %634 = vmatpush.bf16.msra.mxu0 %v1112_v15  ;;  %v867_v7 = vor.u32 %v1094_v3, %v866_v2  ;;  %v899_v8 = vor.u32 %v1103_v5, %v898_v4  ;;  %v900_v10 = vld [vmem:[%s1275_s4 + $0x6c] sm:$0xf0]  ;;  %v1095_v12 = vld [vmem:[%s1275_s4 + $0x2c] sm:$0xf]  ;;  %v872_v13 = vld [vmem:[%s1275_s4 + $0x3c] sm:$0xf0] }
  0x21   : > { %692 = vmatpush.bf16.msra.mxu2 %v1128_v16  ;;  %v903_v11 = vor.u32 %v1101_v9, %v900_v10  ;;  %v886_v14 = vld [vmem:[%s1275_s4 + $0x38] sm:$0xf]  ;;  %v1099_v15 = vld [vmem:[%s1275_s4 + $0x48] sm:$0xf0]  ;;  %v918_v16 = vld [vmem:[%s1275_s4 + $0x80] sm:$0xf] }
  0x22   : > { %721 = vmatpush.bf16.msra.mxu3 %v1136_v17  ;;  %v1108_v17 = vld [vmem:[%s1275_s4 + $0x90] sm:$0xf0]  ;;  %v1106_v21 = vld [vmem:[%s1275_s4 + $0x84] sm:$0xf]  ;;  %v892_v25 = vld [vmem:[%s1275_s4 + $0x64] sm:$0xf0] }
  0x23   : > { %v1100_v24 = vld [vmem:[%s1275_s4 + $0x54] sm:$0xf]  ;;  %v906_v26 = vld [vmem:[%s1275_s4 + $0x60] sm:$0xf]  ;;  %v926_v28 = vld [vmem:[%s1275_s4 + $0x88] sm:$0xf] }
  0x24   : > { %1156 = vmatpush.bf16.msra.mxu1 %v1111_v18  ;;  %635 = vmatpush.bf16.msra.mxu0 %v1111_v18  ;;  %v875_v18 = vor.u32 %v1095_v12, %v872_v13  ;;  %v1109_v29 = vld [vmem:[%s1275_s4 + $0x98] sm:$0xf0] }
  0x25   : > { %693 = vmatpush.bf16.msra.mxu2 %v1127_v19  ;;  %v887_v19 = vor.u32 %v1099_v15, %v886_v14 }
  0x26   : > { %722 = vmatpush.bf16.msra.mxu3 %v1135_v23 }
  0x28   : > { %1157 = vmatpush.bf16.msra.mxu1 %v1110_v20  ;;  %636 = vmatpush.bf16.msra.mxu0 %v1110_v20  ;;  %v919_v20 = vor.u32 %v1108_v17, %v918_v16 }
  0x29   : > { %694 = vmatpush.bf16.msra.mxu2 %v1126_v27  ;;  %v1104_v27 = vld [vmem:[%s1275_s4 + $0x70] sm:$0xf0] }
  0x2a   : > { %723 = vmatpush.bf16.msra.mxu3 %v1134_v34  ;;  %v912_v34 = vld [vmem:[%s1275_s4 + $0x8c] sm:$0xf0] }
  0x2b   : > { %647 = vmatmul.bf16.vlgmr.msra.gmra.mxu1 %v891_v31  ;;  %637 = vmatmul.bf16.vlgmr.msra.gmra.mxu0 %v851_v32  ;;  %v907_v31 = vor.u32 %v1104_v27, %v906_v26  ;;  %v927_v32 = vor.u32 %v1109_v29, %v926_v28 }
  0x2c   : > { %658 = vmatpush.bf16.msrb.mxu1 %v1125_v22  ;;  %745 = vmatpush.bf16.msrb.mxu0 %v1149_v30  ;;  %v920_v22 = vld [vmem:[%s1275_s4 + $0x94] sm:$0xf0] }
  0x2d   : > { %1158 = vmatpush.bf16.msrb.mxu2 %v1149_v30  ;;  %724 = vmatmul.bf16.vlgmr.msra.gmra.mxu3 %v863_v39  ;;  %v923_v23 = vor.u32 %v1106_v21, %v920_v22  ;;  %v895_v30 = vor.u32 %v1100_v24, %v892_v25 }
  0x2e   : > { %695 = vmatmul.bf16.vlgmr.msra.gmra.mxu2 %v859_v33  ;;  %v1105_v33 = vld [vmem:[%s1275_s4 + $0x7c] sm:$0xf]  ;;  %s847_s4 = sshll.u32 %s1429_s30, 3 }
  0x2f   : > { %v915_v35 = vor.u32 %v1105_v33, %v912_v34  ;;  %s1394_s28 = scalar_lea.vmem %s1427_s3, %s847_s4 }
  0x30   : > { %659 = vmatpush.bf16.msrb.mxu1 %v1124_v37  ;;  %746 = vmatpush.bf16.msrb.mxu0 %v1148_v38 }
  0x31   : > { %1159 = vmatpush.bf16.msrb.mxu2 %v1148_v38 }
  0x34   : > { %660 = vmatpush.bf16.msrb.mxu1 %v1123_v40  ;;  %747 = vmatpush.bf16.msrb.mxu0 %v1147_v41 }
  0x35   : > { %1160 = vmatpush.bf16.msrb.mxu2 %v1147_v41 }
  0x38   : > { %661 = vmatpush.bf16.msrb.mxu1 %v1122_v42  ;;  %748 = vmatpush.bf16.msrb.mxu0 %v1146_v43 }
  0x39   : > { %1161 = vmatpush.bf16.msrb.mxu2 %v1146_v43 }
  0x3b   : > { %652 = vmatmul.bf16.gmra.mxu1 %v911_v52  ;;  %642 = vmatmul.bf16.gmra.mxu0 %v871_v53 }
  0x3c   : > { %662 = vmatpush.bf16.msrb.mxu1 %v1121_v48  ;;  %749 = vmatpush.bf16.msrb.mxu0 %v1145_v51  ;;  %v1387_v48 = vld [vmem:[%s1426_s2] ss:$0 sm:$0xff] }
  0x3d   : > { %1162 = vmatpush.bf16.msrb.mxu2 %v1145_v51  ;;  %729 = vmatmul.bf16.gmra.mxu3 %v883_v59 }
  0x3e   : > { %700 = vmatmul.bf16.gmra.mxu2 %v879_v54 }
  0x40   : > { %663 = vmatpush.bf16.msrb.mxu1 %v1120_v57  ;;  %750 = vmatpush.bf16.msrb.mxu0 %v1144_v58 }
  0x41   : > { %1163 = vmatpush.bf16.msrb.mxu2 %v1144_v58 }
  0x44   : > { %664 = vmatpush.bf16.msrb.mxu1 %v1119_v60  ;;  %751 = vmatpush.bf16.msrb.mxu0 %v1143_v61 }
  0x45   : > { %1164 = vmatpush.bf16.msrb.mxu2 %v1143_v61 }
  0x48   : > { %665 = vmatpush.bf16.msrb.mxu1 %v1118_v62  ;;  %752 = vmatpush.bf16.msrb.mxu0 %v1142_v63 }
  0x49   : > { %1165 = vmatpush.bf16.msrb.mxu2 %v1142_v63 }
  0x4b   : > { %666 = vmatmul.bf16.vlgmr.msrb.gmra.mxu1 %v855_v6  ;;  %753 = vmatmul.bf16.vlgmr.msrb.gmra.mxu0 %v867_v7 }
  0x4d   : > { %734 = vmatmul.bf16.gmra.mxu3 %v903_v11 }
  0x4e   : > { %705 = vmatmul.bf16.gmra.mxu2 %v899_v8 }
  0x5b   : > { %671 = vmatmul.bf16.gmra.mxu1 %v875_v18  ;;  %758 = vmatmul.bf16.gmra.mxu0 %v887_v19 }
  0x5d   : > { %739 = vmatmul.bf16.gmra.mxu3 %v923_v23 }
  0x5e   : > { %710 = vmatmul.bf16.gmra.mxu2 %v919_v20 }
  0x6b   : > { %676 = vmatmul.bf16.gmra.mxu1 %v895_v30  ;;  %763 = vmatmul.bf16.gmra.mxu0 %v907_v31 }
  0x6e   : > { %768 = vmatmul.bf16.vlgmr.msrb.gmra.mxu2 %v927_v32 }
  0x7b   : > { %681 = vmatmul.bf16.gmra.mxu1 %v915_v35 }
  0xa8   : > { %v648_v36 = vpop.f32.mrf.mxu1  ;;  %v638_v37 = vpop.f32.mrf.mxu0 }
  0xa9   : > { %v639_v49 = vadd.f32 %v1387_v48, %v638_v37  ;;  %v649_v19 = vadd.f32 %v1387_v48, %v648_v36 }
  0xb0   : > { %v650_v39 = vpop.f32.mrf.mxu1  ;;  %v640_v40 = vpop.f32.mrf.mxu0 }
  0xb1   : > { %v696_v38 = vpop.f32.mrf.mxu2  ;;  %v725_v44 = vpop.f32.mrf.mxu3  ;;  %v641_v57 = vadd.f32 %v1387_v48, %v640_v40  ;;  %v651_v27 = vadd.f32 %v1387_v48, %v650_v39 }
  0xb8   : > { %v1380_v42 = vpop.f32.mrf.mxu1  ;;  %v643_v43 = vpop.f32.mrf.mxu0 }
  0xb9   : > { %v698_v41 = vpop.f32.mrf.mxu2  ;;  %v727_v50 = vpop.f32.mrf.mxu3  ;;  %v644_v2 = vadd.f32 %v1387_v48, %v643_v43  ;;  %v654_v36 = vadd.f32 %v1387_v48, %v1380_v42 }
  0xc0   : > { %v1382_v46 = vpop.f32.mrf.mxu1  ;;  %v645_v47 = vpop.f32.mrf.mxu0 }
  0xc1   : > { %v701_v45 = vpop.f32.mrf.mxu2  ;;  %v730_v62 = vpop.f32.mrf.mxu3  ;;  %v646_v11 = vadd.f32 %v1387_v48, %v645_v47 }
  0xc8   : > { %v667_v51 = vpop.f32.mrf.mxu1  ;;  %v754_v52 = vpop.f32.mrf.mxu0 }
  0xc9   : > { %v668_v53 = vadd.f32 %v667_v51, %v639_v49  ;;  %v703_v54 = vpop.f32.mrf.mxu2  ;;  %v732_v8 = vpop.f32.mrf.mxu3 }
  0xcb   : > { %v697_v55 = vadd.f32 %v696_v38, %v668_v53 }
  0xcd   : > { %v726_v56 = vadd.f32 %v725_v44, %v697_v55 }
  0xcf   : > { %v755_v58 = vadd.f32 %v754_v52, %v726_v56 }
  0xd0   : > { %v669_v59 = vpop.f32.mrf.mxu1  ;;  %v756_v60 = vpop.f32.mrf.mxu0 }
  0xd1   : > { %775 = vst.msk [vmem:[%s1394_s28] sm:$0xff] %vm774_vm0, %v755_v58  ;;  %v670_v61 = vadd.f32 %v669_v59, %v641_v57  ;;  %v706_v0 = vpop.f32.mrf.mxu2  ;;  %v735_v18 = vpop.f32.mrf.mxu3 }
  0xd3   : > { %v699_v63 = vadd.f32 %v698_v41, %v670_v61 }
  0xd5   : > { %v728_v1 = vadd.f32 %v727_v50, %v699_v63 }
  0xd7   : > { %v757_v3 = vadd.f32 %v756_v60, %v728_v1 }
  0xd8   : > { %v672_v4 = vpop.f32.mrf.mxu1  ;;  %v759_v5 = vpop.f32.mrf.mxu0 }
  0xd9   : > { %776 = vst.msk [vmem:[%s1394_s28 + $0x8] sm:$0xff] %vm774_vm0, %v757_v3  ;;  %v673_v6 = vadd.f32 %v672_v4, %v644_v2  ;;  %v708_v10 = vpop.f32.mrf.mxu2  ;;  %v737_v29 = vpop.f32.mrf.mxu3 }
  0xdb   : > { %v702_v7 = vadd.f32 %v701_v45, %v673_v6  ;;  %v656_v45 = vadd.f32 %v1387_v48, %v1382_v46 }
  0xdd   : > { %v731_v9 = vadd.f32 %v730_v62, %v702_v7 }
  0xdf   : > { %v760_v12 = vadd.f32 %v759_v5, %v731_v9 }
  0xe0   : > { %v674_v13 = vpop.f32.mrf.mxu1  ;;  %v761_v14 = vpop.f32.mrf.mxu0 }
  0xe1   : > { %777 = vst.msk [vmem:[%s1394_s28 + $0x10] sm:$0xff] %vm774_vm0, %v760_v12  ;;  %v675_v15 = vadd.f32 %v674_v13, %v646_v11  ;;  %v711_v21 = vpop.f32.mrf.mxu2  ;;  %v740_v40 = vpop.f32.mrf.mxu3 }
  0xe3   : > { %v704_v16 = vadd.f32 %v703_v54, %v675_v15 }
  0xe5   : > { %v733_v17 = vadd.f32 %v732_v8, %v704_v16 }
  0xe7   : > { %v762_v20 = vadd.f32 %v761_v14, %v733_v17 }
  0xe8   : > { %v677_v22 = vpop.f32.mrf.mxu1  ;;  %v764_v24 = vpop.f32.mrf.mxu0 }
  0xe9   : > { %778 = vst.msk [vmem:[%s1394_s28 + $0x18] sm:$0xff] %vm774_vm0, %v762_v20  ;;  %v678_v23 = vadd.f32 %v677_v22, %v649_v19  ;;  %v713_v32 = vpop.f32.mrf.mxu2  ;;  %v742_v42 = vpop.f32.mrf.mxu3 }
  0xeb   : > { %v707_v25 = vadd.f32 %v706_v0, %v678_v23 }
  0xed   : > { %v736_v26 = vadd.f32 %v735_v18, %v707_v25 }
  0xef   : > { %v765_v28 = vadd.f32 %v764_v24, %v736_v26 }
  0xf0   : > { %v679_v30 = vpop.f32.mrf.mxu1  ;;  %v766_v34 = vpop.f32.mrf.mxu0 }
  0xf1   : > { %779 = vst.msk [vmem:[%s1394_s28 + $0x20] sm:$0xff] %vm774_vm0, %v765_v28  ;;  %v680_v31 = vadd.f32 %v679_v30, %v651_v27  ;;  %v769_v43 = vpop.f32.mrf.mxu2 }
  0xf3   : > { %v709_v33 = vadd.f32 %v708_v10, %v680_v31 }
  0xf5   : > { %v738_v35 = vadd.f32 %v737_v29, %v709_v33 }
  0xf7   : > { %v767_v37 = vadd.f32 %v766_v34, %v738_v35 }
  0xf8   : > { %v682_v38 = vpop.f32.mrf.mxu1 }
  0xf9   : > { %780 = vst.msk [vmem:[%s1394_s28 + $0x28] sm:$0xff] %vm774_vm0, %v767_v37  ;;  %v683_v39 = vadd.f32 %v682_v38, %v654_v36  ;;  %v771_v53 = vpop.f32.mrf.mxu2 }
  0xfb   : > { %v712_v41 = vadd.f32 %v711_v21, %v683_v39 }
  0xfd   : > { %v741_v44 = vadd.f32 %v740_v40, %v712_v41 }
  0xff   : > { %v770_v47 = vadd.f32 %v769_v43, %v741_v44 }
 0x100   : > { %v684_v49 = vpop.f32.mrf.mxu1 }
 0x101   : > { %781 = vst.msk [vmem:[%s1394_s28 + $0x30] sm:$0xff] %vm774_vm0, %v770_v47  ;;  %v685_v50 = vadd.f32 %v684_v49, %v656_v45 }
 0x103   : > { %v714_v51 = vadd.f32 %v713_v32, %v685_v50 }
 0x105   : > { %v743_v52 = vadd.f32 %v742_v42, %v714_v51 }
 0x107   : > { %v772_v54 = vadd.f32 %v771_v53, %v743_v52 }
 0x109   : > { %782 = vst.msk [vmem:[%s1394_s28 + $0x38] sm:$0xff] %vm774_vm0, %v772_v54 }
 0x10a PF: > { %s13_s12 = sadd.s32 1, %s1182_s12  }
 0x10b   : > { %p10_p4 = scmp.ge.s32.totalorder %s13_s12, 4  }
 0x10d   :  { %12 = sbr.rel (!%p10_p4) target bundleno = 1 (0x1), region = 62 }

// kernel: edbhead_forward.16
= control target key start
LH: loop header
LB: loop body
LE: loop exit
PB: predicated region body
PF: predicated region fallthrough
CT: control target
= control target key end

     0   :  { %s1012_s12 = smov 0   ;;  %s1194_s0 = inlined_call_operand.vmem [shape: bf16[128,512], index: 0, kind: input, shape index: {}]   ;;  %s1195_s1 = inlined_call_operand.vmem [shape: bf16[512,64], index: 1, kind: input, shape index: {}]   ;;  %s1196_s2 = inlined_call_operand.vmem [shape: f32[1,64], index: 2, kind: input, shape index: {}]   ;;  %s1197_s3 = inlined_call_operand.vmem [shape: f32[128,64], index: 3, kind: output, shape index: {}]  }
   0x1 LB: > { %s722_s13 = sadd.s32 4294967295, %s990_s12   ;;  %p726_p0 = scmp.ge.s32.totalorder %s990_s12, 1  ;;  %s990_s12 = sphi %s1012_s12, %s13_s12  }
   0x2   : > { %p139_p1 = scmp.lt.s32.totalorder %s990_s12, 3 }
   0x4   : > { %p140_p2 = pnand %p726_p0, %p139_p1 }
   0x5   : > { %s727_s11 = sshll.u32 (!%p140_p2), %s722_s13, 3 }
   0x6   : > { %143 = sbr.rel (%p140_p2) target bundleno = 240 (0xf0), region = 32  ;;  %p165_p3 = scmp.lt.s32.totalorder (!%p140_p2), %s727_s11, 15 }
   0xb   : > { %v950_v0 = vld [vmem:[%s1195_s1 + $0x38] sm:$0xff]  ;;  %v949_v4 = vld [vmem:[%s1195_s1 + $0x30] sm:$0xff]  ;;  %v948_v8 = vld [vmem:[%s1195_s1 + $0x28] sm:$0xff]  ;;  %s1199_s11 = smov (!%p165_p3, %s727_s11), 15  ;;  %vm657_vm0 = vcmask 523264  }
   0xc   : > { %v958_v1 = vld [vmem:[%s1195_s1 + $0x78] sm:$0xff]  ;;  %533 = vmatpush.bf16.msra.mxu0 %v950_v0  ;;  %v957_v5 = vld [vmem:[%s1195_s1 + $0x70] sm:$0xff]  ;;  %v956_v9 = vld [vmem:[%s1195_s1 + $0x68] sm:$0xff]  ;;  %s926_s10 = sshll.u32 %s1199_s11, 4  ;;  %s731_s7 = sshll.u32 %s1199_s11, 3 }
   0xd   : > { %v966_v2 = vld [vmem:[%s1195_s1 + $0xb8] sm:$0xff]  ;;  %562 = vmatpush.bf16.msra.mxu1 %v958_v1  ;;  %v965_v6 = vld [vmem:[%s1195_s1 + $0xb0] sm:$0xff]  ;;  %v964_v10 = vld [vmem:[%s1195_s1 + $0xa8] sm:$0xff]  ;;  %s1104_s20 = scalar_lea.vmem %s1194_s0, %s926_s10  ;;  %s1167_s10 = scalar_lea.vmem %s1197_s3, %s731_s7 }
   0xe   : > { %v974_v3 = vld [vmem:[%s1195_s1 + $0xf8] sm:$0xff]  ;;  %591 = vmatpush.bf16.msra.mxu2 %v966_v2  ;;  %v973_v7 = vld [vmem:[%s1195_s1 + $0xf0] sm:$0xff]  ;;  %v972_v11 = vld [vmem:[%s1195_s1 + $0xe8] sm:$0xff] }
   0xf   : > { %620 = vmatpush.bf16.msra.mxu3 %v974_v3  ;;  %v947_v12 = vld [vmem:[%s1195_s1 + $0x20] sm:$0xff]  ;;  %v946_v16 = vld [vmem:[%s1195_s1 + $0x18] sm:$0xff]  ;;  %v945_v20 = vld [vmem:[%s1195_s1 + $0x10] sm:$0xff] }
  0x10   : > { %534 = vmatpush.bf16.msra.mxu0 %v949_v4  ;;  %v955_v13 = vld [vmem:[%s1195_s1 + $0x60] sm:$0xff]  ;;  %v954_v17 = vld [vmem:[%s1195_s1 + $0x58] sm:$0xff]  ;;  %v953_v21 = vld [vmem:[%s1195_s1 + $0x50] sm:$0xff] }
  0x11   : > { %563 = vmatpush.bf16.msra.mxu1 %v957_v5  ;;  %v963_v14 = vld [vmem:[%s1195_s1 + $0xa0] sm:$0xff]  ;;  %v962_v18 = vld [vmem:[%s1195_s1 + $0x98] sm:$0xff]  ;;  %v961_v22 = vld [vmem:[%s1195_s1 + $0x90] sm:$0xff] }
  0x12   : > { %592 = vmatpush.bf16.msra.mxu2 %v965_v6  ;;  %v971_v15 = vld [vmem:[%s1195_s1 + $0xe0] sm:$0xff]  ;;  %v970_v19 = vld [vmem:[%s1195_s1 + $0xd8] sm:$0xff]  ;;  %v969_v23 = vld [vmem:[%s1195_s1 + $0xd0] sm:$0xff] }
  0x13   : > { %621 = vmatpush.bf16.msra.mxu3 %v973_v7  ;;  %v944_v24 = vld [vmem:[%s1195_s1 + $0x8] sm:$0xff]  ;;  %v943_v28 = vld [vmem:[%s1195_s1] sm:$0xff]  ;;  %v929_v33 = vld [vmem:[%s1104_s20 + $0xc] sm:$0xf0] }
  0x14   : > { %535 = vmatpush.bf16.msra.mxu0 %v948_v8  ;;  %v952_v25 = vld [vmem:[%s1195_s1 + $0x48] sm:$0xff]  ;;  %v951_v29 = vld [vmem:[%s1195_s1 + $0x40] sm:$0xff]  ;;  %v736_v35 = vld [vmem:[%s1104_s20 + $0x10] sm:$0xf0] }
  0x15   : > { %564 = vmatpush.bf16.msra.mxu1 %v956_v9  ;;  %v960_v26 = vld [vmem:[%s1195_s1 + $0x88] sm:$0xff]  ;;  %v959_v30 = vld [vmem:[%s1195_s1 + $0x80] sm:$0xff]  ;;  %v930_v37 = vld [vmem:[%s1104_s20 + $0x14] sm:$0xf0] }
  0x16   : > { %593 = vmatpush.bf16.msra.mxu2 %v964_v10  ;;  %v968_v27 = vld [vmem:[%s1195_s1 + $0xc8] sm:$0xff]  ;;  %v967_v31 = vld [vmem:[%s1195_s1 + $0xc0] sm:$0xff]  ;;  %v744_v39 = vld [vmem:[%s1104_s20 + $0x18] sm:$0xf0] }
  0x17   : > { %622 = vmatpush.bf16.msra.mxu3 %v972_v11  ;;  %v734_v32 = vld [vmem:[%s1104_s20] sm:$0xf]  ;;  %v927_v34 = vld [vmem:[%s1104_s20 + $0x4] sm:$0xf]  ;;  %v742_v36 = vld [vmem:[%s1104_s20 + $0x8] sm:$0xf] }
  0x18   : > { %536 = vmatpush.bf16.msra.mxu0 %v947_v12  ;;  %v928_v38 = vld [vmem:[%s1104_s20 + $0xc] sm:$0xf]  ;;  %v735_v40 = vor.u32 %v929_v33, %v734_v32  ;;  %v739_v41 = vor.u32 %v927_v34, %v736_v35  ;;  %v743_v42 = vor.u32 %v930_v37, %v742_v36  ;;  %v750_v44 = vld [vmem:[%s1104_s20 + $0x20] sm:$0xf]  ;;  %v933_v45 = vld [vmem:[%s1104_s20 + $0x2c] sm:$0xf0] }
  0x19   : > { %565 = vmatpush.bf16.msra.mxu1 %v955_v13  ;;  %v747_v43 = vor.u32 %v928_v38, %v744_v39  ;;  %v931_v46 = vld [vmem:[%s1104_s20 + $0x24] sm:$0xf]  ;;  %v752_v47 = vld [vmem:[%s1104_s20 + $0x30] sm:$0xf0]  ;;  %v758_v48 = vld [vmem:[%s1104_s20 + $0x28] sm:$0xf]  ;;  %v751_v52 = vor.u32 %v933_v45, %v750_v44 }
  0x1a   : > { %594 = vmatpush.bf16.msra.mxu2 %v963_v14  ;;  %v934_v49 = vld [vmem:[%s1104_s20 + $0x34] sm:$0xf0]  ;;  %v932_v50 = vld [vmem:[%s1104_s20 + $0x2c] sm:$0xf]  ;;  %v760_v51 = vld [vmem:[%s1104_s20 + $0x38] sm:$0xf0]  ;;  %v755_v53 = vor.u32 %v931_v46, %v752_v47 }
  0x1b   : > { %623 = vmatpush.bf16.msra.mxu3 %v971_v15  ;;  %v759_v54 = vor.u32 %v934_v49, %v758_v48  ;;  %v763_v55 = vor.u32 %v932_v50, %v760_v51  ;;  %v766_v56 = vld [vmem:[%s1104_s20 + $0x40] sm:$0xf]  ;;  %v937_v57 = vld [vmem:[%s1104_s20 + $0x4c] sm:$0xf0]  ;;  %v935_v58 = vld [vmem:[%s1104_s20 + $0x44] sm:$0xf] }
  0x1c   : > { %537 = vmatpush.bf16.msra.mxu0 %v946_v16  ;;  %v768_v59 = vld [vmem:[%s1104_s20 + $0x50] sm:$0xf0]  ;;  %v774_v60 = vld [vmem:[%s1104_s20 + $0x48] sm:$0xf]  ;;  %v938_v61 = vld [vmem:[%s1104_s20 + $0x54] sm:$0xf0]  ;;  %v767_v0 = vor.u32 %v937_v57, %v766_v56 }
  0x1d   : > { %566 = vmatpush.bf16.msra.mxu1 %v954_v17  ;;  %v936_v62 = vld [vmem:[%s1104_s20 + $0x4c] sm:$0xf]  ;;  %v776_v63 = vld [vmem:[%s1104_s20 + $0x58] sm:$0xf0]  ;;  %v771_v1 = vor.u32 %v935_v58, %v768_v59  ;;  %v775_v2 = vor.u32 %v938_v61, %v774_v60  ;;  %v782_v4 = vld [vmem:[%s1104_s20 + $0x60] sm:$0xf] }
  0x1e   : > { %595 = vmatpush.bf16.msra.mxu2 %v962_v18  ;;  %v779_v3 = vor.u32 %v936_v62, %v776_v63  ;;  %v941_v5 = vld [vmem:[%s1104_s20 + $0x6c] sm:$0xf0]  ;;  %v939_v6 = vld [vmem:[%s1104_s20 + $0x64] sm:$0xf]  ;;  %v784_v7 = vld [vmem:[%s1104_s20 + $0x70] sm:$0xf0] }
  0x1f   : > { %624 = vmatpush.bf16.msra.mxu3 %v970_v19  ;;  %v790_v8 = vld [vmem:[%s1104_s20 + $0x68] sm:$0xf]  ;;  %v942_v9 = vld [vmem:[%s1104_s20 + $0x74] sm:$0xf0]  ;;  %v940_v10 = vld [vmem:[%s1104_s20 + $0x6c] sm:$0xf]  ;;  %v783_v12 = vor.u32 %v941_v5, %v782_v4  ;;  %v787_v13 = vor.u32 %v939_v6, %v784_v7 }
  0x20   : > { %538 = vmatpush.bf16.msra.mxu0 %v945_v20  ;;  %v792_v11 = vld [vmem:[%s1104_s20 + $0x78] sm:$0xf0]  ;;  %v791_v14 = vor.u32 %v942_v9, %v790_v8  ;;  %v1159_v16 = vld [vmem:[%s1196_s2] ss:$0 sm:$0xff] }
  0x21   : > { %567 = vmatpush.bf16.msra.mxu1 %v953_v21  ;;  %v795_v15 = vor.u32 %v940_v10, %v792_v11 }
  0x22   : > { %596 = vmatpush.bf16.msra.mxu2 %v961_v22 }
  0x23   : > { %625 = vmatpush.bf16.msra.mxu3 %v969_v23 }
  0x24   : > { %539 = vmatpush.bf16.msra.mxu0 %v944_v24 }
  0x25   : > { %568 = vmatpush.bf16.msra.mxu1 %v952_v25 }
  0x26   : > { %597 = vmatpush.bf16.msra.mxu2 %v960_v26 }
  0x27   : > { %626 = vmatpush.bf16.msra.mxu3 %v968_v27 }
  0x28   : > { %540 = vmatpush.bf16.msra.mxu0 %v943_v28 }
  0x29   : > { %569 = vmatpush.bf16.msra.mxu1 %v951_v29 }
  0x2a   : > { %598 = vmatpush.bf16.msra.mxu2 %v959_v30 }
  0x2b   : > { %627 = vmatpush.bf16.msra.mxu3 %v967_v31  ;;  %541 = vmatmul.bf16.vlgmr.msra.gmra.mxu0 %v735_v40 }
  0x2c   : > { %570 = vmatmul.bf16.vlgmr.msra.gmra.mxu1 %v739_v41 }
  0x2d   : > { %599 = vmatmul.bf16.vlgmr.msra.gmra.mxu2 %v743_v42 }
  0x2e   : > { %628 = vmatmul.bf16.vlgmr.msra.gmra.mxu3 %v747_v43 }
  0x3b   : > { %546 = vmatmul.bf16.gmra.mxu0 %v751_v52 }
  0x3c   : > { %575 = vmatmul.bf16.gmra.mxu1 %v755_v53 }
  0x3d   : > { %604 = vmatmul.bf16.gmra.mxu2 %v759_v54 }
  0x3e   : > { %633 = vmatmul.bf16.gmra.mxu3 %v763_v55 }
  0x4b   : > { %551 = vmatmul.bf16.gmra.mxu0 %v767_v0 }
  0x4c   : > { %580 = vmatmul.bf16.gmra.mxu1 %v771_v1 }
  0x4d   : > { %609 = vmatmul.bf16.gmra.mxu2 %v775_v2 }
  0x4e   : > { %638 = vmatmul.bf16.gmra.mxu3 %v779_v3 }
  0x5b   : > { %556 = vmatmul.bf16.gmra.mxu0 %v783_v12 }
  0x5c   : > { %585 = vmatmul.bf16.gmra.mxu1 %v787_v13 }
  0x5d   : > { %614 = vmatmul.bf16.gmra.mxu2 %v791_v14 }
  0x5e   : > { %643 = vmatmul.bf16.gmra.mxu3 %v795_v15 }
  0xa8   : > { %v542_v17 = vpop.f32.mrf.mxu0 }
  0xa9   : > { %v571_v18 = vpop.f32.mrf.mxu1  ;;  %v543_v19 = vadd.f32 %v1159_v16, %v542_v17 }
  0xab   : > { %v572_v20 = vadd.f32 %v571_v18, %v543_v19 }
  0xb0   : > { %v600_v21 = vpop.f32.mrf.mxu2  ;;  %v544_v24 = vpop.f32.mrf.mxu0 }
  0xb1   : > { %v629_v22 = vpop.f32.mrf.mxu3  ;;  %v601_v23 = vadd.f32 %v600_v21, %v572_v20  ;;  %v573_v25 = vpop.f32.mrf.mxu1  ;;  %v545_v27 = vadd.f32 %v1159_v16, %v544_v24 }
  0xb3   : > { %v630_v26 = vadd.f32 %v629_v22, %v601_v23  ;;  %v574_v29 = vadd.f32 %v573_v25, %v545_v27 }
  0xb5   : > { %v649_v28 = vmax.f32 %v630_v26, 0.0 }
  0xb7   : > { %658 = vst.msk [vmem:[%s1167_s10] sm:$0xff] %vm657_vm0, %v649_v28 }
  0xb8   : > { %v602_v30 = vpop.f32.mrf.mxu2  ;;  %v547_v33 = vpop.f32.mrf.mxu0 }
  0xb9   : > { %v631_v31 = vpop.f32.mrf.mxu3  ;;  %v603_v32 = vadd.f32 %v602_v30, %v574_v29  ;;  %v576_v34 = vpop.f32.mrf.mxu1  ;;  %v548_v35 = vadd.f32 %v1159_v16, %v547_v33 }
  0xbb   : > { %v632_v36 = vadd.f32 %v631_v31, %v603_v32  ;;  %v577_v38 = vadd.f32 %v576_v34, %v548_v35 }
  0xbd   : > { %v650_v37 = vmax.f32 %v632_v36, 0.0 }
  0xbf   : > { %659 = vst.msk [vmem:[%s1167_s10 + $0x8] sm:$0xff] %vm657_vm0, %v650_v37 }
  0xc0   : > { %v605_v39 = vpop.f32.mrf.mxu2  ;;  %v549_v42 = vpop.f32.mrf.mxu0 }
  0xc1   : > { %v634_v40 = vpop.f32.mrf.mxu3  ;;  %v606_v41 = vadd.f32 %v605_v39, %v577_v38  ;;  %v578_v43 = vpop.f32.mrf.mxu1  ;;  %v550_v45 = vadd.f32 %v1159_v16, %v549_v42 }
  0xc3   : > { %v635_v44 = vadd.f32 %v634_v40, %v606_v41  ;;  %v579_v47 = vadd.f32 %v578_v43, %v550_v45 }
  0xc5   : > { %v651_v46 = vmax.f32 %v635_v44, 0.0 }
  0xc7   : > { %660 = vst.msk [vmem:[%s1167_s10 + $0x10] sm:$0xff] %vm657_vm0, %v651_v46 }
  0xc8   : > { %v607_v48 = vpop.f32.mrf.mxu2  ;;  %v552_v51 = vpop.f32.mrf.mxu0 }
  0xc9   : > { %v636_v49 = vpop.f32.mrf.mxu3  ;;  %v608_v50 = vadd.f32 %v607_v48, %v579_v47  ;;  %v581_v52 = vpop.f32.mrf.mxu1  ;;  %v553_v53 = vadd.f32 %v1159_v16, %v552_v51 }
  0xcb   : > { %v637_v54 = vadd.f32 %v636_v49, %v608_v50  ;;  %v582_v56 = vadd.f32 %v581_v52, %v553_v53 }
  0xcd   : > { %v652_v55 = vmax.f32 %v637_v54, 0.0 }
  0xcf   : > { %661 = vst.msk [vmem:[%s1167_s10 + $0x18] sm:$0xff] %vm657_vm0, %v652_v55 }
  0xd0   : > { %v610_v57 = vpop.f32.mrf.mxu2  ;;  %v554_v60 = vpop.f32.mrf.mxu0 }
  0xd1   : > { %v639_v58 = vpop.f32.mrf.mxu3  ;;  %v611_v59 = vadd.f32 %v610_v57, %v582_v56  ;;  %v583_v61 = vpop.f32.mrf.mxu1  ;;  %v555_v63 = vadd.f32 %v1159_v16, %v554_v60 }
  0xd3   : > { %v640_v62 = vadd.f32 %v639_v58, %v611_v59  ;;  %v584_v1 = vadd.f32 %v583_v61, %v555_v63 }
  0xd5   : > { %v653_v0 = vmax.f32 %v640_v62, 0.0 }
  0xd7   : > { %662 = vst.msk [vmem:[%s1167_s10 + $0x20] sm:$0xff] %vm657_vm0, %v653_v0 }
  0xd8   : > { %v612_v2 = vpop.f32.mrf.mxu2  ;;  %v557_v5 = vpop.f32.mrf.mxu0 }
  0xd9   : > { %v641_v3 = vpop.f32.mrf.mxu3  ;;  %v613_v4 = vadd.f32 %v612_v2, %v584_v1  ;;  %v558_v6 = vadd.f32 %v1159_v16, %v557_v5  ;;  %v586_v8 = vpop.f32.mrf.mxu1 }
  0xdb   : > { %v642_v7 = vadd.f32 %v641_v3, %v613_v4  ;;  %v587_v10 = vadd.f32 %v586_v8, %v558_v6 }
  0xdd   : > { %v654_v9 = vmax.f32 %v642_v7, 0.0 }
  0xdf   : > { %663 = vst.msk [vmem:[%s1167_s10 + $0x28] sm:$0xff] %vm657_vm0, %v654_v9 }
  0xe0   : > { %v615_v11 = vpop.f32.mrf.mxu2  ;;  %v559_v14 = vpop.f32.mrf.mxu0 }
  0xe1   : > { %v644_v12 = vpop.f32.mrf.mxu3  ;;  %v616_v13 = vadd.f32 %v615_v11, %v587_v10  ;;  %v560_v17 = vadd.f32 %v1159_v16, %v559_v14  ;;  %v588_v19 = vpop.f32.mrf.mxu1 }
  0xe3   : > { %v645_v15 = vadd.f32 %v644_v12, %v616_v13  ;;  %v589_v20 = vadd.f32 %v588_v19, %v560_v17 }
  0xe5   : > { %v655_v18 = vmax.f32 %v645_v15, 0.0 }
  0xe7   : > { %664 = vst.msk [vmem:[%s1167_s10 + $0x30] sm:$0xff] %vm657_vm0, %v655_v18 }
  0xe8   : > { %v617_v21 = vpop.f32.mrf.mxu2 }
  0xe9   : > { %v618_v22 = vadd.f32 %v617_v21, %v589_v20  ;;  %v646_v23 = vpop.f32.mrf.mxu3 }
  0xeb   : > { %v647_v24 = vadd.f32 %v646_v23, %v618_v22 }
  0xed   : > { %v656_v25 = vmax.f32 %v647_v24, 0.0 }
  0xef   : > { %665 = vst.msk [vmem:[%s1167_s10 + $0x38] sm:$0xff] %vm657_vm0, %v656_v25 }
  0xf0 PF: > { %s13_s12 = sadd.s32 1, %s990_s12  }
  0xf1   : > { %p10_p4 = scmp.ge.s32.totalorder %s13_s12, 4  }
  0xf3   :  { %12 = sbr.rel (!%p10_p4) target bundleno = 1 (0x1), region = 62 }

// kernel: edbhead_forward.18
= control target key start
LH: loop header
LB: loop body
LE: loop exit
PB: predicated region body
PF: predicated region fallthrough
CT: control target
= control target key end

     0   :  { %s1438_s12 = smov 0   ;;  %s1959_s0 = inlined_call_operand.vmem [shape: bf16[128,512], index: 0, kind: input, shape index: {}]   ;;  %s1960_s1 = inlined_call_operand.vmem [shape: bf16[512,256], index: 1, kind: input, shape index: {}]   ;;  %s1961_s2 = inlined_call_operand.vmem [shape: f32[1,256], index: 2, kind: input, shape index: {}]   ;;  %s1962_s3 = inlined_call_operand.vmem [shape: f32[128,256], index: 3, kind: output, shape index: {}]  }
   0x1 LB: > { %s987_s13 = sadd.s32 4294967295, %s1416_s12   ;;  %p991_p0 = scmp.ge.s32.totalorder %s1416_s12, 1  ;;  %s1416_s12 = sphi %s1438_s12, %s13_s12  }
   0x2   : > { %p139_p1 = scmp.lt.s32.totalorder %s1416_s12, 3 }
   0x4   : > { %p140_p2 = pnand %p991_p0, %p139_p1 }
   0x5   : > { %s992_s22 = sshll.u32 (!%p140_p2), %s987_s13, 3 }
   0x6   : > { %143 = sbr.rel (%p140_p2) target bundleno = 306 (0x132), region = 32  ;;  %p166_p3 = scmp.lt.s32.totalorder (!%p140_p2), %s992_s22, 15 }
   0xb   : > { %v1120_v0 = vld [vmem:[%s1960_s1 + $0x70] sm:$0xf]  ;;  %v1353_v1 = vld [vmem:[%s1960_s1 + $0x74] sm:$0xf0]  ;;  %v1112_v11 = vld [vmem:[%s1960_s1 + $0x60] sm:$0xf] }
   0xc   : > { %v1184_v2 = vld [vmem:[%s1960_s1 + $0xf0] sm:$0xf]  ;;  %v1121_v3 = vor.u32 %v1353_v1, %v1120_v0  ;;  %v1369_v4 = vld [vmem:[%s1960_s1 + $0xf4] sm:$0xf0]  ;;  %v1351_v13 = vld [vmem:[%s1960_s1 + $0x64] sm:$0xf0] }
   0xd   : > { %v1248_v5 = vld [vmem:[%s1960_s1 + $0x170] sm:$0xf]  ;;  %v1385_v6 = vld [vmem:[%s1960_s1 + $0x174] sm:$0xf0]  ;;  %v1185_v7 = vor.u32 %v1369_v4, %v1184_v2  ;;  %v1176_v14 = vld [vmem:[%s1960_s1 + $0xe0] sm:$0xf]  ;;  %v1113_v16 = vor.u32 %v1351_v13, %v1112_v11 }
   0xe   : > { %v1249_v8 = vor.u32 %v1385_v6, %v1248_v5  ;;  %v1312_v9 = vld [vmem:[%s1960_s1 + $0x1f0] sm:$0xf]  ;;  %v1401_v10 = vld [vmem:[%s1960_s1 + $0x1f4] sm:$0xf0]  ;;  %665 = vmatpush.bf16.msra.mxu0 %v1121_v3  ;;  %v1367_v15 = vld [vmem:[%s1960_s1 + $0xe4] sm:$0xf0] }
   0xf   : > { %v1313_v12 = vor.u32 %v1401_v10, %v1312_v9  ;;  %694 = vmatpush.bf16.msra.mxu1 %v1185_v7  ;;  %v1177_v17 = vor.u32 %v1367_v15, %v1176_v14  ;;  %v1240_v18 = vld [vmem:[%s1960_s1 + $0x160] sm:$0xf]  ;;  %v1383_v19 = vld [vmem:[%s1960_s1 + $0x164] sm:$0xf0]  ;;  %v1104_v23 = vld [vmem:[%s1960_s1 + $0x50] sm:$0xf] }
  0x10   : > { %723 = vmatpush.bf16.msra.mxu2 %v1249_v8  ;;  %v1304_v20 = vld [vmem:[%s1960_s1 + $0x1e0] sm:$0xf]  ;;  %v1241_v21 = vor.u32 %v1383_v19, %v1240_v18  ;;  %v1399_v22 = vld [vmem:[%s1960_s1 + $0x1e4] sm:$0xf0]  ;;  %v1349_v24 = vld [vmem:[%s1960_s1 + $0x54] sm:$0xf0] }
  0x11   : > { %752 = vmatpush.bf16.msra.mxu3 %v1313_v12  ;;  %v1305_v25 = vor.u32 %v1399_v22, %v1304_v20  ;;  %v1168_v26 = vld [vmem:[%s1960_s1 + $0xd0] sm:$0xf]  ;;  %v1365_v27 = vld [vmem:[%s1960_s1 + $0xd4] sm:$0xf0]  ;;  %v1105_v29 = vor.u32 %v1349_v24, %v1104_v23  ;;  %v1096_v35 = vld [vmem:[%s1960_s1 + $0x40] sm:$0xf] }
  0x12   : > { %v1232_v28 = vld [vmem:[%s1960_s1 + $0x150] sm:$0xf]  ;;  %666 = vmatpush.bf16.msra.mxu0 %v1113_v16  ;;  %v1381_v30 = vld [vmem:[%s1960_s1 + $0x154] sm:$0xf0]  ;;  %v1169_v33 = vor.u32 %v1365_v27, %v1168_v26  ;;  %v1347_v36 = vld [vmem:[%s1960_s1 + $0x44] sm:$0xf0] }
  0x13   : > { %v1296_v31 = vld [vmem:[%s1960_s1 + $0x1d0] sm:$0xf]  ;;  %v1397_v32 = vld [vmem:[%s1960_s1 + $0x1d4] sm:$0xf0]  ;;  %695 = vmatpush.bf16.msra.mxu1 %v1177_v17  ;;  %v1233_v34 = vor.u32 %v1381_v30, %v1232_v28  ;;  %v1160_v37 = vld [vmem:[%s1960_s1 + $0xc0] sm:$0xf]  ;;  %v1097_v44 = vor.u32 %v1347_v36, %v1096_v35 }
  0x14   : > { %724 = vmatpush.bf16.msra.mxu2 %v1241_v21  ;;  %v1297_v38 = vor.u32 %v1397_v32, %v1296_v31  ;;  %v1363_v39 = vld [vmem:[%s1960_s1 + $0xc4] sm:$0xf0]  ;;  %v1224_v40 = vld [vmem:[%s1960_s1 + $0x140] sm:$0xf]  ;;  %v1088_v47 = vld [vmem:[%s1960_s1 + $0x30] sm:$0xf] }
  0x15   : > { %753 = vmatpush.bf16.msra.mxu3 %v1305_v25  ;;  %v1379_v41 = vld [vmem:[%s1960_s1 + $0x144] sm:$0xf0]  ;;  %v1288_v42 = vld [vmem:[%s1960_s1 + $0x1c0] sm:$0xf]  ;;  %v1161_v45 = vor.u32 %v1363_v39, %v1160_v37  ;;  %v1345_v48 = vld [vmem:[%s1960_s1 + $0x34] sm:$0xf0] }
  0x16   : > { %v1395_v43 = vld [vmem:[%s1960_s1 + $0x1c4] sm:$0xf0]  ;;  %667 = vmatpush.bf16.msra.mxu0 %v1105_v29  ;;  %v1225_v46 = vor.u32 %v1379_v41, %v1224_v40  ;;  %v1152_v49 = vld [vmem:[%s1960_s1 + $0xb0] sm:$0xf]  ;;  %v1361_v51 = vld [vmem:[%s1960_s1 + $0xb4] sm:$0xf0]  ;;  %v1089_v56 = vor.u32 %v1345_v48, %v1088_v47 }
  0x17   : > { %696 = vmatpush.bf16.msra.mxu1 %v1169_v33  ;;  %v1289_v50 = vor.u32 %v1395_v43, %v1288_v42  ;;  %v1216_v52 = vld [vmem:[%s1960_s1 + $0x130] sm:$0xf]  ;;  %v1377_v53 = vld [vmem:[%s1960_s1 + $0x134] sm:$0xf0]  ;;  %v1153_v57 = vor.u32 %v1361_v51, %v1152_v49  ;;  %v1080_v59 = vld [vmem:[%s1960_s1 + $0x20] sm:$0xf] }
  0x18   : > { %725 = vmatpush.bf16.msra.mxu2 %v1233_v34  ;;  %v1280_v54 = vld [vmem:[%s1960_s1 + $0x1b0] sm:$0xf]  ;;  %v1393_v55 = vld [vmem:[%s1960_s1 + $0x1b4] sm:$0xf0]  ;;  %v1217_v58 = vor.u32 %v1377_v53, %v1216_v52  ;;  %v1343_v60 = vld [vmem:[%s1960_s1 + $0x24] sm:$0xf0] }
  0x19   : > { %754 = vmatpush.bf16.msra.mxu3 %v1297_v38  ;;  %v1144_v61 = vld [vmem:[%s1960_s1 + $0xa0] sm:$0xf]  ;;  %v1281_v62 = vor.u32 %v1393_v55, %v1280_v54  ;;  %v1359_v63 = vld [vmem:[%s1960_s1 + $0xa4] sm:$0xf0]  ;;  %v1081_v4 = vor.u32 %v1343_v60, %v1080_v59  ;;  %v1072_v5 = vld [vmem:[%s1960_s1 + $0x10] sm:$0xf] }
  0x1a   : > { %668 = vmatpush.bf16.msra.mxu0 %v1097_v44  ;;  %v1208_v0 = vld [vmem:[%s1960_s1 + $0x120] sm:$0xf]  ;;  %v1375_v1 = vld [vmem:[%s1960_s1 + $0x124] sm:$0xf0]  ;;  %v1145_v6 = vor.u32 %v1359_v63, %v1144_v61  ;;  %v1341_v8 = vld [vmem:[%s1960_s1 + $0x14] sm:$0xf0] }
  0x1b   : > { %697 = vmatpush.bf16.msra.mxu1 %v1161_v45  ;;  %v1272_v2 = vld [vmem:[%s1960_s1 + $0x1a0] sm:$0xf]  ;;  %v1391_v3 = vld [vmem:[%s1960_s1 + $0x1a4] sm:$0xf0]  ;;  %v1209_v7 = vor.u32 %v1375_v1, %v1208_v0  ;;  %v1136_v9 = vld [vmem:[%s1960_s1 + $0x90] sm:$0xf]  ;;  %v1073_v16 = vor.u32 %v1341_v8, %v1072_v5 }
  0x1c   : > { %726 = vmatpush.bf16.msra.mxu2 %v1225_v46  ;;  %v1357_v10 = vld [vmem:[%s1960_s1 + $0x94] sm:$0xf0]  ;;  %v1273_v11 = vor.u32 %v1391_v3, %v1272_v2  ;;  %v1200_v12 = vld [vmem:[%s1960_s1 + $0x110] sm:$0xf]  ;;  %v1064_v17 = vld [vmem:[%s1960_s1] sm:$0xf] }
  0x1d   : > { %755 = vmatpush.bf16.msra.mxu3 %v1289_v50  ;;  %v1373_v13 = vld [vmem:[%s1960_s1 + $0x114] sm:$0xf0]  ;;  %v1264_v14 = vld [vmem:[%s1960_s1 + $0x190] sm:$0xf]  ;;  %v1339_v18 = vld [vmem:[%s1960_s1 + $0x4] sm:$0xf0]  ;;  %v1137_v20 = vor.u32 %v1357_v10, %v1136_v9 }
  0x1e   : > { %669 = vmatpush.bf16.msra.mxu0 %v1089_v56  ;;  %v1389_v15 = vld [vmem:[%s1960_s1 + $0x194] sm:$0xf0]  ;;  %v1128_v19 = vld [vmem:[%s1960_s1 + $0x80] sm:$0xf]  ;;  %v1201_v21 = vor.u32 %v1373_v13, %v1200_v12  ;;  %v1355_v22 = vld [vmem:[%s1960_s1 + $0x84] sm:$0xf0]  ;;  %v1065_v30 = vor.u32 %v1339_v18, %v1064_v17 }
  0x1f   : > { %698 = vmatpush.bf16.msra.mxu1 %v1153_v57  ;;  %v1192_v23 = vld [vmem:[%s1960_s1 + $0x100] sm:$0xf]  ;;  %s1964_s22 = smov (!%p166_p3, %s992_s22), 15  ;;  %v1265_v24 = vor.u32 %v1389_v15, %v1264_v14  ;;  %v1371_v25 = vld [vmem:[%s1960_s1 + $0x104] sm:$0xf0]  ;;  %v1129_v35 = vor.u32 %v1355_v22, %v1128_v19 }
  0x20   : > { %727 = vmatpush.bf16.msra.mxu2 %v1217_v58  ;;  %v1256_v26 = vld [vmem:[%s1960_s1 + $0x180] sm:$0xf]  ;;  %v1387_v27 = vld [vmem:[%s1960_s1 + $0x184] sm:$0xf0]  ;;  %s1320_s17 = sshll.u32 %s1964_s22, 4  ;;  %v1193_v36 = vor.u32 %v1371_v25, %v1192_v23 }
  0x21   : > { %756 = vmatpush.bf16.msra.mxu3 %v1281_v62  ;;  %v1384_v28 = vld [vmem:[%s1960_s1 + $0x174] sm:$0xf]  ;;  %v1250_v29 = vld [vmem:[%s1960_s1 + $0x178] sm:$0xf0]  ;;  %s1654_s25 = scalar_lea.vmem %s1959_s0, %s1320_s17  ;;  %v1382_v42 = vld [vmem:[%s1960_s1 + $0x164] sm:$0xf]  ;;  %v1257_v43 = vor.u32 %v1387_v27, %v1256_v26  ;;  %s1921_s10 = scalar_lea.vmem %s1962_s3, %s1320_s17 }
  0x22   : > { %670 = vmatpush.bf16.msra.mxu0 %v1081_v4  ;;  %v1352_v31 = vld [vmem:[%s1960_s1 + $0x74] sm:$0xf]  ;;  %v1122_v32 = vld [vmem:[%s1960_s1 + $0x78] sm:$0xf0]  ;;  %v1000_v37 = vld [vmem:[%s1654_s25] sm:$0xf]  ;;  %v1253_v47 = vor.u32 %v1384_v28, %v1250_v29 }
  0x23   : > { %699 = vmatpush.bf16.msra.mxu1 %v1145_v6  ;;  %v1400_v33 = vld [vmem:[%s1960_s1 + $0x1f4] sm:$0xf]  ;;  %v1314_v34 = vld [vmem:[%s1960_s1 + $0x1f8] sm:$0xf0]  ;;  %v1324_v38 = vld [vmem:[%s1654_s25 + $0xc] sm:$0xf0]  ;;  %v1125_v58 = vor.u32 %v1352_v31, %v1122_v32 }
  0x24   : > { %728 = vmatpush.bf16.msra.mxu2 %v1209_v7  ;;  %v1322_v39 = vld [vmem:[%s1654_s25 + $0x4] sm:$0xf]  ;;  %v1368_v40 = vld [vmem:[%s1960_s1 + $0xf4] sm:$0xf]  ;;  %v1186_v41 = vld [vmem:[%s1960_s1 + $0xf8] sm:$0xf0]  ;;  %v1683_v48 = vor.u32 %v1324_v38, %v1000_v37  ;;  %v1317_v51 = vor.u32 %v1400_v33, %v1314_v34 }
  0x25   : > { %757 = vmatpush.bf16.msra.mxu3 %v1273_v11  ;;  %v1002_v44 = vld [vmem:[%s1654_s25 + $0x10] sm:$0xf0]  ;;  %v1008_v45 = vld [vmem:[%s1654_s25 + $0x8] sm:$0xf]  ;;  %v1325_v46 = vld [vmem:[%s1654_s25 + $0x14] sm:$0xf0]  ;;  %v1189_v59 = vor.u32 %v1368_v40, %v1186_v41 }
  0x26   : > { %671 = vmatpush.bf16.msra.mxu0 %v1073_v16  ;;  %v1323_v49 = vld [vmem:[%s1654_s25 + $0xc] sm:$0xf]  ;;  %v1010_v50 = vld [vmem:[%s1654_s25 + $0x18] sm:$0xf0]  ;;  %v1690_v53 = vor.u32 %v1322_v39, %v1002_v44  ;;  %v1692_v54 = vor.u32 %v1325_v46, %v1008_v45  ;;  %v1398_v55 = vld [vmem:[%s1960_s1 + $0x1e4] sm:$0xf] }
  0x27   : > { %700 = vmatpush.bf16.msra.mxu1 %v1137_v20  ;;  %v1242_v52 = vld [vmem:[%s1960_s1 + $0x168] sm:$0xf0]  ;;  %v1700_v57 = vor.u32 %v1323_v49, %v1010_v50  ;;  %v1350_v61 = vld [vmem:[%s1960_s1 + $0x64] sm:$0xf]  ;;  %v1380_v2 = vld [vmem:[%s1960_s1 + $0x154] sm:$0xf] }
  0x28   : > { %729 = vmatpush.bf16.msra.mxu2 %v1201_v21  ;;  %v1306_v56 = vld [vmem:[%s1960_s1 + $0x1e8] sm:$0xf0]  ;;  %v1245_v60 = vor.u32 %v1382_v42, %v1242_v52  ;;  %v1366_v63 = vld [vmem:[%s1960_s1 + $0xe4] sm:$0xf]  ;;  %v1234_v3 = vld [vmem:[%s1960_s1 + $0x158] sm:$0xf0] }
  0x29   : > { %758 = vmatpush.bf16.msra.mxu3 %v1265_v24  ;;  %v1114_v62 = vld [vmem:[%s1960_s1 + $0x68] sm:$0xf0]  ;;  %v1309_v0 = vor.u32 %v1398_v55, %v1306_v56  ;;  %v1396_v4 = vld [vmem:[%s1960_s1 + $0x1d4] sm:$0xf]  ;;  %v1298_v5 = vld [vmem:[%s1960_s1 + $0x1d8] sm:$0xf0]  ;;  %v1237_v8 = vor.u32 %v1380_v2, %v1234_v3 }
  0x2a   : > { %672 = vmatpush.bf16.msra.mxu0 %v1065_v30  ;;  %v1178_v1 = vld [vmem:[%s1960_s1 + $0xe8] sm:$0xf0]  ;;  %v1117_v6 = vor.u32 %v1350_v61, %v1114_v62  ;;  %v1348_v9 = vld [vmem:[%s1960_s1 + $0x54] sm:$0xf]  ;;  %v1106_v10 = vld [vmem:[%s1960_s1 + $0x58] sm:$0xf0]  ;;  %v1301_v12 = vor.u32 %v1396_v4, %v1298_v5 }
  0x2b   : > { %701 = vmatpush.bf16.msra.mxu1 %v1129_v35  ;;  %v1181_v7 = vor.u32 %v1366_v63, %v1178_v1  ;;  %v1364_v11 = vld [vmem:[%s1960_s1 + $0xd4] sm:$0xf]  ;;  %v1170_v13 = vld [vmem:[%s1960_s1 + $0xd8] sm:$0xf0]  ;;  %v1378_v14 = vld [vmem:[%s1960_s1 + $0x144] sm:$0xf]  ;;  %v1109_v18 = vor.u32 %v1348_v9, %v1106_v10 }
  0x2c   : > { %730 = vmatpush.bf16.msra.mxu2 %v1193_v36  ;;  %v1226_v15 = vld [vmem:[%s1960_s1 + $0x148] sm:$0xf0]  ;;  %v1394_v16 = vld [vmem:[%s1960_s1 + $0x1c4] sm:$0xf]  ;;  %v1016_v19 = vld [vmem:[%s1654_s25 + $0x20] sm:$0xf]  ;;  %v1173_v21 = vor.u32 %v1364_v11, %v1170_v13 }
  0x2d   : > { %759 = vmatpush.bf16.msra.mxu3 %v1257_v43  ;;  %673 = vmatmul.bf16.vlgmr.msra.gmra.mxu0 %v1683_v48  ;;  %v1290_v17 = vld [vmem:[%s1960_s1 + $0x1c8] sm:$0xf0]  ;;  %v1328_v20 = vld [vmem:[%s1654_s25 + $0x2c] sm:$0xf0]  ;;  %v1229_v22 = vor.u32 %v1378_v14, %v1226_v15  ;;  %v1346_v23 = vld [vmem:[%s1960_s1 + $0x44] sm:$0xf] }
  0x2e   : > { %702 = vmatmul.bf16.vlgmr.msra.gmra.mxu1 %v1690_v53  ;;  %781 = vmatpush.bf16.msrb.mxu0 %v1125_v58  ;;  %v1098_v24 = vld [vmem:[%s1960_s1 + $0x48] sm:$0xf0]  ;;  %v1362_v25 = vld [vmem:[%s1960_s1 + $0xc4] sm:$0xf]  ;;  %v1018_v27 = vld [vmem:[%s1654_s25 + $0x30] sm:$0xf0]  ;;  %v1293_v28 = vor.u32 %v1394_v16, %v1290_v17  ;;  %v1795_v44 = vor.u32 %v1328_v20, %v1016_v19 }
  0x2f   : > { %731 = vmatmul.bf16.vlgmr.msra.gmra.mxu2 %v1692_v54  ;;  %810 = vmatpush.bf16.msrb.mxu1 %v1189_v59  ;;  %v1326_v26 = vld [vmem:[%s1654_s25 + $0x24] sm:$0xf]  ;;  %v1162_v29 = vld [vmem:[%s1960_s1 + $0xc8] sm:$0xf0]  ;;  %v1376_v30 = vld [vmem:[%s1960_s1 + $0x134] sm:$0xf]  ;;  %v1101_v38 = vor.u32 %v1346_v23, %v1098_v24 }
  0x30   : > { %839 = vmatpush.bf16.msrb.mxu2 %v1253_v47  ;;  %760 = vmatmul.bf16.vlgmr.msra.gmra.mxu3 %v1700_v57  ;;  %v1218_v31 = vld [vmem:[%s1960_s1 + $0x138] sm:$0xf0]  ;;  %v1024_v32 = vld [vmem:[%s1654_s25 + $0x28] sm:$0xf]  ;;  %v1392_v33 = vld [vmem:[%s1960_s1 + $0x1b4] sm:$0xf]  ;;  %v1165_v39 = vor.u32 %v1362_v25, %v1162_v29  ;;  %v1806_v50 = vor.u32 %v1326_v26, %v1018_v27 }
  0x31   : > { %868 = vmatpush.bf16.msrb.mxu3 %v1317_v51  ;;  %v1282_v34 = vld [vmem:[%s1960_s1 + $0x1b8] sm:$0xf0]  ;;  %v1329_v35 = vld [vmem:[%s1654_s25 + $0x34] sm:$0xf0]  ;;  %v1327_v36 = vld [vmem:[%s1654_s25 + $0x2c] sm:$0xf]  ;;  %v1221_v40 = vor.u32 %v1376_v30, %v1218_v31 }
  0x32   : > { %782 = vmatpush.bf16.msrb.mxu0 %v1117_v6  ;;  %v1026_v37 = vld [vmem:[%s1654_s25 + $0x38] sm:$0xf0]  ;;  %v1344_v41 = vld [vmem:[%s1960_s1 + $0x34] sm:$0xf]  ;;  %v1285_v45 = vor.u32 %v1392_v33, %v1282_v34  ;;  %v1374_v47 = vld [vmem:[%s1960_s1 + $0x124] sm:$0xf]  ;;  %v1808_v51 = vor.u32 %v1329_v35, %v1024_v32 }
  0x33   : > { %811 = vmatpush.bf16.msrb.mxu1 %v1181_v7  ;;  %v1090_v42 = vld [vmem:[%s1960_s1 + $0x38] sm:$0xf0]  ;;  %v1360_v43 = vld [vmem:[%s1960_s1 + $0xb4] sm:$0xf]  ;;  %v1210_v49 = vld [vmem:[%s1960_s1 + $0x128] sm:$0xf0]  ;;  %v1816_v56 = vor.u32 %v1327_v36, %v1026_v37 }
  0x34   : > { %840 = vmatpush.bf16.msrb.mxu2 %v1245_v60  ;;  %v1154_v46 = vld [vmem:[%s1960_s1 + $0xb8] sm:$0xf0]  ;;  %v1390_v52 = vld [vmem:[%s1960_s1 + $0x1a4] sm:$0xf]  ;;  %v1274_v55 = vld [vmem:[%s1960_s1 + $0x1a8] sm:$0xf0]  ;;  %v1093_v58 = vor.u32 %v1344_v41, %v1090_v42  ;;  %v1213_v60 = vor.u32 %v1374_v47, %v1210_v49 }
  0x35   : > { %869 = vmatpush.bf16.msrb.mxu3 %v1309_v0  ;;  %v1157_v59 = vor.u32 %v1360_v43, %v1154_v46  ;;  %v1342_v61 = vld [vmem:[%s1960_s1 + $0x24] sm:$0xf]  ;;  %v1082_v62 = vld [vmem:[%s1960_s1 + $0x28] sm:$0xf0]  ;;  %v1277_v63 = vor.u32 %v1390_v52, %v1274_v55  ;;  %v1372_v3 = vld [vmem:[%s1960_s1 + $0x114] sm:$0xf] }
  0x36   : > { %783 = vmatpush.bf16.msrb.mxu0 %v1109_v18  ;;  %v1358_v0 = vld [vmem:[%s1960_s1 + $0xa4] sm:$0xf]  ;;  %v1146_v1 = vld [vmem:[%s1960_s1 + $0xa8] sm:$0xf0]  ;;  %v1085_v2 = vor.u32 %v1342_v61, %v1082_v62  ;;  %v1202_v4 = vld [vmem:[%s1960_s1 + $0x118] sm:$0xf0] }
  0x37   : > { %812 = vmatpush.bf16.msrb.mxu1 %v1173_v21  ;;  %v1340_v5 = vld [vmem:[%s1960_s1 + $0x14] sm:$0xf]  ;;  %v1149_v6 = vor.u32 %v1358_v0, %v1146_v1  ;;  %v1205_v7 = vor.u32 %v1372_v3, %v1202_v4  ;;  %v1266_v10 = vld [vmem:[%s1960_s1 + $0x198] sm:$0xf0]  ;;  %v1370_v14 = vld [vmem:[%s1960_s1 + $0x104] sm:$0xf] }
  0x38   : > { %841 = vmatpush.bf16.msrb.mxu2 %v1237_v8  ;;  %v1074_v8 = vld [vmem:[%s1960_s1 + $0x18] sm:$0xf0]  ;;  %v1388_v9 = vld [vmem:[%s1960_s1 + $0x194] sm:$0xf]  ;;  %v1194_v15 = vld [vmem:[%s1960_s1 + $0x108] sm:$0xf0] }
  0x39   : > { %870 = vmatpush.bf16.msrb.mxu3 %v1301_v12  ;;  %v1269_v11 = vor.u32 %v1388_v9, %v1266_v10  ;;  %v1356_v12 = vld [vmem:[%s1960_s1 + $0x94] sm:$0xf]  ;;  %v1138_v13 = vld [vmem:[%s1960_s1 + $0x98] sm:$0xf0]  ;;  %v1077_v16 = vor.u32 %v1340_v5, %v1074_v8  ;;  %v1386_v17 = vld [vmem:[%s1960_s1 + $0x184] sm:$0xf]  ;;  %v1197_v20 = vor.u32 %v1370_v14, %v1194_v15 }
  0x3a   : > { %784 = vmatpush.bf16.msrb.mxu0 %v1101_v38  ;;  %v1258_v18 = vld [vmem:[%s1960_s1 + $0x188] sm:$0xf0]  ;;  %v1141_v19 = vor.u32 %v1356_v12, %v1138_v13  ;;  %v1338_v21 = vld [vmem:[%s1960_s1 + $0x4] sm:$0xf]  ;;  %v1032_v26 = vld [vmem:[%s1654_s25 + $0x40] sm:$0xf] }
  0x3b   : > { %813 = vmatpush.bf16.msrb.mxu1 %v1165_v39  ;;  %v1261_v23 = vor.u32 %v1386_v17, %v1258_v18  ;;  %v1354_v24 = vld [vmem:[%s1960_s1 + $0x84] sm:$0xf]  ;;  %v1130_v25 = vld [vmem:[%s1960_s1 + $0x88] sm:$0xf0]  ;;  %v1332_v27 = vld [vmem:[%s1654_s25 + $0x4c] sm:$0xf0] }
  0x3c   : > { %842 = vmatpush.bf16.msrb.mxu2 %v1229_v22  ;;  %v1066_v22 = vld [vmem:[%s1960_s1 + $0x8] sm:$0xf0]  ;;  %v1034_v29 = vld [vmem:[%s1654_s25 + $0x50] sm:$0xf0]  ;;  %v1040_v30 = vld [vmem:[%s1654_s25 + $0x48] sm:$0xf]  ;;  %v1133_v35 = vor.u32 %v1354_v24, %v1130_v25  ;;  %v1033_v36 = vor.u32 %v1332_v27, %v1032_v26 }
  0x3d   : > { %871 = vmatpush.bf16.msrb.mxu3 %v1293_v28  ;;  %678 = vmatmul.bf16.gmra.mxu0 %v1795_v44  ;;  %v1330_v28 = vld [vmem:[%s1654_s25 + $0x44] sm:$0xf]  ;;  %v1333_v31 = vld [vmem:[%s1654_s25 + $0x54] sm:$0xf0]  ;;  %v1069_v32 = vor.u32 %v1338_v21, %v1066_v22  ;;  %v1331_v33 = vld [vmem:[%s1654_s25 + $0x4c] sm:$0xf] }
  0x3e   : > { %707 = vmatmul.bf16.gmra.mxu1 %v1806_v50  ;;  %785 = vmatpush.bf16.msrb.mxu0 %v1093_v58  ;;  %v1042_v34 = vld [vmem:[%s1654_s25 + $0x58] sm:$0xf0]  ;;  %v1037_v37 = vor.u32 %v1330_v28, %v1034_v29  ;;  %v1041_v38 = vor.u32 %v1333_v31, %v1040_v30  ;;  %v1336_v41 = vld [vmem:[%s1654_s25 + $0x6c] sm:$0xf0]  ;;  %v1334_v42 = vld [vmem:[%s1654_s25 + $0x64] sm:$0xf] }
  0x3f   : > { %736 = vmatmul.bf16.gmra.mxu2 %v1808_v51  ;;  %814 = vmatpush.bf16.msrb.mxu1 %v1157_v59  ;;  %v1045_v39 = vor.u32 %v1331_v33, %v1042_v34  ;;  %v1050_v43 = vld [vmem:[%s1654_s25 + $0x70] sm:$0xf0]  ;;  %v1337_v46 = vld [vmem:[%s1654_s25 + $0x74] sm:$0xf0]  ;;  %v1335_v47 = vld [vmem:[%s1654_s25 + $0x6c] sm:$0xf] }
  0x40   : > { %843 = vmatpush.bf16.msrb.mxu2 %v1221_v40  ;;  %765 = vmatmul.bf16.gmra.mxu3 %v1816_v56  ;;  %v1048_v40 = vld [vmem:[%s1654_s25 + $0x60] sm:$0xf]  ;;  %v1058_v49 = vld [vmem:[%s1654_s25 + $0x78] sm:$0xf0]  ;;  %v1053_v55 = vor.u32 %v1334_v42, %v1050_v43 }
  0x41   : > { %872 = vmatpush.bf16.msrb.mxu3 %v1285_v45  ;;  %v1056_v45 = vld [vmem:[%s1654_s25 + $0x68] sm:$0xf]  ;;  %v1049_v52 = vor.u32 %v1336_v41, %v1048_v40  ;;  %v1061_v59 = vor.u32 %v1335_v47, %v1058_v49 }
  0x42   : > { %786 = vmatpush.bf16.msrb.mxu0 %v1085_v2  ;;  %v1057_v58 = vor.u32 %v1337_v46, %v1056_v45 }
  0x43   : > { %815 = vmatpush.bf16.msrb.mxu1 %v1149_v6 }
  0x44   : > { %844 = vmatpush.bf16.msrb.mxu2 %v1213_v60 }
  0x45   : > { %873 = vmatpush.bf16.msrb.mxu3 %v1277_v63 }
  0x46   : > { %787 = vmatpush.bf16.msrb.mxu0 %v1077_v16 }
  0x47   : > { %816 = vmatpush.bf16.msrb.mxu1 %v1141_v19 }
  0x48   : > { %845 = vmatpush.bf16.msrb.mxu2 %v1205_v7 }
  0x49   : > { %874 = vmatpush.bf16.msrb.mxu3 %v1269_v11 }
  0x4a   : > { %788 = vmatpush.bf16.msrb.mxu0 %v1069_v32 }
  0x4b   : > { %817 = vmatpush.bf16.msrb.mxu1 %v1133_v35 }
  0x4c   : > { %846 = vmatpush.bf16.msrb.mxu2 %v1197_v20 }
  0x4d   : > { %875 = vmatpush.bf16.msrb.mxu3 %v1261_v23  ;;  %683 = vmatmul.bf16.gmra.mxu0 %v1033_v36 }
  0x4e   : > { %712 = vmatmul.bf16.gmra.mxu1 %v1037_v37 }
  0x4f   : > { %741 = vmatmul.bf16.gmra.mxu2 %v1041_v38 }
  0x50   : > { %770 = vmatmul.bf16.gmra.mxu3 %v1045_v39 }
  0x5d   : > { %688 = vmatmul.bf16.gmra.mxu0 %v1049_v52 }
  0x5e   : > { %717 = vmatmul.bf16.gmra.mxu1 %v1053_v55 }
  0x5f   : > { %746 = vmatmul.bf16.gmra.mxu2 %v1057_v58 }
  0x60   : > { %775 = vmatmul.bf16.gmra.mxu3 %v1061_v59 }
  0x6d   : > { %789 = vmatmul.bf16.vlgmr.msrb.gmra.mxu0 %v1683_v48  ;;  %v1909_v48 = vld [vmem:[%s1961_s2] sm:$0x3] }
  0x6e   : > { %818 = vmatmul.bf16.vlgmr.msrb.gmra.mxu1 %v1690_v53  ;;  %v1912_v53 = vperm.slane %v1909_v48, 0 }
  0x6f   : > { %847 = vmatmul.bf16.vlgmr.msrb.gmra.mxu2 %v1692_v54 }
  0x70   : > { %876 = vmatmul.bf16.vlgmr.msrb.gmra.mxu3 %v1700_v57 }
  0x7d   : > { %794 = vmatmul.bf16.gmra.mxu0 %v1795_v44 }
  0x7e   : > { %823 = vmatmul.bf16.gmra.mxu1 %v1806_v50 }
  0x7f   : > { %852 = vmatmul.bf16.gmra.mxu2 %v1808_v51 }
  0x80   : > { %881 = vmatmul.bf16.gmra.mxu3 %v1816_v56 }
  0x8d   : > { %799 = vmatmul.bf16.gmra.mxu0 %v1033_v36 }
  0x8e   : > { %828 = vmatmul.bf16.gmra.mxu1 %v1037_v37 }
  0x8f   : > { %857 = vmatmul.bf16.gmra.mxu2 %v1041_v38 }
  0x90   : > { %886 = vmatmul.bf16.gmra.mxu3 %v1045_v39 }
  0x9d   : > { %804 = vmatmul.bf16.gmra.mxu0 %v1049_v52 }
  0x9e   : > { %833 = vmatmul.bf16.gmra.mxu1 %v1053_v55 }
  0x9f   : > { %862 = vmatmul.bf16.gmra.mxu2 %v1057_v58 }
  0xa0   : > { %891 = vmatmul.bf16.gmra.mxu3 %v1061_v59 }
  0xaa   : > { %v674_v54 = vpop.f32.mrf.mxu0 }
  0xab   : > { %v675_v57 = vadd.f32 %v674_v54, %v1912_v53  ;;  %v703_v44 = vpop.f32.mrf.mxu1 }
  0xad   : > { %v704_v50 = vadd.f32 %v703_v44, %v675_v57 }
  0xb2   : > { %v732_v51 = vpop.f32.mrf.mxu2  ;;  %v676_v61 = vpop.f32.mrf.mxu0 }
  0xb3   : > { %v733_v56 = vadd.f32 %v732_v51, %v704_v50  ;;  %v761_v60 = vpop.f32.mrf.mxu3  ;;  %v705_v62 = vpop.f32.mrf.mxu1  ;;  %v677_v0 = vadd.f32 %v676_v61, %v1912_v53  ;;  %v1936_v51 = vperm.slane %v1909_v48, 1 }
  0xb5   : > { %v762_v63 = vadd.f32 %v761_v60, %v733_v56  ;;  %v706_v2 = vadd.f32 %v705_v62, %v677_v0 }
  0xb7   : > { %v897_v1 = vmax.f32 %v762_v63, 0.0 }
  0xb9   : > { %913 = vst [vmem:[%s1921_s10] sm:$0xff] %v897_v1 }
  0xba   : > { %v734_v3 = vpop.f32.mrf.mxu2  ;;  %v679_v6 = vpop.f32.mrf.mxu0 }
  0xbb   : > { %v735_v4 = vadd.f32 %v734_v3, %v706_v2  ;;  %v763_v5 = vpop.f32.mrf.mxu3  ;;  %v680_v7 = vadd.f32 %v679_v6, %v1912_v53  ;;  %v708_v8 = vpop.f32.mrf.mxu1 }
  0xbd   : > { %v764_v9 = vadd.f32 %v763_v5, %v735_v4  ;;  %v709_v11 = vadd.f32 %v708_v8, %v680_v7 }
  0xbf   : > { %v899_v10 = vmax.f32 %v764_v9, 0.0 }
  0xc1   : > { %915 = vst [vmem:[%s1921_s10 + $0x10] sm:$0xff] %v899_v10 }
  0xc2   : > { %v737_v12 = vpop.f32.mrf.mxu2  ;;  %v681_v15 = vpop.f32.mrf.mxu0 }
  0xc3   : > { %v738_v13 = vadd.f32 %v737_v12, %v709_v11  ;;  %v766_v14 = vpop.f32.mrf.mxu3  ;;  %v710_v16 = vpop.f32.mrf.mxu1  ;;  %v682_v18 = vadd.f32 %v681_v15, %v1912_v53 }
  0xc5   : > { %v767_v17 = vadd.f32 %v766_v14, %v738_v13  ;;  %v711_v20 = vadd.f32 %v710_v16, %v682_v18 }
  0xc7   : > { %v901_v19 = vmax.f32 %v767_v17, 0.0 }
  0xc9   : > { %917 = vst [vmem:[%s1921_s10 + $0x20] sm:$0xff] %v901_v19 }
  0xca   : > { %v739_v21 = vpop.f32.mrf.mxu2  ;;  %v684_v24 = vpop.f32.mrf.mxu0 }
  0xcb   : > { %v740_v22 = vadd.f32 %v739_v21, %v711_v20  ;;  %v768_v23 = vpop.f32.mrf.mxu3  ;;  %v685_v25 = vadd.f32 %v684_v24, %v1912_v53  ;;  %v713_v26 = vpop.f32.mrf.mxu1 }
  0xcd   : > { %v769_v27 = vadd.f32 %v768_v23, %v740_v22  ;;  %v714_v29 = vadd.f32 %v713_v26, %v685_v25 }
  0xcf   : > { %v903_v28 = vmax.f32 %v769_v27, 0.0 }
  0xd1   : > { %919 = vst [vmem:[%s1921_s10 + $0x30] sm:$0xff] %v903_v28 }
  0xd2   : > { %v742_v30 = vpop.f32.mrf.mxu2  ;;  %v686_v33 = vpop.f32.mrf.mxu0 }
  0xd3   : > { %v743_v31 = vadd.f32 %v742_v30, %v714_v29  ;;  %v771_v32 = vpop.f32.mrf.mxu3  ;;  %v715_v34 = vpop.f32.mrf.mxu1  ;;  %v687_v36 = vadd.f32 %v686_v33, %v1912_v53 }
  0xd5   : > { %v772_v35 = vadd.f32 %v771_v32, %v743_v31  ;;  %v716_v38 = vadd.f32 %v715_v34, %v687_v36 }
  0xd7   : > { %v905_v37 = vmax.f32 %v772_v35, 0.0 }
  0xd9   : > { %921 = vst [vmem:[%s1921_s10 + $0x40] sm:$0xff] %v905_v37 }
  0xda   : > { %v744_v39 = vpop.f32.mrf.mxu2  ;;  %v689_v42 = vpop.f32.mrf.mxu0 }
  0xdb   : > { %v745_v40 = vadd.f32 %v744_v39, %v716_v38  ;;  %v773_v41 = vpop.f32.mrf.mxu3  ;;  %v690_v43 = vadd.f32 %v689_v42, %v1912_v53  ;;  %v718_v45 = vpop.f32.mrf.mxu1 }
  0xdd   : > { %v774_v46 = vadd.f32 %v773_v41, %v745_v40  ;;  %v719_v49 = vadd.f32 %v718_v45, %v690_v43 }
  0xdf   : > { %v907_v47 = vmax.f32 %v774_v46, 0.0 }
  0xe1   : > { %923 = vst [vmem:[%s1921_s10 + $0x50] sm:$0xff] %v907_v47 }
  0xe2   : > { %v747_v52 = vpop.f32.mrf.mxu2  ;;  %v691_v59 = vpop.f32.mrf.mxu0 }
  0xe3   : > { %v748_v55 = vadd.f32 %v747_v52, %v719_v49  ;;  %v776_v58 = vpop.f32.mrf.mxu3  ;;  %v720_v54 = vpop.f32.mrf.mxu1  ;;  %v692_v44 = vadd.f32 %v691_v59, %v1912_v53 }
  0xe5   : > { %v777_v57 = vadd.f32 %v776_v58, %v748_v55  ;;  %v721_v56 = vadd.f32 %v720_v54, %v692_v44 }
  0xe7   : > { %v909_v50 = vmax.f32 %v777_v57, 0.0 }
  0xe9   : > { %925 = vst [vmem:[%s1921_s10 + $0x60] sm:$0xff] %v909_v50 }
  0xea   : > { %v749_v60 = vpop.f32.mrf.mxu2  ;;  %v790_v63 = vpop.f32.mrf.mxu0 }
  0xeb   : > { %v750_v61 = vadd.f32 %v749_v60, %v721_v56  ;;  %v778_v62 = vpop.f32.mrf.mxu3  ;;  %v791_v0 = vadd.f32 %v790_v63, %v1936_v51  ;;  %v819_v1 = vpop.f32.mrf.mxu1 }
  0xed   : > { %v779_v2 = vadd.f32 %v778_v62, %v750_v61  ;;  %v820_v4 = vadd.f32 %v819_v1, %v791_v0 }
  0xef   : > { %v911_v3 = vmax.f32 %v779_v2, 0.0 }
  0xf1   : > { %927 = vst [vmem:[%s1921_s10 + $0x70] sm:$0xff] %v911_v3 }
  0xf2   : > { %v848_v5 = vpop.f32.mrf.mxu2  ;;  %v792_v7 = vpop.f32.mrf.mxu0 }
  0xf3   : > { %v849_v53 = vadd.f32 %v848_v5, %v820_v4  ;;  %v877_v6 = vpop.f32.mrf.mxu3  ;;  %v821_v48 = vpop.f32.mrf.mxu1  ;;  %v793_v9 = vadd.f32 %v792_v7, %v1936_v51 }
  0xf5   : > { %v878_v8 = vadd.f32 %v877_v6, %v849_v53  ;;  %v822_v11 = vadd.f32 %v821_v48, %v793_v9 }
  0xf7   : > { %v898_v10 = vmax.f32 %v878_v8, 0.0 }
  0xf9   : > { %914 = vst [vmem:[%s1921_s10 + $0x8] sm:$0xff] %v898_v10 }
  0xfa   : > { %v850_v12 = vpop.f32.mrf.mxu2  ;;  %v795_v15 = vpop.f32.mrf.mxu0 }
  0xfb   : > { %v851_v13 = vadd.f32 %v850_v12, %v822_v11  ;;  %v879_v14 = vpop.f32.mrf.mxu3  ;;  %v796_v16 = vadd.f32 %v795_v15, %v1936_v51  ;;  %v824_v17 = vpop.f32.mrf.mxu1 }
  0xfd   : > { %v880_v18 = vadd.f32 %v879_v14, %v851_v13  ;;  %v825_v20 = vadd.f32 %v824_v17, %v796_v16 }
  0xff   : > { %v900_v19 = vmax.f32 %v880_v18, 0.0 }
 0x101   : > { %916 = vst [vmem:[%s1921_s10 + $0x18] sm:$0xff] %v900_v19 }
 0x102   : > { %v853_v21 = vpop.f32.mrf.mxu2  ;;  %v797_v24 = vpop.f32.mrf.mxu0 }
 0x103   : > { %v854_v22 = vadd.f32 %v853_v21, %v825_v20  ;;  %v882_v23 = vpop.f32.mrf.mxu3  ;;  %v826_v25 = vpop.f32.mrf.mxu1  ;;  %v798_v27 = vadd.f32 %v797_v24, %v1936_v51 }
 0x105   : > { %v883_v26 = vadd.f32 %v882_v23, %v854_v22  ;;  %v827_v29 = vadd.f32 %v826_v25, %v798_v27 }
 0x107   : > { %v902_v28 = vmax.f32 %v883_v26, 0.0 }
 0x109   : > { %918 = vst [vmem:[%s1921_s10 + $0x28] sm:$0xff] %v902_v28 }
 0x10a   : > { %v855_v30 = vpop.f32.mrf.mxu2  ;;  %v800_v33 = vpop.f32.mrf.mxu0 }
 0x10b   : > { %v856_v31 = vadd.f32 %v855_v30, %v827_v29  ;;  %v884_v32 = vpop.f32.mrf.mxu3  ;;  %v801_v34 = vadd.f32 %v800_v33, %v1936_v51  ;;  %v829_v35 = vpop.f32.mrf.mxu1 }
 0x10d   : > { %v885_v36 = vadd.f32 %v884_v32, %v856_v31  ;;  %v830_v38 = vadd.f32 %v829_v35, %v801_v34 }
 0x10f   : > { %v904_v37 = vmax.f32 %v885_v36, 0.0 }
 0x111   : > { %920 = vst [vmem:[%s1921_s10 + $0x38] sm:$0xff] %v904_v37 }
 0x112   : > { %v858_v39 = vpop.f32.mrf.mxu2  ;;  %v802_v42 = vpop.f32.mrf.mxu0 }
 0x113   : > { %v859_v40 = vadd.f32 %v858_v39, %v830_v38  ;;  %v887_v41 = vpop.f32.mrf.mxu3  ;;  %v831_v43 = vpop.f32.mrf.mxu1  ;;  %v803_v46 = vadd.f32 %v802_v42, %v1936_v51 }
 0x115   : > { %v888_v45 = vadd.f32 %v887_v41, %v859_v40  ;;  %v832_v49 = vadd.f32 %v831_v43, %v803_v46 }
 0x117   : > { %v906_v47 = vmax.f32 %v888_v45, 0.0 }
 0x119   : > { %922 = vst [vmem:[%s1921_s10 + $0x48] sm:$0xff] %v906_v47 }
 0x11a   : > { %v860_v52 = vpop.f32.mrf.mxu2  ;;  %v805_v59 = vpop.f32.mrf.mxu0 }
 0x11b   : > { %v861_v55 = vadd.f32 %v860_v52, %v832_v49  ;;  %v889_v58 = vpop.f32.mrf.mxu3  ;;  %v806_v54 = vadd.f32 %v805_v59, %v1936_v51  ;;  %v834_v44 = vpop.f32.mrf.mxu1 }
 0x11d   : > { %v890_v57 = vadd.f32 %v889_v58, %v861_v55  ;;  %v835_v56 = vadd.f32 %v834_v44, %v806_v54 }
 0x11f   : > { %v908_v50 = vmax.f32 %v890_v57, 0.0 }
 0x121   : > { %924 = vst [vmem:[%s1921_s10 + $0x58] sm:$0xff] %v908_v50 }
 0x122   : > { %v863_v60 = vpop.f32.mrf.mxu2  ;;  %v807_v63 = vpop.f32.mrf.mxu0 }
 0x123   : > { %v864_v61 = vadd.f32 %v863_v60, %v835_v56  ;;  %v892_v62 = vpop.f32.mrf.mxu3  ;;  %v808_v1 = vadd.f32 %v807_v63, %v1936_v51  ;;  %v836_v3 = vpop.f32.mrf.mxu1 }
 0x125   : > { %v893_v0 = vadd.f32 %v892_v62, %v864_v61  ;;  %v837_v4 = vadd.f32 %v836_v3, %v808_v1 }
 0x127   : > { %v910_v2 = vmax.f32 %v893_v0, 0.0 }
 0x129   : > { %926 = vst [vmem:[%s1921_s10 + $0x68] sm:$0xff] %v910_v2 }
 0x12a   : > { %v865_v5 = vpop.f32.mrf.mxu2 }
 0x12b   : > { %v866_v53 = vadd.f32 %v865_v5, %v837_v4  ;;  %v894_v6 = vpop.f32.mrf.mxu3 }
 0x12d   : > { %v895_v7 = vadd.f32 %v894_v6, %v866_v53 }
 0x12f   : > { %v912_v48 = vmax.f32 %v895_v7, 0.0 }
 0x131   : > { %928 = vst [vmem:[%s1921_s10 + $0x78] sm:$0xff] %v912_v48 }
 0x132 PF: > { %s13_s12 = sadd.s32 1, %s1416_s12  }
 0x133   : > { %p10_p4 = scmp.ge.s32.totalorder %s13_s12, 4  }
 0x135   :  { %12 = sbr.rel (!%p10_p4) target bundleno = 1 (0x1), region = 62 }

// kernel: edbhead_forward.19
= control target key start
LH: loop header
LB: loop body
LE: loop exit
PB: predicated region body
PF: predicated region fallthrough
CT: control target
= control target key end

     0   :  { %s3504_s12 = smov 0   ;;  %s4243_s0 = inlined_call_operand.vmem [shape: bf16[128,2304], index: 0, kind: input, shape index: {}]   ;;  %s4244_s1 = inlined_call_operand.vmem [shape: bf16[2304,128], index: 1, kind: input, shape index: {}]   ;;  %s4245_s2 = inlined_call_operand.vmem [shape: f32[1,128], index: 2, kind: input, shape index: {}]   ;;  %s4246_s3 = inlined_call_operand.vmem [shape: f32[128,128], index: 3, kind: output, shape index: {}]  }
   0x1 LB: > { %s2359_s13 = sadd.s32 4294967295, %s3482_s12   ;;  %p2363_p0 = scmp.ge.s32.totalorder %s3482_s12, 1  ;;  %s3482_s12 = sphi %s3504_s12, %s13_s12  }
   0x2   : > { %p139_p1 = scmp.lt.s32.totalorder %s3482_s12, 3 }
   0x4   : > { %p140_p2 = pnand %p2363_p0, %p139_p1 }
   0x5   : > { %s2364_s26 = sshll.u32 (!%p140_p2), %s2359_s13, 3 }
   0x6   : > { %143 = sbr.rel (%p140_p2) target bundleno = 466 (0x1d2), region = 32  ;;  %p165_p3 = scmp.lt.s32.totalorder (!%p140_p2), %s2364_s26, 15 }
   0xb   : > { %v3313_v0 = vld [vmem:[%s4244_s1 + $0x38] sm:$0xff]  ;;  %v3312_v2 = vld [vmem:[%s4244_s1 + $0x30] sm:$0xff]  ;;  %v3311_v4 = vld [vmem:[%s4244_s1 + $0x28] sm:$0xff]  ;;  %s4248_s26 = smov (!%p165_p3, %s2364_s26), 15 }
   0xc   : > { %v3321_v1 = vld [vmem:[%s4244_s1 + $0x78] sm:$0xff]  ;;  %3450 = vmatpush.bf16.msra.mxu2 %v3313_v0  ;;  %v3320_v3 = vld [vmem:[%s4244_s1 + $0x70] sm:$0xff]  ;;  %1765 = vmatpush.bf16.msra.mxu0 %v3313_v0  ;;  %v3319_v5 = vld [vmem:[%s4244_s1 + $0x68] sm:$0xff]  ;;  %s3466_s13 = smul.u32 72, %s4248_s26 }
   0xd   : > { %3458 = vmatpush.bf16.msra.mxu3 %v3321_v1  ;;  %1794 = vmatpush.bf16.msra.mxu1 %v3321_v1  ;;  %v3310_v6 = vld [vmem:[%s4244_s1 + $0x20] sm:$0xff]  ;;  %v3309_v8 = vld [vmem:[%s4244_s1 + $0x18] sm:$0xff]  ;;  %v3308_v10 = vld [vmem:[%s4244_s1 + $0x10] sm:$0xff] }
   0xe   : > { %v3318_v7 = vld [vmem:[%s4244_s1 + $0x60] sm:$0xff]  ;;  %v3317_v9 = vld [vmem:[%s4244_s1 + $0x58] sm:$0xff]  ;;  %v3316_v11 = vld [vmem:[%s4244_s1 + $0x50] sm:$0xff]  ;;  %s3560_s20 = scalar_lea.vmem %s4243_s0, %s3466_s13 }
   0xf   : > { %v3307_v12 = vld [vmem:[%s4244_s1 + $0x8] sm:$0xff]  ;;  %v3306_v14 = vld [vmem:[%s4244_s1] sm:$0xff]  ;;  %v3329_v20 = vld [vmem:[%s4244_s1 + $0xb8] sm:$0xff] }
  0x10   : > { %3451 = vmatpush.bf16.msra.mxu2 %v3312_v2  ;;  %1766 = vmatpush.bf16.msra.mxu0 %v3312_v2  ;;  %v3315_v13 = vld [vmem:[%s4244_s1 + $0x48] sm:$0xff]  ;;  %v3314_v15 = vld [vmem:[%s4244_s1 + $0x40] sm:$0xff]  ;;  %v3337_v23 = vld [vmem:[%s4244_s1 + $0xf8] sm:$0xff] }
  0x11   : > { %3459 = vmatpush.bf16.msra.mxu3 %v3320_v3  ;;  %1795 = vmatpush.bf16.msra.mxu1 %v3320_v3  ;;  %v2514_v16 = vld [vmem:[%s3560_s20 + $0x120] sm:$0xf]  ;;  %v3279_v17 = vld [vmem:[%s3560_s20 + $0x164] sm:$0xf0]  ;;  %v3270_v18 = vld [vmem:[%s3560_s20 + $0x124] sm:$0xf] }
  0x12   : > { %v2516_v19 = vld [vmem:[%s3560_s20 + $0x168] sm:$0xf0]  ;;  %v2370_v21 = vld [vmem:[%s3560_s20] sm:$0xf]  ;;  %v3243_v22 = vld [vmem:[%s3560_s20 + $0x44] sm:$0xf0]  ;;  %v2515_v26 = vor.u32 %v3279_v17, %v2514_v16 }
  0x13   : > { %v3234_v24 = vld [vmem:[%s3560_s20 + $0x4] sm:$0xf]  ;;  %v2372_v25 = vld [vmem:[%s3560_s20 + $0x48] sm:$0xf0]  ;;  %v2519_v27 = vor.u32 %v3270_v18, %v2516_v19  ;;  %v2371_v28 = vor.u32 %v3243_v22, %v2370_v21  ;;  %v3353_v29 = vld [vmem:[%s4244_s1 + $0x178] sm:$0xff] }
  0x14   : > { %3452 = vmatpush.bf16.msra.mxu2 %v3311_v4  ;;  %1767 = vmatpush.bf16.msra.mxu0 %v3311_v4  ;;  %v3345_v30 = vld [vmem:[%s4244_s1 + $0x138] sm:$0xff]  ;;  %v2375_v31 = vor.u32 %v3234_v24, %v2372_v25  ;;  %v3328_v32 = vld [vmem:[%s4244_s1 + $0xb0] sm:$0xff]  ;;  %v3327_v36 = vld [vmem:[%s4244_s1 + $0xa8] sm:$0xff] }
  0x15   : > { %3460 = vmatpush.bf16.msra.mxu3 %v3319_v5  ;;  %1796 = vmatpush.bf16.msra.mxu1 %v3319_v5  ;;  %v3336_v33 = vld [vmem:[%s4244_s1 + $0xf0] sm:$0xff]  ;;  %v3335_v37 = vld [vmem:[%s4244_s1 + $0xe8] sm:$0xff]  ;;  %v3326_v40 = vld [vmem:[%s4244_s1 + $0xa0] sm:$0xff] }
  0x16   : > { %v3352_v34 = vld [vmem:[%s4244_s1 + $0x170] sm:$0xff]  ;;  %v3351_v38 = vld [vmem:[%s4244_s1 + $0x168] sm:$0xff]  ;;  %v3334_v41 = vld [vmem:[%s4244_s1 + $0xe0] sm:$0xff] }
  0x17   : > { %v3344_v35 = vld [vmem:[%s4244_s1 + $0x130] sm:$0xff]  ;;  %v3343_v39 = vld [vmem:[%s4244_s1 + $0x128] sm:$0xff]  ;;  %v3342_v42 = vld [vmem:[%s4244_s1 + $0x120] sm:$0xff] }
  0x18   : > { %3453 = vmatpush.bf16.msra.mxu2 %v3310_v6  ;;  %1768 = vmatpush.bf16.msra.mxu0 %v3310_v6  ;;  %v2586_v43 = vld [vmem:[%s3560_s20 + $0x1b0] sm:$0xf]  ;;  %v3297_v44 = vld [vmem:[%s3560_s20 + $0x1f4] sm:$0xf0]  ;;  %v3288_v45 = vld [vmem:[%s3560_s20 + $0x1b4] sm:$0xf] }
  0x19   : > { %3461 = vmatpush.bf16.msra.mxu3 %v3318_v7  ;;  %1797 = vmatpush.bf16.msra.mxu1 %v3318_v7  ;;  %v2588_v46 = vld [vmem:[%s3560_s20 + $0x1f8] sm:$0xf0]  ;;  %v3350_v47 = vld [vmem:[%s4244_s1 + $0x160] sm:$0xff]  ;;  %v2442_v49 = vld [vmem:[%s3560_s20 + $0x90] sm:$0xf]  ;;  %v2587_v54 = vor.u32 %v3297_v44, %v2586_v43 }
  0x1a   : > { %v3325_v48 = vld [vmem:[%s4244_s1 + $0x98] sm:$0xff]  ;;  %v3252_v52 = vld [vmem:[%s3560_s20 + $0x94] sm:$0xf]  ;;  %v2591_v55 = vor.u32 %v3288_v45, %v2588_v46  ;;  %v3323_v0 = vld [vmem:[%s4244_s1 + $0x88] sm:$0xff] }
  0x1b   : > { %v3261_v50 = vld [vmem:[%s3560_s20 + $0xd4] sm:$0xf0]  ;;  %v2444_v53 = vld [vmem:[%s3560_s20 + $0xd8] sm:$0xf0]  ;;  %v3324_v60 = vld [vmem:[%s4244_s1 + $0x90] sm:$0xff] }
  0x1c   : > { %3454 = vmatpush.bf16.msra.mxu2 %v3309_v8  ;;  %1769 = vmatpush.bf16.msra.mxu0 %v3309_v8  ;;  %v3333_v51 = vld [vmem:[%s4244_s1 + $0xd8] sm:$0xff]  ;;  %v2443_v56 = vor.u32 %v3261_v50, %v2442_v49  ;;  %v2447_v59 = vor.u32 %v3252_v52, %v2444_v53  ;;  %v3332_v61 = vld [vmem:[%s4244_s1 + $0xd0] sm:$0xff]  ;;  %v3331_v1 = vld [vmem:[%s4244_s1 + $0xc8] sm:$0xff] }
  0x1d   : > { %3462 = vmatpush.bf16.msra.mxu3 %v3317_v9  ;;  %1798 = vmatpush.bf16.msra.mxu1 %v3317_v9  ;;  %v3349_v57 = vld [vmem:[%s4244_s1 + $0x158] sm:$0xff]  ;;  %v3348_v62 = vld [vmem:[%s4244_s1 + $0x150] sm:$0xff]  ;;  %v3347_v2 = vld [vmem:[%s4244_s1 + $0x148] sm:$0xff] }
  0x1e   : > { %v3341_v58 = vld [vmem:[%s4244_s1 + $0x118] sm:$0xff]  ;;  %v3340_v63 = vld [vmem:[%s4244_s1 + $0x110] sm:$0xff]  ;;  %v3339_v3 = vld [vmem:[%s4244_s1 + $0x108] sm:$0xff] }
  0x1f   : > { %v3322_v4 = vld [vmem:[%s4244_s1 + $0x80] sm:$0xff]  ;;  %v2378_v6 = vld [vmem:[%s3560_s20 + $0x8] sm:$0xf]  ;;  %v3244_v8 = vld [vmem:[%s3560_s20 + $0x4c] sm:$0xf0] }
  0x20   : > { %3455 = vmatpush.bf16.msra.mxu2 %v3308_v10  ;;  %1770 = vmatpush.bf16.msra.mxu0 %v3308_v10  ;;  %v3330_v5 = vld [vmem:[%s4244_s1 + $0xc0] sm:$0xff]  ;;  %v3361_v9 = vld [vmem:[%s4244_s1 + $0x1b8] sm:$0xff]  ;;  %v3236_v17 = vld [vmem:[%s3560_s20 + $0x14] sm:$0xf] }
  0x21   : > { %3463 = vmatpush.bf16.msra.mxu3 %v3316_v11  ;;  %1799 = vmatpush.bf16.msra.mxu1 %v3316_v11  ;;  %v3338_v7 = vld [vmem:[%s4244_s1 + $0x100] sm:$0xff]  ;;  %v3369_v10 = vld [vmem:[%s4244_s1 + $0x1f8] sm:$0xff]  ;;  %v3235_v11 = vld [vmem:[%s3560_s20 + $0xc] sm:$0xf] }
  0x22   : > { %v3385_v16 = vld [vmem:[%s4244_s1 + $0x278] sm:$0xff]  ;;  %v3368_v25 = vld [vmem:[%s4244_s1 + $0x1f0] sm:$0xff]  ;;  %v3254_v43 = vld [vmem:[%s3560_s20 + $0xa4] sm:$0xf] }
  0x23   : > { %v2388_v18 = vld [vmem:[%s3560_s20 + $0x58] sm:$0xf0]  ;;  %v2460_v45 = vld [vmem:[%s3560_s20 + $0xe8] sm:$0xf0]  ;;  %v3364_v53 = vld [vmem:[%s4244_s1 + $0x1d0] sm:$0xff] }
  0x24   : > { %3456 = vmatpush.bf16.msra.mxu2 %v3307_v12  ;;  %1771 = vmatpush.bf16.msra.mxu0 %v3307_v12  ;;  %v2380_v12 = vld [vmem:[%s3560_s20 + $0x50] sm:$0xf0]  ;;  %v3377_v19 = vld [vmem:[%s4244_s1 + $0x238] sm:$0xff]  ;;  %v2391_v24 = vor.u32 %v3236_v17, %v2388_v18  ;;  %v2463_v52 = vor.u32 %v3254_v43, %v2460_v45  ;;  %v3247_v43 = vld [vmem:[%s3560_s20 + $0x64] sm:$0xf0] }
  0x25   : > { %3464 = vmatpush.bf16.msra.mxu3 %v3315_v13  ;;  %1800 = vmatpush.bf16.msra.mxu1 %v3315_v13  ;;  %v3346_v13 = vld [vmem:[%s4244_s1 + $0x140] sm:$0xff]  ;;  %v2383_v21 = vor.u32 %v3235_v11, %v2380_v12  ;;  %v3365_v44 = vld [vmem:[%s4244_s1 + $0x1d8] sm:$0xff]  ;;  %v2404_v45 = vld [vmem:[%s3560_s20 + $0x68] sm:$0xf0] }
  0x26   : > { %v3373_v46 = vld [vmem:[%s4244_s1 + $0x218] sm:$0xff]  ;;  %v3378_v11 = vld [vmem:[%s4244_s1 + $0x240] sm:$0xff] }
  0x27   : > { %v3393_v12 = vld [vmem:[%s4244_s1 + $0x2b8] sm:$0xff] }
  0x28   : > { %3457 = vmatpush.bf16.msra.mxu2 %v3306_v14  ;;  %1772 = vmatpush.bf16.msra.mxu0 %v3306_v14  ;;  %v2386_v14 = vld [vmem:[%s3560_s20 + $0x10] sm:$0xf]  ;;  %v3417_v17 = vld [vmem:[%s4244_s1 + $0x378] sm:$0xff] }
  0x29   : > { %3465 = vmatpush.bf16.msra.mxu3 %v3314_v15  ;;  %1801 = vmatpush.bf16.msra.mxu1 %v3314_v15  ;;  %v3245_v15 = vld [vmem:[%s3560_s20 + $0x54] sm:$0xf0] }
  0x2a   : > { %v2387_v22 = vor.u32 %v3245_v15, %v2386_v14  ;;  %v3392_v14 = vld [vmem:[%s4244_s1 + $0x2b0] sm:$0xff]  ;;  %v3409_v15 = vld [vmem:[%s4244_s1 + $0x338] sm:$0xff] }
  0x2b   : > { %1783 = vmatmul.bf16.vlgmr.msra.gmra.mxu2 %v2515_v26  ;;  %1773 = vmatmul.bf16.vlgmr.msra.gmra.mxu0 %v2371_v28  ;;  %v3376_v26 = vld [vmem:[%s4244_s1 + $0x230] sm:$0xff]  ;;  %v3359_v28 = vld [vmem:[%s4244_s1 + $0x1a8] sm:$0xff]  ;;  %v2594_v18 = vld [vmem:[%s3560_s20 + $0x1b8] sm:$0xf] }
  0x2c   : > { %1823 = vmatpush.bf16.msrb.mxu2 %v3329_v20  ;;  %1812 = vmatmul.bf16.vlgmr.msra.gmra.mxu3 %v2519_v27  ;;  %v2379_v20 = vor.u32 %v3244_v8, %v2378_v6  ;;  %v3384_v27 = vld [vmem:[%s4244_s1 + $0x270] sm:$0xff]  ;;  %v2532_v6 = vld [vmem:[%s3560_s20 + $0x178] sm:$0xf0] }
  0x2d   : > { %1852 = vmatpush.bf16.msrb.mxu3 %v3337_v23  ;;  %1910 = vmatpush.bf16.msrb.mxu1 %v3353_v29  ;;  %v3360_v23 = vld [vmem:[%s4244_s1 + $0x1b0] sm:$0xff]  ;;  %v3367_v29 = vld [vmem:[%s4244_s1 + $0x1e8] sm:$0xff] }
  0x2e   : > { %1881 = vmatpush.bf16.msrb.mxu0 %v3345_v30  ;;  %1802 = vmatmul.bf16.vlgmr.msra.gmra.mxu1 %v2375_v31  ;;  %v3375_v30 = vld [vmem:[%s4244_s1 + $0x228] sm:$0xff] }
  0x2f   : > { %v3383_v31 = vld [vmem:[%s4244_s1 + $0x268] sm:$0xff] }
  0x30   : > { %1824 = vmatpush.bf16.msrb.mxu2 %v3328_v32  ;;  %v3358_v32 = vld [vmem:[%s4244_s1 + $0x1a0] sm:$0xff] }
  0x31   : > { %1853 = vmatpush.bf16.msrb.mxu3 %v3336_v33  ;;  %1911 = vmatpush.bf16.msrb.mxu1 %v3352_v34  ;;  %v3366_v33 = vld [vmem:[%s4244_s1 + $0x1e0] sm:$0xff] }
  0x32   : > { %1882 = vmatpush.bf16.msrb.mxu0 %v3344_v35  ;;  %v3374_v34 = vld [vmem:[%s4244_s1 + $0x220] sm:$0xff] }
  0x33   : > { %v3382_v35 = vld [vmem:[%s4244_s1 + $0x260] sm:$0xff] }
  0x34   : > { %1825 = vmatpush.bf16.msrb.mxu2 %v3327_v36  ;;  %v2450_v36 = vld [vmem:[%s3560_s20 + $0x98] sm:$0xf] }
  0x35   : > { %1854 = vmatpush.bf16.msrb.mxu3 %v3335_v37  ;;  %1912 = vmatpush.bf16.msrb.mxu1 %v3351_v38  ;;  %v3262_v37 = vld [vmem:[%s3560_s20 + $0xdc] sm:$0xf0]  ;;  %v3253_v38 = vld [vmem:[%s3560_s20 + $0x9c] sm:$0xf] }
  0x36   : > { %1883 = vmatpush.bf16.msrb.mxu0 %v3343_v39  ;;  %v2452_v39 = vld [vmem:[%s3560_s20 + $0xe0] sm:$0xf0] }
  0x37   : > { %v2455_v49 = vor.u32 %v3253_v38, %v2452_v39  ;;  %v2394_v38 = vld [vmem:[%s3560_s20 + $0x18] sm:$0xf]  ;;  %v3246_v39 = vld [vmem:[%s3560_s20 + $0x5c] sm:$0xf0] }
  0x38   : > { %1826 = vmatpush.bf16.msrb.mxu2 %v3326_v40  ;;  %v2458_v40 = vld [vmem:[%s3560_s20 + $0xa0] sm:$0xf] }
  0x39   : > { %1855 = vmatpush.bf16.msrb.mxu3 %v3334_v41  ;;  %1913 = vmatpush.bf16.msrb.mxu1 %v3350_v47  ;;  %v3357_v41 = vld [vmem:[%s4244_s1 + $0x198] sm:$0xff] }
  0x3a   : > { %1884 = vmatpush.bf16.msrb.mxu0 %v3342_v42  ;;  %v3263_v42 = vld [vmem:[%s3560_s20 + $0xe4] sm:$0xf0]  ;;  %v3381_v47 = vld [vmem:[%s4244_s1 + $0x258] sm:$0xff] }
  0x3b   : > { %1788 = vmatmul.bf16.gmra.mxu2 %v2587_v54  ;;  %1778 = vmatmul.bf16.gmra.mxu0 %v2443_v56  ;;  %v2459_v50 = vor.u32 %v3263_v42, %v2458_v40  ;;  %v3355_v54 = vld [vmem:[%s4244_s1 + $0x188] sm:$0xff]  ;;  %v3237_v40 = vld [vmem:[%s3560_s20 + $0x1c] sm:$0xf]  ;;  %v2402_v42 = vld [vmem:[%s3560_s20 + $0x20] sm:$0xf] }
  0x3c   : > { %1827 = vmatpush.bf16.msrb.mxu2 %v3325_v48  ;;  %1817 = vmatmul.bf16.gmra.mxu3 %v2591_v55  ;;  %v2451_v48 = vor.u32 %v3262_v37, %v2450_v36  ;;  %v3372_v55 = vld [vmem:[%s4244_s1 + $0x210] sm:$0xff]  ;;  %v3363_v56 = vld [vmem:[%s4244_s1 + $0x1c8] sm:$0xff] }
  0x3d   : > { %1856 = vmatpush.bf16.msrb.mxu3 %v3333_v51  ;;  %1914 = vmatpush.bf16.msrb.mxu1 %v3349_v57  ;;  %v3356_v51 = vld [vmem:[%s4244_s1 + $0x190] sm:$0xff]  ;;  %v3407_v36 = vld [vmem:[%s4244_s1 + $0x328] sm:$0xff] }
  0x3e   : > { %1885 = vmatpush.bf16.msrb.mxu0 %v3341_v58  ;;  %1807 = vmatmul.bf16.gmra.mxu1 %v2447_v59  ;;  %v3380_v57 = vld [vmem:[%s4244_s1 + $0x250] sm:$0xff]  ;;  %v3371_v58 = vld [vmem:[%s4244_s1 + $0x208] sm:$0xff] }
  0x3f   : > { %v3379_v59 = vld [vmem:[%s4244_s1 + $0x248] sm:$0xff] }
  0x40   : > { %1828 = vmatpush.bf16.msrb.mxu2 %v3324_v60  ;;  %v3354_v60 = vld [vmem:[%s4244_s1 + $0x180] sm:$0xff]  ;;  %v3415_v37 = vld [vmem:[%s4244_s1 + $0x368] sm:$0xff] }
  0x41   : > { %1857 = vmatpush.bf16.msrb.mxu3 %v3332_v61  ;;  %1915 = vmatpush.bf16.msrb.mxu1 %v3348_v62  ;;  %v3362_v61 = vld [vmem:[%s4244_s1 + $0x1c0] sm:$0xff] }
  0x42   : > { %1886 = vmatpush.bf16.msrb.mxu0 %v3340_v63  ;;  %v3370_v62 = vld [vmem:[%s4244_s1 + $0x200] sm:$0xff]  ;;  %v2522_v63 = vld [vmem:[%s3560_s20 + $0x128] sm:$0xf] }
  0x44   : > { %1829 = vmatpush.bf16.msrb.mxu2 %v3323_v0  ;;  %v3280_v0 = vld [vmem:[%s3560_s20 + $0x16c] sm:$0xf0] }
  0x45   : > { %1858 = vmatpush.bf16.msrb.mxu3 %v3331_v1  ;;  %1916 = vmatpush.bf16.msrb.mxu1 %v3347_v2  ;;  %v3271_v1 = vld [vmem:[%s3560_s20 + $0x12c] sm:$0xf]  ;;  %v2524_v2 = vld [vmem:[%s3560_s20 + $0x170] sm:$0xf0] }
  0x46   : > { %1887 = vmatpush.bf16.msrb.mxu0 %v3339_v3  ;;  %v2530_v3 = vld [vmem:[%s3560_s20 + $0x130] sm:$0xf]  ;;  %v2527_v8 = vor.u32 %v3271_v1, %v2524_v2 }
  0x48   : > { %1830 = vmatpush.bf16.msrb.mxu2 %v3322_v4  ;;  %v3281_v4 = vld [vmem:[%s3560_s20 + $0x174] sm:$0xf0] }
  0x49   : > { %1859 = vmatpush.bf16.msrb.mxu3 %v3330_v5  ;;  %1917 = vmatpush.bf16.msrb.mxu1 %v3346_v13  ;;  %v3272_v5 = vld [vmem:[%s3560_s20 + $0x134] sm:$0xf]  ;;  %v3401_v13 = vld [vmem:[%s4244_s1 + $0x2f8] sm:$0xff] }
  0x4a   : > { %1888 = vmatpush.bf16.msrb.mxu0 %v3338_v7  ;;  %v2523_v7 = vor.u32 %v3280_v0, %v2522_v63  ;;  %v3256_v63 = vld [vmem:[%s3560_s20 + $0xb4] sm:$0xf]  ;;  %v2476_v0 = vld [vmem:[%s3560_s20 + $0xf8] sm:$0xf0] }
  0x4b   : > { %1831 = vmatmul.bf16.vlgmr.msrb.gmra.mxu2 %v2379_v20  ;;  %v3289_v20 = vld [vmem:[%s3560_s20 + $0x1bc] sm:$0xf] }
  0x4c   : > { %1939 = vmatpush.bf16.msra.mxu2 %v3361_v9  ;;  %1860 = vmatmul.bf16.vlgmr.msrb.gmra.mxu3 %v2383_v21  ;;  %v2531_v9 = vor.u32 %v3281_v4, %v2530_v3  ;;  %v2596_v21 = vld [vmem:[%s3560_s20 + $0x200] sm:$0xf0]  ;;  %v2479_v4 = vor.u32 %v3256_v63, %v2476_v0 }
  0x4d   : > { %1968 = vmatpush.bf16.msra.mxu3 %v3369_v10  ;;  %2026 = vmatpush.bf16.msra.mxu1 %v3385_v16  ;;  %v2535_v10 = vor.u32 %v3272_v5, %v2532_v6  ;;  %v3400_v16 = vld [vmem:[%s4244_s1 + $0x2f0] sm:$0xff]  ;;  %v3413_v5 = vld [vmem:[%s4244_s1 + $0x358] sm:$0xff]  ;;  %v3387_v6 = vld [vmem:[%s4244_s1 + $0x288] sm:$0xff] }
  0x4e   : > { %1997 = vmatpush.bf16.msra.mxu0 %v3377_v19  ;;  %1918 = vmatmul.bf16.vlgmr.msrb.gmra.mxu1 %v2391_v24  ;;  %v3298_v19 = vld [vmem:[%s3560_s20 + $0x1fc] sm:$0xf0]  ;;  %v3290_v24 = vld [vmem:[%s3560_s20 + $0x1c4] sm:$0xf] }
  0x4f   : > { %1889 = vmatmul.bf16.vlgmr.msrb.gmra.mxu0 %v2387_v22  ;;  %v2602_v22 = vld [vmem:[%s3560_s20 + $0x1c0] sm:$0xf] }
  0x50   : > { %1940 = vmatpush.bf16.msra.mxu2 %v3360_v23  ;;  %v3299_v23 = vld [vmem:[%s3560_s20 + $0x204] sm:$0xf0] }
  0x51   : > { %1969 = vmatpush.bf16.msra.mxu3 %v3368_v25  ;;  %2027 = vmatpush.bf16.msra.mxu1 %v3384_v27  ;;  %v2604_v25 = vld [vmem:[%s3560_s20 + $0x208] sm:$0xf0]  ;;  %v2599_v27 = vor.u32 %v3289_v20, %v2596_v21 }
  0x52   : > { %1998 = vmatpush.bf16.msra.mxu0 %v3376_v26  ;;  %v2595_v26 = vor.u32 %v3298_v19, %v2594_v18  ;;  %v3283_v18 = vld [vmem:[%s3560_s20 + $0x184] sm:$0xf0]  ;;  %v3274_v19 = vld [vmem:[%s3560_s20 + $0x144] sm:$0xf]  ;;  %v2548_v20 = vld [vmem:[%s3560_s20 + $0x188] sm:$0xf0] }
  0x53   : > { %v3411_v21 = vld [vmem:[%s4244_s1 + $0x348] sm:$0xff] }
  0x54   : > { %1941 = vmatpush.bf16.msra.mxu2 %v3359_v28  ;;  %v2603_v28 = vor.u32 %v3299_v23, %v2602_v22 }
  0x55   : > { %1970 = vmatpush.bf16.msra.mxu3 %v3367_v29  ;;  %2028 = vmatpush.bf16.msra.mxu1 %v3383_v31  ;;  %v2607_v29 = vor.u32 %v3290_v24, %v2604_v25  ;;  %v3399_v31 = vld [vmem:[%s4244_s1 + $0x2e8] sm:$0xff]  ;;  %v3925_v24 = vld [vmem:[%s4245_s2] ss:$0 sm:$0xff] }
  0x56   : > { %1999 = vmatpush.bf16.msra.mxu0 %v3375_v30  ;;  %v3391_v30 = vld [vmem:[%s4244_s1 + $0x2a8] sm:$0xff] }
  0x58   : > { %1942 = vmatpush.bf16.msra.mxu2 %v3358_v32  ;;  %v3408_v32 = vld [vmem:[%s4244_s1 + $0x330] sm:$0xff] }
  0x59   : > { %1971 = vmatpush.bf16.msra.mxu3 %v3366_v33  ;;  %2029 = vmatpush.bf16.msra.mxu1 %v3382_v35  ;;  %v3416_v33 = vld [vmem:[%s4244_s1 + $0x370] sm:$0xff]  ;;  %v3398_v35 = vld [vmem:[%s4244_s1 + $0x2e0] sm:$0xff] }
  0x5a   : > { %2000 = vmatpush.bf16.msra.mxu0 %v3374_v34  ;;  %v3390_v34 = vld [vmem:[%s4244_s1 + $0x2a0] sm:$0xff] }
  0x5b   : > { %1836 = vmatmul.bf16.gmra.mxu2 %v2451_v48  ;;  %v2403_v48 = vor.u32 %v3247_v43, %v2402_v42  ;;  %v2610_v42 = vld [vmem:[%s3560_s20 + $0x1c8] sm:$0xf]  ;;  %v3424_v43 = vld [vmem:[%s4244_s1 + $0x3b0] sm:$0xff] }
  0x5c   : > { %1943 = vmatpush.bf16.msra.mxu2 %v3357_v41  ;;  %1865 = vmatmul.bf16.gmra.mxu3 %v2455_v49  ;;  %v2396_v41 = vld [vmem:[%s3560_s20 + $0x60] sm:$0xf0] }
  0x5d   : > { %1972 = vmatpush.bf16.msra.mxu3 %v3365_v44  ;;  %2030 = vmatpush.bf16.msra.mxu1 %v3381_v47  ;;  %v3238_v44 = vld [vmem:[%s3560_s20 + $0x24] sm:$0xf]  ;;  %v2399_v47 = vor.u32 %v3237_v40, %v2396_v41 }
  0x5e   : > { %2001 = vmatpush.bf16.msra.mxu0 %v3373_v46  ;;  %1923 = vmatmul.bf16.gmra.mxu1 %v2463_v52  ;;  %v2395_v46 = vor.u32 %v3246_v39, %v2394_v38  ;;  %v2407_v49 = vor.u32 %v3238_v44, %v2404_v45  ;;  %v3406_v52 = vld [vmem:[%s4244_s1 + $0x320] sm:$0xff]  ;;  %v3432_v44 = vld [vmem:[%s4244_s1 + $0x3f0] sm:$0xff]  ;;  %v3441_v45 = vld [vmem:[%s4244_s1 + $0x438] sm:$0xff] }
  0x5f   : > { %1894 = vmatmul.bf16.gmra.mxu0 %v2459_v50  ;;  %v3389_v50 = vld [vmem:[%s4244_s1 + $0x298] sm:$0xff] }
  0x60   : > { %1944 = vmatpush.bf16.msra.mxu2 %v3356_v51  ;;  %v3397_v51 = vld [vmem:[%s4244_s1 + $0x2d8] sm:$0xff] }
  0x61   : > { %1973 = vmatpush.bf16.msra.mxu3 %v3364_v53  ;;  %2031 = vmatpush.bf16.msra.mxu1 %v3380_v57  ;;  %v3414_v53 = vld [vmem:[%s4244_s1 + $0x360] sm:$0xff]  ;;  %v3255_v57 = vld [vmem:[%s3560_s20 + $0xac] sm:$0xf] }
  0x62   : > { %2002 = vmatpush.bf16.msra.mxu0 %v3372_v55  ;;  %v2466_v55 = vld [vmem:[%s3560_s20 + $0xa8] sm:$0xf] }
  0x64   : > { %1945 = vmatpush.bf16.msra.mxu2 %v3355_v54  ;;  %v3388_v54 = vld [vmem:[%s4244_s1 + $0x290] sm:$0xff] }
  0x65   : > { %1974 = vmatpush.bf16.msra.mxu3 %v3363_v56  ;;  %2032 = vmatpush.bf16.msra.mxu1 %v3379_v59  ;;  %v3264_v56 = vld [vmem:[%s3560_s20 + $0xec] sm:$0xf0] }
  0x66   : > { %2003 = vmatpush.bf16.msra.mxu0 %v3371_v58  ;;  %v2468_v58 = vld [vmem:[%s3560_s20 + $0xf0] sm:$0xf0]  ;;  %v2467_v1 = vor.u32 %v3264_v56, %v2466_v55  ;;  %v2620_v55 = vld [vmem:[%s3560_s20 + $0x218] sm:$0xf0] }
  0x67   : > { %v3396_v59 = vld [vmem:[%s4244_s1 + $0x2d0] sm:$0xff]  ;;  %v2471_v2 = vor.u32 %v3255_v57, %v2468_v58 }
  0x68   : > { %1946 = vmatpush.bf16.msra.mxu2 %v3354_v60  ;;  %v3405_v60 = vld [vmem:[%s4244_s1 + $0x318] sm:$0xff] }
  0x69   : > { %1975 = vmatpush.bf16.msra.mxu3 %v3362_v61  ;;  %2033 = vmatpush.bf16.msra.mxu1 %v3378_v11  ;;  %v2474_v61 = vld [vmem:[%s3560_s20 + $0xb0] sm:$0xf]  ;;  %v2538_v11 = vld [vmem:[%s3560_s20 + $0x138] sm:$0xf] }
  0x6a   : > { %2004 = vmatpush.bf16.msra.mxu0 %v3370_v62  ;;  %v3265_v62 = vld [vmem:[%s3560_s20 + $0xf4] sm:$0xf0] }
  0x6b   : > { %1841 = vmatmul.bf16.gmra.mxu2 %v2523_v7  ;;  %v2475_v3 = vor.u32 %v3265_v62, %v2474_v61  ;;  %v3395_v7 = vld [vmem:[%s4244_s1 + $0x2c8] sm:$0xff] }
  0x6c   : > { %1870 = vmatmul.bf16.gmra.mxu3 %v2527_v8  ;;  %2055 = vmatpush.bf16.msrb.mxu2 %v3393_v12  ;;  %v3404_v8 = vld [vmem:[%s4244_s1 + $0x310] sm:$0xff]  ;;  %v3282_v12 = vld [vmem:[%s3560_s20 + $0x17c] sm:$0xf0] }
  0x6d   : > { %2084 = vmatpush.bf16.msrb.mxu3 %v3401_v13  ;;  %2142 = vmatpush.bf16.msrb.mxu1 %v3417_v17  ;;  %v3273_v13 = vld [vmem:[%s3560_s20 + $0x13c] sm:$0xf]  ;;  %v2546_v17 = vld [vmem:[%s3560_s20 + $0x140] sm:$0xf]  ;;  %v2539_v22 = vor.u32 %v3282_v12, %v2538_v11 }
  0x6e   : > { %1928 = vmatmul.bf16.gmra.mxu1 %v2535_v10  ;;  %2113 = vmatpush.bf16.msrb.mxu0 %v3409_v15  ;;  %v3386_v10 = vld [vmem:[%s4244_s1 + $0x280] sm:$0xff]  ;;  %v2547_v25 = vor.u32 %v3283_v18, %v2546_v17 }
  0x6f   : > { %1899 = vmatmul.bf16.gmra.mxu0 %v2531_v9  ;;  %v3412_v9 = vld [vmem:[%s4244_s1 + $0x350] sm:$0xff]  ;;  %v3394_v15 = vld [vmem:[%s4244_s1 + $0x2c0] sm:$0xff] }
  0x70   : > { %2056 = vmatpush.bf16.msrb.mxu2 %v3392_v14  ;;  %v2540_v14 = vld [vmem:[%s3560_s20 + $0x180] sm:$0xf0] }
  0x71   : > { %2085 = vmatpush.bf16.msrb.mxu3 %v3400_v16  ;;  %2143 = vmatpush.bf16.msrb.mxu1 %v3416_v33  ;;  %v3403_v16 = vld [vmem:[%s4244_s1 + $0x308] sm:$0xff]  ;;  %v2543_v23 = vor.u32 %v3273_v13, %v2540_v14  ;;  %v3248_v14 = vld [vmem:[%s3560_s20 + $0x6c] sm:$0xf0]  ;;  %v3430_v17 = vld [vmem:[%s4244_s1 + $0x3e0] sm:$0xff] }
  0x72   : > { %2114 = vmatpush.bf16.msrb.mxu0 %v3408_v32  ;;  %v3425_v32 = vld [vmem:[%s4244_s1 + $0x3b8] sm:$0xff]  ;;  %v2410_v13 = vld [vmem:[%s3560_s20 + $0x28] sm:$0xf] }
  0x74   : > { %2057 = vmatpush.bf16.msrb.mxu2 %v3391_v30 }
  0x75   : > { %2086 = vmatpush.bf16.msrb.mxu3 %v3399_v31  ;;  %2144 = vmatpush.bf16.msrb.mxu1 %v3415_v37  ;;  %v3410_v31 = vld [vmem:[%s4244_s1 + $0x340] sm:$0xff] }
  0x76   : > { %2115 = vmatpush.bf16.msrb.mxu0 %v3407_v36 }
  0x78   : > { %2058 = vmatpush.bf16.msrb.mxu2 %v3390_v34  ;;  %v3433_v34 = vld [vmem:[%s4244_s1 + $0x3f8] sm:$0xff] }
  0x79   : > { %2087 = vmatpush.bf16.msrb.mxu3 %v3398_v35  ;;  %2145 = vmatpush.bf16.msrb.mxu1 %v3414_v53 }
  0x7a   : > { %2116 = vmatpush.bf16.msrb.mxu0 %v3406_v52 }
  0x7b   : > { %1846 = vmatmul.bf16.gmra.mxu2 %v2595_v26  ;;  %v3402_v26 = vld [vmem:[%s4244_s1 + $0x300] sm:$0xff] }
  0x7c   : > { %1875 = vmatmul.bf16.gmra.mxu3 %v2599_v27  ;;  %2059 = vmatpush.bf16.msrb.mxu2 %v3389_v50  ;;  %v2618_v50 = vld [vmem:[%s3560_s20 + $0x1d0] sm:$0xf] }
  0x7d   : > { %2088 = vmatpush.bf16.msrb.mxu3 %v3397_v51  ;;  %2146 = vmatpush.bf16.msrb.mxu1 %v3413_v5  ;;  %v3301_v51 = vld [vmem:[%s3560_s20 + $0x214] sm:$0xf0]  ;;  %v3440_v5 = vld [vmem:[%s4244_s1 + $0x430] sm:$0xff] }
  0x7e   : > { %1933 = vmatmul.bf16.gmra.mxu1 %v2607_v29  ;;  %2117 = vmatpush.bf16.msrb.mxu0 %v3405_v60 }
  0x7f   : > { %1904 = vmatmul.bf16.gmra.mxu0 %v2603_v28  ;;  %v2551_v28 = vor.u32 %v3274_v19, %v2548_v20  ;;  %v3239_v19 = vld [vmem:[%s3560_s20 + $0x2c] sm:$0xf]  ;;  %v2412_v20 = vld [vmem:[%s3560_s20 + $0x70] sm:$0xf0] }
  0x80   : > { %2060 = vmatpush.bf16.msrb.mxu2 %v3388_v54  ;;  %v3292_v54 = vld [vmem:[%s3560_s20 + $0x1d4] sm:$0xf] }
  0x81   : > { %2089 = vmatpush.bf16.msrb.mxu3 %v3396_v59  ;;  %2147 = vmatpush.bf16.msrb.mxu1 %v3412_v9  ;;  %v2619_v59 = vor.u32 %v3301_v51, %v2618_v50  ;;  %v2623_v62 = vor.u32 %v3292_v54, %v2620_v55  ;;  %v3266_v50 = vld [vmem:[%s3560_s20 + $0xfc] sm:$0xf0]  ;;  %v3257_v54 = vld [vmem:[%s3560_s20 + $0xbc] sm:$0xf]  ;;  %v2484_v55 = vld [vmem:[%s3560_s20 + $0x100] sm:$0xf0] }
  0x82   : > { %2118 = vmatpush.bf16.msrb.mxu0 %v3404_v8 }
  0x84   : > { %2061 = vmatpush.bf16.msrb.mxu2 %v3387_v6 }
  0x85   : > { %2090 = vmatpush.bf16.msrb.mxu3 %v3395_v7  ;;  %2148 = vmatpush.bf16.msrb.mxu1 %v3411_v21  ;;  %v3439_v21 = vld [vmem:[%s4244_s1 + $0x428] sm:$0xff] }
  0x86   : > { %2119 = vmatpush.bf16.msrb.mxu0 %v3403_v16  ;;  %v3422_v16 = vld [vmem:[%s4244_s1 + $0x3a0] sm:$0xff] }
  0x88   : > { %2062 = vmatpush.bf16.msrb.mxu2 %v3386_v10 }
  0x89   : > { %2091 = vmatpush.bf16.msrb.mxu3 %v3394_v15  ;;  %2149 = vmatpush.bf16.msrb.mxu1 %v3410_v31  ;;  %v3448_v15 = vld [vmem:[%s4244_s1 + $0x470] sm:$0xff]  ;;  %v2415_v31 = vor.u32 %v3239_v19, %v2412_v20 }
  0x8a   : > { %2120 = vmatpush.bf16.msrb.mxu0 %v3402_v26 }
  0x8b   : > { %1947 = vmatmul.bf16.vlgmr.msra.gmra.mxu2 %v2395_v46 }
  0x8c   : > { %1976 = vmatmul.bf16.vlgmr.msra.gmra.mxu3 %v2399_v47  ;;  %2171 = vmatpush.bf16.msra.mxu2 %v3425_v32  ;;  %v3300_v47 = vld [vmem:[%s3560_s20 + $0x20c] sm:$0xf0] }
  0x8d   : > { %2200 = vmatpush.bf16.msra.mxu3 %v3433_v34  ;;  %v2611_v57 = vor.u32 %v3300_v47, %v2610_v42 }
  0x8e   : > { %2034 = vmatmul.bf16.vlgmr.msra.gmra.mxu1 %v2407_v49  ;;  %v2612_v49 = vld [vmem:[%s3560_s20 + $0x210] sm:$0xf0] }
  0x8f   : > { %2005 = vmatmul.bf16.vlgmr.msra.gmra.mxu0 %v2403_v48  ;;  %v3291_v48 = vld [vmem:[%s3560_s20 + $0x1cc] sm:$0xf] }
  0x90   : > { %2172 = vmatpush.bf16.msra.mxu2 %v3424_v43  ;;  %2229 = vmatpush.bf16.msra.mxu0 %v3441_v45  ;;  %v2615_v58 = vor.u32 %v3291_v48, %v2612_v49  ;;  %v2482_v49 = vld [vmem:[%s3560_s20 + $0xb8] sm:$0xf] }
  0x91   : > { %2201 = vmatpush.bf16.msra.mxu3 %v3432_v44 }
  0x94   : > { %2230 = vmatpush.bf16.msra.mxu0 %v3440_v5 }
  0x98   : > { %2231 = vmatpush.bf16.msra.mxu0 %v3439_v21 }
  0x9b   : > { %1952 = vmatmul.bf16.gmra.mxu2 %v2467_v1  ;;  %v3449_v1 = vld [vmem:[%s4244_s1 + $0x478] sm:$0xff] }
  0x9c   : > { %1981 = vmatmul.bf16.gmra.mxu3 %v2471_v2  ;;  %v3423_v2 = vld [vmem:[%s4244_s1 + $0x3a8] sm:$0xff]  ;;  %2258 = vmatpush.bf16.msra.mxu1 %v3449_v1 }
  0x9d   : > { %2173 = vmatpush.bf16.msra.mxu2 %v3423_v2  ;;  %v2483_v2 = vor.u32 %v3266_v50, %v2482_v49 }
  0x9e   : > { %2039 = vmatmul.bf16.gmra.mxu1 %v2479_v4  ;;  %v3431_v4 = vld [vmem:[%s4244_s1 + $0x3e8] sm:$0xff] }
  0x9f   : > { %2010 = vmatmul.bf16.gmra.mxu0 %v2475_v3  ;;  %2202 = vmatpush.bf16.msra.mxu3 %v3431_v4  ;;  %v2487_v4 = vor.u32 %v3257_v54, %v2484_v55 }
  0xa0   : > { %2259 = vmatpush.bf16.msra.mxu1 %v3448_v15 }
  0xa1   : > { %2174 = vmatpush.bf16.msra.mxu2 %v3422_v16 }
  0xa3   : > { %2203 = vmatpush.bf16.msra.mxu3 %v3430_v17 }
  0xa8   : > { %v1774_v27 = vpop.f32.mrf.mxu0 }
  0xa9   : > { %v1775_v29 = vadd.f32 %v3925_v24, %v1774_v27  ;;  %v3240_v27 = vld [vmem:[%s3560_s20 + $0x34] sm:$0xf] }
  0xab   : > { %v1803_v30 = vpop.f32.mrf.mxu1  ;;  %1957 = vmatmul.bf16.gmra.mxu2 %v2539_v22  ;;  %v2418_v22 = vld [vmem:[%s3560_s20 + $0x30] sm:$0xf] }
  0xac   : > { %1986 = vmatmul.bf16.gmra.mxu3 %v2543_v23  ;;  %v3937_v33 = vadd.f32 %v1803_v30, %v1775_v29  ;;  %v3249_v23 = vld [vmem:[%s3560_s20 + $0x74] sm:$0xf0]  ;;  %v2411_v30 = vor.u32 %v3248_v14, %v2410_v13  ;;  %v3419_v13 = vld [vmem:[%s4244_s1 + $0x388] sm:$0xff]  ;;  %v3436_v14 = vld [vmem:[%s4244_s1 + $0x410] sm:$0xff] }
  0xad   : > { %v2419_v32 = vor.u32 %v3249_v23, %v2418_v22  ;;  %v2554_v23 = vld [vmem:[%s3560_s20 + $0x148] sm:$0xf] }
  0xae   : > { %2044 = vmatmul.bf16.gmra.mxu1 %v2551_v28  ;;  %v1784_v35 = vpop.f32.mrf.mxu2  ;;  %v2420_v28 = vld [vmem:[%s3560_s20 + $0x78] sm:$0xf0] }
  0xaf   : > { %2015 = vmatmul.bf16.gmra.mxu0 %v2547_v25  ;;  %v1813_v36 = vpop.f32.mrf.mxu3  ;;  %v1785_v37 = vadd.f32 %v3925_v24, %v1784_v35 }
  0xb0   : > { %v1776_v39 = vpop.f32.mrf.mxu0 }
  0xb1   : > { %v3943_v38 = vadd.f32 %v1813_v36, %v1785_v37  ;;  %v1777_v40 = vadd.f32 %v3925_v24, %v1776_v39  ;;  %v2423_v36 = vor.u32 %v3240_v27, %v2420_v28  ;;  %v3447_v39 = vld [vmem:[%s4244_s1 + $0x468] sm:$0xff]  ;;  %v3418_v27 = vld [vmem:[%s4244_s1 + $0x380] sm:$0xff] }
  0xb2   : > { %2260 = vmatpush.bf16.msra.mxu1 %v3447_v39  ;;  %v3435_v28 = vld [vmem:[%s4244_s1 + $0x408] sm:$0xff] }
  0xb3   : > { %v1805_v41 = vpop.f32.mrf.mxu1 }
  0xb4   : > { %v3956_v46 = vadd.f32 %v1805_v41, %v1777_v40  ;;  %v3421_v40 = vld [vmem:[%s4244_s1 + $0x398] sm:$0xff]  ;;  %v3438_v41 = vld [vmem:[%s4244_s1 + $0x420] sm:$0xff] }
  0xb5   : > { %2175 = vmatpush.bf16.msra.mxu2 %v3421_v40  ;;  %2232 = vmatpush.bf16.msra.mxu0 %v3438_v41  ;;  %v3276_v40 = vld [vmem:[%s3560_s20 + $0x154] sm:$0xf]  ;;  %v3443_v41 = vld [vmem:[%s4244_s1 + $0x448] sm:$0xff] }
  0xb6   : > { %v1786_v52 = vpop.f32.mrf.mxu2 }
  0xb7   : > { %v1815_v53 = vpop.f32.mrf.mxu3  ;;  %v1787_v56 = vadd.f32 %v3925_v24, %v1786_v52  ;;  %v3446_v52 = vld [vmem:[%s4244_s1 + $0x460] sm:$0xff] }
  0xb8   : > { %v1779_v61 = vpop.f32.mrf.mxu0  ;;  %2261 = vmatpush.bf16.msra.mxu1 %v3446_v52  ;;  %v3442_v52 = vld [vmem:[%s4244_s1 + $0x440] sm:$0xff] }
  0xb9   : > { %v3966_v60 = vadd.f32 %v1815_v53, %v1787_v56  ;;  %v1780_v63 = vadd.f32 %v3925_v24, %v1779_v61  ;;  %v3420_v53 = vld [vmem:[%s4244_s1 + $0x390] sm:$0xff]  ;;  %v3437_v56 = vld [vmem:[%s4244_s1 + $0x418] sm:$0xff] }
  0xba   : > { %2176 = vmatpush.bf16.msra.mxu2 %v3420_v53  ;;  %2233 = vmatpush.bf16.msra.mxu0 %v3437_v56 }
  0xbb   : > { %v1808_v0 = vpop.f32.mrf.mxu1  ;;  %1962 = vmatmul.bf16.gmra.mxu2 %v2611_v57  ;;  %v2490_v57 = vld [vmem:[%s3560_s20 + $0xc0] sm:$0xf] }
  0xbc   : > { %1991 = vmatmul.bf16.gmra.mxu3 %v2615_v58  ;;  %v3975_v3 = vadd.f32 %v1808_v0, %v1780_v63  ;;  %v3267_v58 = vld [vmem:[%s3560_s20 + $0x104] sm:$0xf0]  ;;  %v3258_v63 = vld [vmem:[%s3560_s20 + $0xc4] sm:$0xf]  ;;  %v2492_v0 = vld [vmem:[%s3560_s20 + $0x108] sm:$0xf0] }
  0xbd   : > { %v2491_v5 = vor.u32 %v3267_v58, %v2490_v57 }
  0xbe   : > { %2049 = vmatmul.bf16.gmra.mxu1 %v2623_v62  ;;  %v1789_v6 = vpop.f32.mrf.mxu2  ;;  %2177 = vmatpush.bf16.msra.mxu2 %v3419_v13 }
  0xbf   : > { %2020 = vmatmul.bf16.gmra.mxu0 %v2619_v59  ;;  %v1818_v7 = vpop.f32.mrf.mxu3  ;;  %v1790_v8 = vadd.f32 %v3925_v24, %v1789_v6 }
  0xc0   : > { %v1781_v10 = vpop.f32.mrf.mxu0  ;;  %2234 = vmatpush.bf16.msra.mxu0 %v3436_v14 }
  0xc1   : > { %v3984_v9 = vadd.f32 %v1818_v7, %v1790_v8  ;;  %v1782_v11 = vadd.f32 %v3925_v24, %v1781_v10  ;;  %v2495_v8 = vor.u32 %v3258_v63, %v2492_v0  ;;  %v3302_v63 = vld [vmem:[%s3560_s20 + $0x21c] sm:$0xf0]  ;;  %v3293_v0 = vld [vmem:[%s3560_s20 + $0x1dc] sm:$0xf] }
  0xc2   : > { %2178 = vmatpush.bf16.msra.mxu2 %v3418_v27 }
  0xc3   : > { %v1810_v12 = vpop.f32.mrf.mxu1 }
  0xc4   : > { %v3998_v18 = vadd.f32 %v1810_v12, %v1782_v11  ;;  %v3445_v12 = vld [vmem:[%s4244_s1 + $0x458] sm:$0xff]  ;;  %2235 = vmatpush.bf16.msra.mxu0 %v3435_v28  ;;  %v3250_v28 = vld [vmem:[%s3560_s20 + $0x7c] sm:$0xf0] }
  0xc5   : > { %2262 = vmatpush.bf16.msra.mxu1 %v3445_v12 }
  0xc6   : > { %v1791_v25 = vpop.f32.mrf.mxu2 }
  0xc7   : > { %v1820_v26 = vpop.f32.mrf.mxu3  ;;  %v1792_v29 = vadd.f32 %v3925_v24, %v1791_v25  ;;  %v3429_v24 = vld [vmem:[%s4244_s1 + $0x3d8] sm:$0xff]  ;;  %v3444_v25 = vld [vmem:[%s4244_s1 + $0x450] sm:$0xff] }
  0xc8   : > { %2204 = vmatpush.bf16.msra.mxu3 %v3429_v24  ;;  %v2564_v24 = vld [vmem:[%s3560_s20 + $0x198] sm:$0xf0] }
  0xc9   : > { %v4010_v34 = vadd.f32 %v1820_v26, %v1792_v29  ;;  %v3284_v29 = vld [vmem:[%s3560_s20 + $0x18c] sm:$0xf0]  ;;  %2263 = vmatpush.bf16.msra.mxu1 %v3444_v25  ;;  %v2567_v50 = vor.u32 %v3276_v40, %v2564_v24  ;;  %v3242_v40 = vld [vmem:[%s3560_s20 + $0x44] sm:$0xf]  ;;  %v2436_v24 = vld [vmem:[%s3560_s20 + $0x88] sm:$0xf0] }
  0xcb   : > { %v1919_v37 = vpop.f32.mrf.mxu1  ;;  %2063 = vmatmul.bf16.vlgmr.msrb.gmra.mxu2 %v2411_v30  ;;  %v3275_v30 = vld [vmem:[%s3560_s20 + $0x14c] sm:$0xf] }
  0xcc   : > { %v1890_v35 = vpop.f32.mrf.mxu0  ;;  %2092 = vmatmul.bf16.vlgmr.msrb.gmra.mxu3 %v2415_v31  ;;  %v2556_v31 = vld [vmem:[%s3560_s20 + $0x190] sm:$0xf0] }
  0xcd   : > { %2264 = vmatpush.bf16.msra.mxu1 %v3443_v41 }
  0xce   : > { %2150 = vmatmul.bf16.vlgmr.msrb.gmra.mxu1 %v2423_v36  ;;  %v1832_v42 = vpop.f32.mrf.mxu2 }
  0xcf   : > { %2121 = vmatmul.bf16.vlgmr.msrb.gmra.mxu0 %v2419_v32  ;;  %v1861_v43 = vpop.f32.mrf.mxu3  ;;  %v1833_v44 = vadd.f32 %v1832_v42, %v3937_v33  ;;  %v3428_v33 = vld [vmem:[%s4244_s1 + $0x3d0] sm:$0xff] }
  0xd0   : > { %2205 = vmatpush.bf16.msra.mxu3 %v3428_v33  ;;  %v2562_v32 = vld [vmem:[%s3560_s20 + $0x150] sm:$0xf] }
  0xd1   : > { %v1862_v45 = vadd.f32 %v1861_v43, %v1833_v44  ;;  %v2555_v43 = vor.u32 %v3284_v29, %v2554_v23  ;;  %v2559_v44 = vor.u32 %v3275_v30, %v2556_v31  ;;  %2265 = vmatpush.bf16.msra.mxu1 %v3442_v52  ;;  %v3241_v29 = vld [vmem:[%s3560_s20 + $0x3c] sm:$0xf]  ;;  %v2428_v30 = vld [vmem:[%s3560_s20 + $0x80] sm:$0xf0]  ;;  %v2434_v31 = vld [vmem:[%s3560_s20 + $0x40] sm:$0xf] }
  0xd3   : > { %v1921_v48 = vpop.f32.mrf.mxu1  ;;  %v1891_v51 = vadd.f32 %v1890_v35, %v1862_v45  ;;  %v3285_v35 = vld [vmem:[%s3560_s20 + $0x194] sm:$0xf0] }
  0xd4   : > { %v1892_v47 = vpop.f32.mrf.mxu0  ;;  %v2563_v45 = vor.u32 %v3285_v35, %v2562_v32  ;;  %v3251_v32 = vld [vmem:[%s3560_s20 + $0x84] sm:$0xf0] }
  0xd5   : > { %v4043_v59 = vadd.f32 %v1919_v37, %v1891_v51 }
  0xd6   : > { %v1834_v61 = vpop.f32.mrf.mxu2 }
  0xd7   : > { %v1863_v62 = vpop.f32.mrf.mxu3  ;;  %v1835_v1 = vadd.f32 %v1834_v61, %v3956_v46  ;;  %v3427_v46 = vld [vmem:[%s4244_s1 + $0x3c8] sm:$0xff] }
  0xd8   : > { %2206 = vmatpush.bf16.msra.mxu3 %v3427_v46 }
  0xd9   : > { %v1864_v6 = vadd.f32 %v1863_v62, %v1835_v1  ;;  %v2626_v62 = vld [vmem:[%s3560_s20 + $0x1d8] sm:$0xf]  ;;  %v2628_v1 = vld [vmem:[%s3560_s20 + $0x220] sm:$0xf0] }
  0xda   : > { %v2627_v12 = vor.u32 %v3302_v63, %v2626_v62  ;;  %v2506_v62 = vld [vmem:[%s3560_s20 + $0xd0] sm:$0xf]  ;;  %v3269_v63 = vld [vmem:[%s3560_s20 + $0x114] sm:$0xf0] }
  0xdb   : > { %v1924_v10 = vpop.f32.mrf.mxu1  ;;  %v1893_v11 = vadd.f32 %v1892_v47, %v1864_v6  ;;  %2068 = vmatmul.bf16.gmra.mxu2 %v2483_v2  ;;  %v3434_v47 = vld [vmem:[%s4244_s1 + $0x400] sm:$0xff] }
  0xdc   : > { %v1895_v7 = vpop.f32.mrf.mxu0  ;;  %2097 = vmatmul.bf16.gmra.mxu3 %v2487_v4  ;;  %2236 = vmatpush.bf16.msra.mxu0 %v3434_v47  ;;  %v2634_v2 = vld [vmem:[%s3560_s20 + $0x1e0] sm:$0xf]  ;;  %v3303_v4 = vld [vmem:[%s3560_s20 + $0x224] sm:$0xf0]  ;;  %v2439_v47 = vor.u32 %v3242_v40, %v2436_v24 }
  0xdd   : > { %v4060_v15 = vadd.f32 %v1921_v48, %v1893_v11  ;;  %v2635_v13 = vor.u32 %v3303_v4, %v2634_v2  ;;  %v3260_v4 = vld [vmem:[%s3560_s20 + $0xd4] sm:$0xf] }
  0xde   : > { %2155 = vmatmul.bf16.gmra.mxu1 %v2495_v8  ;;  %v1837_v16 = vpop.f32.mrf.mxu2  ;;  %v3294_v8 = vld [vmem:[%s3560_s20 + $0x1e4] sm:$0xf] }
  0xdf   : > { %2126 = vmatmul.bf16.gmra.mxu0 %v2491_v5  ;;  %v1866_v17 = vpop.f32.mrf.mxu3  ;;  %v1838_v19 = vadd.f32 %v1837_v16, %v3975_v3  ;;  %v3426_v3 = vld [vmem:[%s4244_s1 + $0x3c0] sm:$0xff] }
  0xe0   : > { %2207 = vmatpush.bf16.msra.mxu3 %v3426_v3  ;;  %v2426_v3 = vld [vmem:[%s3560_s20 + $0x38] sm:$0xf] }
  0xe1   : > { %v1867_v20 = vadd.f32 %v1866_v17, %v1838_v19 }
  0xe3   : > { %v1926_v22 = vpop.f32.mrf.mxu1  ;;  %v1896_v26 = vadd.f32 %v1895_v7, %v1867_v20 }
  0xe4   : > { %v1897_v21 = vpop.f32.mrf.mxu0 }
  0xe5   : > { %v4081_v36 = vadd.f32 %v1924_v10, %v1896_v26  ;;  %v2636_v10 = vld [vmem:[%s3560_s20 + $0x228] sm:$0xf0] }
  0xe6   : > { %v1839_v37 = vpop.f32.mrf.mxu2  ;;  %v2639_v16 = vor.u32 %v3294_v8, %v2636_v10  ;;  %v2507_v10 = vor.u32 %v3269_v63, %v2506_v62  ;;  %v3296_v63 = vld [vmem:[%s3560_s20 + $0x1f4] sm:$0xf] }
  0xe7   : > { %v1868_v39 = vpop.f32.mrf.mxu3  ;;  %v1840_v42 = vadd.f32 %v1839_v37, %v3998_v18 }
  0xe9   : > { %v1869_v48 = vadd.f32 %v1868_v39, %v1840_v42  ;;  %v2427_v42 = vor.u32 %v3250_v28, %v2426_v3  ;;  %v2578_v3 = vld [vmem:[%s3560_s20 + $0x160] sm:$0xf]  ;;  %v3287_v28 = vld [vmem:[%s3560_s20 + $0x1a4] sm:$0xf0] }
  0xea   : > { %v2579_v24 = vor.u32 %v3287_v28, %v2578_v3 }
  0xeb   : > { %v1929_v51 = vpop.f32.mrf.mxu1  ;;  %v1898_v18 = vadd.f32 %v1897_v21, %v1869_v48  ;;  %2073 = vmatmul.bf16.gmra.mxu2 %v2555_v43  ;;  %v2435_v43 = vor.u32 %v3251_v32, %v2434_v31  ;;  %v3278_v32 = vld [vmem:[%s3560_s20 + $0x164] sm:$0xf] }
  0xec   : > { %v1900_v49 = vpop.f32.mrf.mxu0  ;;  %2102 = vmatmul.bf16.gmra.mxu3 %v2559_v44 }
  0xed   : > { %v4095_v53 = vadd.f32 %v1926_v22, %v1898_v18 }
  0xee   : > { %2160 = vmatmul.bf16.gmra.mxu1 %v2567_v50  ;;  %v1842_v33 = vpop.f32.mrf.mxu2 }
  0xef   : > { %2131 = vmatmul.bf16.gmra.mxu0 %v2563_v45  ;;  %v1871_v54 = vpop.f32.mrf.mxu3  ;;  %v1843_v55 = vadd.f32 %v1842_v33, %v3943_v38  ;;  %v2631_v38 = vor.u32 %v3293_v0, %v2628_v1 }
  0xf1   : > { %v1872_v56 = vadd.f32 %v1871_v54, %v1843_v55 }
  0xf3   : > { %v1931_v58 = vpop.f32.mrf.mxu1  ;;  %v1901_v61 = vadd.f32 %v1900_v49, %v1872_v56  ;;  %v2498_v56 = vld [vmem:[%s3560_s20 + $0xc8] sm:$0xf] }
  0xf4   : > { %v1902_v57 = vpop.f32.mrf.mxu0 }
  0xf5   : > { %v4104_v5 = vadd.f32 %v1929_v51, %v1901_v61  ;;  %v2500_v61 = vld [vmem:[%s3560_s20 + $0x110] sm:$0xf0] }
  0xf6   : > { %v1844_v6 = vpop.f32.mrf.mxu2 }
  0xf7   : > { %v1873_v7 = vpop.f32.mrf.mxu3  ;;  %v1845_v11 = vadd.f32 %v1844_v6, %v3966_v60  ;;  %v2508_v6 = vld [vmem:[%s3560_s20 + $0x118] sm:$0xf0] }
  0xf9   : > { %v1874_v46 = vadd.f32 %v1873_v7, %v1845_v11 }
  0xfb   : > { %v1934_v17 = vpop.f32.mrf.mxu1  ;;  %v1903_v19 = vadd.f32 %v1902_v57, %v1874_v46  ;;  %2078 = vmatmul.bf16.gmra.mxu2 %v2627_v12  ;;  %v3268_v57 = vld [vmem:[%s3560_s20 + $0x10c] sm:$0xf0] }
  0xfc   : > { %v1905_v14 = vpop.f32.mrf.mxu0  ;;  %2107 = vmatmul.bf16.gmra.mxu3 %v2631_v38  ;;  %v2499_v8 = vor.u32 %v3268_v57, %v2498_v56  ;;  %v2511_v38 = vor.u32 %v3260_v4, %v2508_v6  ;;  %v2650_v56 = vld [vmem:[%s3560_s20 + $0x1f0] sm:$0xf]  ;;  %v3305_v57 = vld [vmem:[%s3560_s20 + $0x234] sm:$0xf0] }
  0xfd   : > { %v4109_v20 = vadd.f32 %v1931_v58, %v1903_v19  ;;  %v3259_v58 = vld [vmem:[%s3560_s20 + $0xcc] sm:$0xf]  ;;  %v2651_v6 = vor.u32 %v3305_v57, %v2650_v56 }
  0xfe   : > { %2165 = vmatmul.bf16.gmra.mxu1 %v2639_v16  ;;  %v1847_v60 = vpop.f32.mrf.mxu2 }
  0xff   : > { %2136 = vmatmul.bf16.gmra.mxu0 %v2635_v13  ;;  %v1876_v21 = vpop.f32.mrf.mxu3  ;;  %v1848_v22 = vadd.f32 %v1847_v60, %v3984_v9  ;;  %v2431_v9 = vor.u32 %v3241_v29, %v2428_v30 }
 0x101   : > { %v1877_v23 = vadd.f32 %v1876_v21, %v1848_v22 }
 0x103   : > { %v1936_v26 = vpop.f32.mrf.mxu1  ;;  %v1906_v27 = vadd.f32 %v1905_v14, %v1877_v23  ;;  %v2570_v23 = vld [vmem:[%s3560_s20 + $0x158] sm:$0xf] }
 0x104   : > { %v1907_v25 = vpop.f32.mrf.mxu0 }
 0x105   : > { %v4118_v35 = vadd.f32 %v1934_v17, %v1906_v27  ;;  %v2572_v27 = vld [vmem:[%s3560_s20 + $0x1a0] sm:$0xf0] }
 0x106   : > { %v1849_v37 = vpop.f32.mrf.mxu2 }
 0x107   : > { %v1878_v39 = vpop.f32.mrf.mxu3  ;;  %v1850_v41 = vadd.f32 %v1849_v37, %v4010_v34  ;;  %v2580_v37 = vld [vmem:[%s3560_s20 + $0x1a8] sm:$0xf0] }
 0x109   : > { %v1879_v44 = vadd.f32 %v1878_v39, %v1850_v41 }
 0x10b   : > { %v2035_v48 = vpop.f32.mrf.mxu1  ;;  %v1908_v49 = vadd.f32 %v1907_v25, %v1879_v44  ;;  %2179 = vmatmul.bf16.vlgmr.msra.gmra.mxu2 %v2427_v42  ;;  %v3286_v25 = vld [vmem:[%s3560_s20 + $0x19c] sm:$0xf0] }
 0x10c   : > { %v2006_v45 = vpop.f32.mrf.mxu0  ;;  %2208 = vmatmul.bf16.vlgmr.msra.gmra.mxu3 %v2431_v9  ;;  %v2571_v40 = vor.u32 %v3286_v25, %v2570_v23  ;;  %v2583_v9 = vor.u32 %v3278_v32, %v2580_v37 }
 0x10d   : > { %v4123_v50 = vadd.f32 %v1936_v26, %v1908_v49  ;;  %v3277_v26 = vld [vmem:[%s3560_s20 + $0x15c] sm:$0xf] }
 0x10e   : > { %2266 = vmatmul.bf16.vlgmr.msra.gmra.mxu1 %v2439_v47  ;;  %v1948_v34 = vpop.f32.mrf.mxu2 }
 0x10f   : > { %2237 = vmatmul.bf16.vlgmr.msra.gmra.mxu0 %v2435_v43  ;;  %v1977_v51 = vpop.f32.mrf.mxu3  ;;  %v1949_v52 = vadd.f32 %v1948_v34, %v4043_v59  ;;  %v2503_v59 = vor.u32 %v3259_v58, %v2500_v61 }
 0x111   : > { %v1978_v18 = vadd.f32 %v1977_v51, %v1949_v52 }
 0x113   : > { %v2037_v54 = vpop.f32.mrf.mxu1  ;;  %v2007_v55 = vadd.f32 %v2006_v45, %v1978_v18  ;;  %v2642_v18 = vld [vmem:[%s3560_s20 + $0x1e8] sm:$0xf] }
 0x114   : > { %v2008_v33 = vpop.f32.mrf.mxu0 }
 0x115   : > { %v4132_v0 = vadd.f32 %v2035_v48, %v2007_v55  ;;  %v2644_v55 = vld [vmem:[%s3560_s20 + $0x230] sm:$0xf0] }
 0x116   : > { %v1950_v1 = vpop.f32.mrf.mxu2 }
 0x117   : > { %v1979_v2 = vpop.f32.mrf.mxu3  ;;  %v1951_v7 = vadd.f32 %v1950_v1, %v4060_v15  ;;  %v2652_v1 = vld [vmem:[%s3560_s20 + $0x238] sm:$0xf0] }
 0x119   : > { %v1980_v11 = vadd.f32 %v1979_v2, %v1951_v7 }
 0x11b   : > { %v2040_v13 = vpop.f32.mrf.mxu1  ;;  %v2009_v46 = vadd.f32 %v2008_v33, %v1980_v11  ;;  %2184 = vmatmul.bf16.gmra.mxu2 %v2499_v8  ;;  %v3304_v33 = vld [vmem:[%s3560_s20 + $0x22c] sm:$0xf0] }
 0x11c   : > { %v2011_v12 = vpop.f32.mrf.mxu0  ;;  %2213 = vmatmul.bf16.gmra.mxu3 %v2503_v59  ;;  %v2643_v4 = vor.u32 %v3304_v33, %v2642_v18  ;;  %v2655_v59 = vor.u32 %v3296_v63, %v2652_v1 }
 0x11d   : > { %v4137_v14 = vadd.f32 %v2037_v54, %v2009_v46  ;;  %v3295_v54 = vld [vmem:[%s3560_s20 + $0x1ec] sm:$0xf]  ;;  %s2367_s20 = sshll.u32 %s4248_s26, 3 }
 0x11e   : > { %2271 = vmatmul.bf16.gmra.mxu1 %v2511_v38  ;;  %v1953_v15 = vpop.f32.mrf.mxu2  ;;  %s4210_s21 = scalar_lea.vmem %s4246_s3, %s2367_s20 }
 0x11f   : > { %2242 = vmatmul.bf16.gmra.mxu0 %v2507_v10  ;;  %v1982_v16 = vpop.f32.mrf.mxu3  ;;  %v1954_v17 = vadd.f32 %v1953_v15, %v4081_v36  ;;  %v2575_v36 = vor.u32 %v3277_v26, %v2572_v27 }
 0x121   : > { %v1983_v19 = vadd.f32 %v1982_v16, %v1954_v17 }
 0x123   : > { %v2042_v21 = vpop.f32.mrf.mxu1  ;;  %v2012_v22 = vadd.f32 %v2011_v12, %v1983_v19 }
 0x124   : > { %v2013_v60 = vpop.f32.mrf.mxu0 }
 0x125   : > { %v4146_v29 = vadd.f32 %v2040_v13, %v2012_v22 }
 0x126   : > { %v1955_v30 = vpop.f32.mrf.mxu2 }
 0x127   : > { %v1984_v31 = vpop.f32.mrf.mxu3  ;;  %v1956_v39 = vadd.f32 %v1955_v30, %v4095_v53 }
 0x129   : > { %v1985_v41 = vadd.f32 %v1984_v31, %v1956_v39 }
 0x12b   : > { %v2045_v43 = vpop.f32.mrf.mxu1  ;;  %v2014_v44 = vadd.f32 %v2013_v60, %v1985_v41  ;;  %2189 = vmatmul.bf16.gmra.mxu2 %v2571_v40 }
 0x12c   : > { %v2016_v42 = vpop.f32.mrf.mxu0  ;;  %2218 = vmatmul.bf16.gmra.mxu3 %v2575_v36 }
 0x12d   : > { %v4151_v45 = vadd.f32 %v2042_v21, %v2014_v44 }
 0x12e   : > { %2276 = vmatmul.bf16.gmra.mxu1 %v2583_v9  ;;  %v1958_v53 = vpop.f32.mrf.mxu2 }
 0x12f   : > { %2247 = vmatmul.bf16.gmra.mxu0 %v2579_v24  ;;  %v1987_v47 = vpop.f32.mrf.mxu3  ;;  %v1959_v48 = vadd.f32 %v1958_v53, %v4104_v5  ;;  %v2647_v5 = vor.u32 %v3295_v54, %v2644_v55 }
 0x131   : > { %v1988_v49 = vadd.f32 %v1987_v47, %v1959_v48 }
 0x133   : > { %v2047_v51 = vpop.f32.mrf.mxu1  ;;  %v2017_v52 = vadd.f32 %v2016_v42, %v1988_v49 }
 0x134   : > { %v2018_v34 = vpop.f32.mrf.mxu0 }
 0x135   : > { %v4160_v58 = vadd.f32 %v2045_v43, %v2017_v52 }
 0x136   : > { %v1960_v61 = vpop.f32.mrf.mxu2 }
 0x137   : > { %v1989_v62 = vpop.f32.mrf.mxu3  ;;  %v1961_v2 = vadd.f32 %v1960_v61, %v4109_v20 }
 0x139   : > { %v1990_v7 = vadd.f32 %v1989_v62, %v1961_v2 }
 0x13b   : > { %v2050_v10 = vpop.f32.mrf.mxu1  ;;  %v2019_v11 = vadd.f32 %v2018_v34, %v1990_v7  ;;  %2194 = vmatmul.bf16.gmra.mxu2 %v2643_v4 }
 0x13c   : > { %v2021_v8 = vpop.f32.mrf.mxu0  ;;  %2223 = vmatmul.bf16.gmra.mxu3 %v2647_v5 }
 0x13d   : > { %v4165_v12 = vadd.f32 %v2047_v51, %v2019_v11 }
 0x13e   : > { %2281 = vmatmul.bf16.gmra.mxu1 %v2655_v59  ;;  %v1963_v38 = vpop.f32.mrf.mxu2 }
 0x13f   : > { %2252 = vmatmul.bf16.gmra.mxu0 %v2651_v6  ;;  %v1992_v13 = vpop.f32.mrf.mxu3  ;;  %v1964_v46 = vadd.f32 %v1963_v38, %v4118_v35 }
 0x141   : > { %v1993_v15 = vadd.f32 %v1992_v13, %v1964_v46 }
 0x143   : > { %v2052_v16 = vpop.f32.mrf.mxu1  ;;  %v2022_v17 = vadd.f32 %v2021_v8, %v1993_v15 }
 0x144   : > { %v2023_v20 = vpop.f32.mrf.mxu0 }
 0x145   : > { %v4168_v19 = vadd.f32 %v2050_v10, %v2022_v17 }
 0x146   : > { %v1965_v60 = vpop.f32.mrf.mxu2 }
 0x147   : > { %v1994_v21 = vpop.f32.mrf.mxu3  ;;  %v1966_v22 = vadd.f32 %v1965_v60, %v4123_v50 }
 0x149   : > { %v1995_v23 = vadd.f32 %v1994_v21, %v1966_v22 }
 0x14b   : > { %v2151_v26 = vpop.f32.mrf.mxu1  ;;  %v2024_v27 = vadd.f32 %v2023_v20, %v1995_v23 }
 0x14c   : > { %v2122_v25 = vpop.f32.mrf.mxu0 }
 0x14d   : > { %v4171_v3 = vadd.f32 %v2052_v16, %v2024_v27 }
 0x14e   : > { %v2064_v28 = vpop.f32.mrf.mxu2 }
 0x14f   : > { %v2093_v30 = vpop.f32.mrf.mxu3  ;;  %v2065_v55 = vadd.f32 %v2064_v28, %v4132_v0 }
 0x151   : > { %v2094_v61 = vadd.f32 %v2093_v30, %v2065_v55 }
 0x153   : > { %v2153_v35 = vpop.f32.mrf.mxu1  ;;  %v2123_v1 = vadd.f32 %v2122_v25, %v2094_v61 }
 0x154   : > { %v2124_v31 = vpop.f32.mrf.mxu0 }
 0x155   : > { %v2152_v7 = vadd.f32 %v2151_v26, %v2123_v1 }
 0x156   : > { %v2066_v32 = vpop.f32.mrf.mxu2 }
 0x157   : > { %v2095_v37 = vpop.f32.mrf.mxu3  ;;  %v2067_v2 = vadd.f32 %v2066_v32, %v4137_v14 }
 0x159   : > { %v2096_v6 = vadd.f32 %v2095_v37, %v2067_v2 }
 0x15b   : > { %v2156_v40 = vpop.f32.mrf.mxu1  ;;  %v2125_v10 = vadd.f32 %v2124_v31, %v2096_v6 }
 0x15c   : > { %v2127_v39 = vpop.f32.mrf.mxu0 }
 0x15d   : > { %v2154_v17 = vadd.f32 %v2153_v35, %v2125_v10 }
 0x15e   : > { %v2069_v36 = vpop.f32.mrf.mxu2 }
 0x15f   : > { %v2098_v24 = vpop.f32.mrf.mxu3  ;;  %v2070_v11 = vadd.f32 %v2069_v36, %v4146_v29 }
 0x161   : > { %v2099_v20 = vadd.f32 %v2098_v24, %v2070_v11 }
 0x163   : > { %v4173_v42 = vpop.f32.mrf.mxu1  ;;  %v2128_v23 = vadd.f32 %v2127_v39, %v2099_v20 }
 0x164   : > { %v2129_v41 = vpop.f32.mrf.mxu0 }
 0x165   : > { %v2157_v35 = vadd.f32 %v2156_v40, %v2128_v23 }
 0x166   : > { %v2071_v50 = vpop.f32.mrf.mxu2 }
 0x167   : > { %v2100_v9 = vpop.f32.mrf.mxu3  ;;  %v2072_v29 = vadd.f32 %v2071_v50, %v4151_v45 }
 0x169   : > { %v2101_v30 = vadd.f32 %v2100_v9, %v2072_v29 }
 0x16b   : > { %v4177_v44 = vpop.f32.mrf.mxu1  ;;  %v2130_v55 = vadd.f32 %v2129_v41, %v2101_v30 }
 0x16c   : > { %v4175_v43 = vpop.f32.mrf.mxu0 }
 0x16e   : > { %v2074_v53 = vpop.f32.mrf.mxu2 }
 0x16f   : > { %v2103_v47 = vpop.f32.mrf.mxu3  ;;  %v2075_v61 = vadd.f32 %v2074_v53, %v4160_v58 }
 0x171   : > { %v2104_v2 = vadd.f32 %v2103_v47, %v2075_v61 }
 0x173   : > { %v4181_v49 = vpop.f32.mrf.mxu1 }
 0x174   : > { %v4179_v48 = vpop.f32.mrf.mxu0 }
 0x176   : > { %v4183_v34 = vpop.f32.mrf.mxu2 }
 0x177   : > { %v4185_v51 = vpop.f32.mrf.mxu3  ;;  %v2077_v41 = vadd.f32 %v4183_v34, %v4165_v12 }
 0x17b   : > { %v4189_v18 = vpop.f32.mrf.mxu1 }
 0x17c   : > { %v4187_v52 = vpop.f32.mrf.mxu0 }
 0x17e   : > { %v4191_v33 = vpop.f32.mrf.mxu2 }
 0x17f   : > { %v4193_v54 = vpop.f32.mrf.mxu3  ;;  %v2080_v12 = vadd.f32 %v4191_v33, %v4168_v19 }
 0x181   : > { %v2109_v20 = vadd.f32 %v4193_v54, %v2080_v12 }
 0x183   : > { %v4198_v57 = vpop.f32.mrf.mxu1 }
 0x184   : > { %v4196_v56 = vpop.f32.mrf.mxu0 }
 0x186   : > { %v4200_v62 = vpop.f32.mrf.mxu2 }
 0x187   : > { %v4202_v63 = vpop.f32.mrf.mxu3  ;;  %v2082_v19 = vadd.f32 %v4200_v62, %v4171_v3 }
 0x189   : > { %v2111_v54 = vadd.f32 %v4202_v63, %v2082_v19 }
 0x18b   : > { %v2267_v5 = vpop.f32.mrf.mxu1 }
 0x18c   : > { %v2238_v4 = vpop.f32.mrf.mxu0 }
 0x18e   : > { %v2180_v8 = vpop.f32.mrf.mxu2 }
 0x18f   : > { %v2209_v59 = vpop.f32.mrf.mxu3  ;;  %v2181_v0 = vadd.f32 %v2180_v8, %v2152_v7  ;;  %v2133_v8 = vadd.f32 %v4175_v43, %v2104_v2 }
 0x191   : > { %v2210_v38 = vadd.f32 %v2209_v59, %v2181_v0  ;;  %v2106_v0 = vadd.f32 %v4185_v51, %v2077_v41 }
 0x193   : > { %v2269_v46 = vpop.f32.mrf.mxu1  ;;  %v2239_v15 = vadd.f32 %v2238_v4, %v2210_v38  ;;  %v2135_v43 = vadd.f32 %v4179_v48, %v2106_v0  ;;  %v2138_v48 = vadd.f32 %v4187_v52, %v2109_v20 }
 0x194   : > { %v2240_v13 = vpop.f32.mrf.mxu0 }
 0x195   : > { %v2268_v16 = vadd.f32 %v2267_v5, %v2239_v15  ;;  %v2159_v5 = vadd.f32 %v4173_v42, %v2130_v55  ;;  %v2162_v42 = vadd.f32 %v4177_v44, %v2133_v8 }
 0x196   : > { %v2182_v14 = vpop.f32.mrf.mxu2 }
 0x197   : > { %v2211_v60 = vpop.f32.mrf.mxu3  ;;  %v2287_v21 = vmax.f32 %v2268_v16, 0.0  ;;  %v2183_v22 = vadd.f32 %v2182_v14, %v2154_v17  ;;  %v2164_v17 = vadd.f32 %v4181_v49, %v2135_v43 }
 0x199   : > { %2295 = vst [vmem:[%s4210_s21] sm:$0xff] %v2287_v21  ;;  %v2212_v25 = vadd.f32 %v2211_v60, %v2183_v22 }
 0x19b   : > { %v2272_v27 = vpop.f32.mrf.mxu1  ;;  %v2241_v28 = vadd.f32 %v2240_v13, %v2212_v25  ;;  %v2167_v25 = vadd.f32 %v4189_v18, %v2138_v48 }
 0x19c   : > { %v2243_v26 = vpop.f32.mrf.mxu0 }
 0x19d   : > { %v2270_v31 = vadd.f32 %v2269_v46, %v2241_v28 }
 0x19e   : > { %v2185_v32 = vpop.f32.mrf.mxu2 }
 0x19f   : > { %v2214_v37 = vpop.f32.mrf.mxu3  ;;  %v2288_v36 = vmax.f32 %v2270_v31, 0.0  ;;  %v2186_v24 = vadd.f32 %v2185_v32, %v2157_v35  ;;  %v2140_v31 = vadd.f32 %v4196_v56, %v2111_v54 }
 0x1a1   : > { %2296 = vst [vmem:[%s4210_s21 + $0x8] sm:$0xff] %v2288_v36  ;;  %v2215_v39 = vadd.f32 %v2214_v37, %v2186_v24  ;;  %v2169_v32 = vadd.f32 %v4198_v57, %v2140_v31 }
 0x1a3   : > { %v2244_v45 = vadd.f32 %v2243_v26, %v2215_v39  ;;  %v2274_v50 = vpop.f32.mrf.mxu1 }
 0x1a4   : > { %v2245_v1 = vpop.f32.mrf.mxu0 }
 0x1a5   : > { %v2273_v4 = vadd.f32 %v2272_v27, %v2244_v45 }
 0x1a6   : > { %v2187_v9 = vpop.f32.mrf.mxu2 }
 0x1a7   : > { %v2216_v6 = vpop.f32.mrf.mxu3  ;;  %v2289_v40 = vmax.f32 %v2273_v4, 0.0  ;;  %v2188_v7 = vadd.f32 %v2187_v9, %v2159_v5 }
 0x1a9   : > { %2297 = vst [vmem:[%s4210_s21 + $0x10] sm:$0xff] %v2289_v40  ;;  %v2217_v58 = vadd.f32 %v2216_v6, %v2188_v7 }
 0x1ab   : > { %v2246_v53 = vadd.f32 %v2245_v1, %v2217_v58  ;;  %v2277_v10 = vpop.f32.mrf.mxu1 }
 0x1ac   : > { %v2248_v59 = vpop.f32.mrf.mxu0 }
 0x1ad   : > { %v2275_v47 = vadd.f32 %v2274_v50, %v2246_v53 }
 0x1ae   : > { %v2190_v11 = vpop.f32.mrf.mxu2 }
 0x1af   : > { %v2219_v38 = vpop.f32.mrf.mxu3  ;;  %v2290_v13 = vmax.f32 %v2275_v47, 0.0  ;;  %v2191_v46 = vadd.f32 %v2190_v11, %v2162_v42 }
 0x1b1   : > { %2298 = vst [vmem:[%s4210_s21 + $0x18] sm:$0xff] %v2290_v13  ;;  %v2220_v34 = vadd.f32 %v2219_v38, %v2191_v46 }
 0x1b3   : > { %v2249_v15 = vadd.f32 %v2248_v59, %v2220_v34  ;;  %v2279_v22 = vpop.f32.mrf.mxu1 }
 0x1b4   : > { %v2250_v16 = vpop.f32.mrf.mxu0 }
 0x1b5   : > { %v2278_v51 = vadd.f32 %v2277_v10, %v2249_v15 }
 0x1b6   : > { %v2192_v44 = vpop.f32.mrf.mxu2 }
 0x1b7   : > { %v2221_v14 = vpop.f32.mrf.mxu3  ;;  %v2291_v60 = vmax.f32 %v2278_v51, 0.0  ;;  %v2193_v21 = vadd.f32 %v2192_v44, %v2164_v17 }
 0x1b9   : > { %2299 = vst [vmem:[%s4210_s21 + $0x20] sm:$0xff] %v2291_v60  ;;  %v2222_v33 = vadd.f32 %v2221_v14, %v2193_v21 }
 0x1bb   : > { %v2251_v23 = vadd.f32 %v2250_v16, %v2222_v33  ;;  %v2282_v3 = vpop.f32.mrf.mxu1 }
 0x1bc   : > { %v2253_v30 = vpop.f32.mrf.mxu0 }
 0x1bd   : > { %v2280_v29 = vadd.f32 %v2279_v22, %v2251_v23 }
 0x1be   : > { %v2195_v49 = vpop.f32.mrf.mxu2 }
 0x1bf   : > { %v2224_v26 = vpop.f32.mrf.mxu3  ;;  %v2292_v27 = vmax.f32 %v2280_v29, 0.0  ;;  %v2196_v28 = vadd.f32 %v2195_v49, %v2167_v25 }
 0x1c1   : > { %2300 = vst [vmem:[%s4210_s21 + $0x28] sm:$0xff] %v2292_v27  ;;  %v2225_v52 = vadd.f32 %v2224_v26, %v2196_v28 }
 0x1c3   : > { %v2254_v62 = vadd.f32 %v2253_v30, %v2225_v52  ;;  %v2284_v39 = vpop.f32.mrf.mxu1 }
 0x1c4   : > { %v2255_v55 = vpop.f32.mrf.mxu0 }
 0x1c5   : > { %v2283_v35 = vadd.f32 %v2282_v3, %v2254_v62 }
 0x1c6   : > { %v2197_v63 = vpop.f32.mrf.mxu2 }
 0x1c7   : > { %v2293_v37 = vmax.f32 %v2283_v35, 0.0  ;;  %v2198_v36 = vadd.f32 %v2197_v63, %v2169_v32  ;;  %v2226_v18 = vpop.f32.mrf.mxu3 }
 0x1c9   : > { %2301 = vst [vmem:[%s4210_s21 + $0x30] sm:$0xff] %v2293_v37  ;;  %v2227_v24 = vadd.f32 %v2226_v18, %v2198_v36 }
 0x1cb   : > { %v2256_v61 = vadd.f32 %v2255_v55, %v2227_v24 }
 0x1cd   : > { %v2285_v1 = vadd.f32 %v2284_v39, %v2256_v61 }
 0x1cf   : > { %v2294_v45 = vmax.f32 %v2285_v1, 0.0 }
 0x1d1   : > { %2302 = vst [vmem:[%s4210_s21 + $0x38] sm:$0xff] %v2294_v45 }
 0x1d2 PF: > { %s13_s12 = sadd.s32 1, %s3482_s12  }
 0x1d3   : > { %p10_p4 = scmp.ge.s32.totalorder %s13_s12, 4  }
 0x1d5   :  { %12 = sbr.rel (!%p10_p4) target bundleno = 1 (0x1), region = 62 }

// kernel: edbhead_forward.20
= control target key start
LH: loop header
LB: loop body
LE: loop exit
PB: predicated region body
PF: predicated region fallthrough
CT: control target
= control target key end

     0   :  { %s877_s12 = smov 0   ;;  %s1169_s0 = inlined_call_operand.vmem [shape: bf16[128,128], index: 0, kind: input, shape index: {}]   ;;  %s1170_s1 = inlined_call_operand.vmem [shape: bf16[128,512], index: 1, kind: input, shape index: {}]   ;;  %s1171_s2 = inlined_call_operand.vmem [shape: f32[1,512], index: 2, kind: input, shape index: {}]   ;;  %s1172_s3 = inlined_call_operand.vmem [shape: f32[128,512], index: 3, kind: output, shape index: {}]  }
   0x1 LB: > { %s648_s13 = sadd.s32 4294967295, %s855_s12   ;;  %p652_p0 = scmp.ge.s32.totalorder %s855_s12, 1  ;;  %s855_s12 = sphi %s877_s12, %s13_s12  }
   0x2   : > { %p138_p1 = scmp.lt.s32.totalorder %s855_s12, 3 }
   0x4   : > { %p139_p2 = pnand %p652_p0, %p138_p1 }
   0x5   : > { %s653_s22 = sshll.u32 (!%p139_p2), %s648_s13, 3 }
   0x6   : > { %142 = sbr.rel (%p139_p2) target bundleno = 240 (0xf0), region = 32  ;;  %p164_p3 = scmp.lt.s32.totalorder (!%p139_p2), %s653_s22, 15 }
   0xb   : > { %v788_v0 = vld [vmem:[%s1170_s1 + $0xe0] sm:$0xf]  ;;  %v839_v1 = vld [vmem:[%s1170_s1 + $0xec] sm:$0xf0]  ;;  %v837_v2 = vld [vmem:[%s1170_s1 + $0xe4] sm:$0xf] }
   0xc   : > { %v789_v3 = vor.u32 %v839_v1, %v788_v0  ;;  %v790_v4 = vld [vmem:[%s1170_s1 + $0xf0] sm:$0xf0]  ;;  %v796_v5 = vld [vmem:[%s1170_s1 + $0xe8] sm:$0xf]  ;;  %v840_v6 = vld [vmem:[%s1170_s1 + $0xf4] sm:$0xf0] }
   0xd   : > { %v793_v7 = vor.u32 %v837_v2, %v790_v4  ;;  %v797_v8 = vor.u32 %v840_v6, %v796_v5  ;;  %v838_v9 = vld [vmem:[%s1170_s1 + $0xec] sm:$0xf]  ;;  %v798_v10 = vld [vmem:[%s1170_s1 + $0xf8] sm:$0xf0]  ;;  %v772_v11 = vld [vmem:[%s1170_s1 + $0xc0] sm:$0xf] }
   0xe   : > { %410 = vmatpush.bf16.msra.mxu0 %v789_v3  ;;  %v801_v12 = vor.u32 %v838_v9, %v798_v10  ;;  %v835_v13 = vld [vmem:[%s1170_s1 + $0xcc] sm:$0xf0]  ;;  %v833_v14 = vld [vmem:[%s1170_s1 + $0xc4] sm:$0xf]  ;;  %v774_v15 = vld [vmem:[%s1170_s1 + $0xd0] sm:$0xf0] }
   0xf   : > { %439 = vmatpush.bf16.msra.mxu1 %v793_v7  ;;  %468 = vmatpush.bf16.msra.mxu2 %v797_v8  ;;  %v773_v16 = vor.u32 %v835_v13, %v772_v11  ;;  %v777_v17 = vor.u32 %v833_v14, %v774_v15  ;;  %v780_v18 = vld [vmem:[%s1170_s1 + $0xc8] sm:$0xf]  ;;  %v836_v19 = vld [vmem:[%s1170_s1 + $0xd4] sm:$0xf0]  ;;  %v834_v20 = vld [vmem:[%s1170_s1 + $0xcc] sm:$0xf] }
  0x10   : > { %497 = vmatpush.bf16.msra.mxu3 %v801_v12  ;;  %v781_v21 = vor.u32 %v836_v19, %v780_v18  ;;  %v782_v22 = vld [vmem:[%s1170_s1 + $0xd8] sm:$0xf0]  ;;  %v756_v23 = vld [vmem:[%s1170_s1 + $0xa0] sm:$0xf]  ;;  %v831_v24 = vld [vmem:[%s1170_s1 + $0xac] sm:$0xf0] }
  0x11   : > { %v785_v25 = vor.u32 %v834_v20, %v782_v22  ;;  %v829_v26 = vld [vmem:[%s1170_s1 + $0xa4] sm:$0xf]  ;;  %v758_v27 = vld [vmem:[%s1170_s1 + $0xb0] sm:$0xf0]  ;;  %v764_v28 = vld [vmem:[%s1170_s1 + $0xa8] sm:$0xf]  ;;  %v757_v29 = vor.u32 %v831_v24, %v756_v23 }
  0x12   : > { %411 = vmatpush.bf16.msra.mxu0 %v773_v16  ;;  %v832_v30 = vld [vmem:[%s1170_s1 + $0xb4] sm:$0xf0]  ;;  %v830_v31 = vld [vmem:[%s1170_s1 + $0xac] sm:$0xf]  ;;  %v766_v32 = vld [vmem:[%s1170_s1 + $0xb8] sm:$0xf0]  ;;  %v761_v33 = vor.u32 %v829_v26, %v758_v27 }
  0x13   : > { %440 = vmatpush.bf16.msra.mxu1 %v777_v17  ;;  %469 = vmatpush.bf16.msra.mxu2 %v781_v21  ;;  %v765_v34 = vor.u32 %v832_v30, %v764_v28  ;;  %v740_v35 = vld [vmem:[%s1170_s1 + $0x80] sm:$0xf]  ;;  %v827_v36 = vld [vmem:[%s1170_s1 + $0x8c] sm:$0xf0]  ;;  %v825_v37 = vld [vmem:[%s1170_s1 + $0x84] sm:$0xf]  ;;  %v769_v38 = vor.u32 %v830_v31, %v766_v32 }
  0x14   : > { %498 = vmatpush.bf16.msra.mxu3 %v785_v25  ;;  %v742_v39 = vld [vmem:[%s1170_s1 + $0x90] sm:$0xf0]  ;;  %v748_v40 = vld [vmem:[%s1170_s1 + $0x88] sm:$0xf]  ;;  %v828_v41 = vld [vmem:[%s1170_s1 + $0x94] sm:$0xf0]  ;;  %v741_v44 = vor.u32 %v827_v36, %v740_v35 }
  0x15   : > { %v826_v42 = vld [vmem:[%s1170_s1 + $0x8c] sm:$0xf]  ;;  %v750_v43 = vld [vmem:[%s1170_s1 + $0x98] sm:$0xf0]  ;;  %v745_v45 = vor.u32 %v825_v37, %v742_v39  ;;  %v749_v46 = vor.u32 %v828_v41, %v748_v40  ;;  %v724_v47 = vld [vmem:[%s1170_s1 + $0x60] sm:$0xf] }
  0x16   : > { %412 = vmatpush.bf16.msra.mxu0 %v757_v29  ;;  %v823_v48 = vld [vmem:[%s1170_s1 + $0x6c] sm:$0xf0]  ;;  %v821_v49 = vld [vmem:[%s1170_s1 + $0x64] sm:$0xf]  ;;  %v753_v50 = vor.u32 %v826_v42, %v750_v43  ;;  %v726_v51 = vld [vmem:[%s1170_s1 + $0x70] sm:$0xf0] }
  0x17   : > { %441 = vmatpush.bf16.msra.mxu1 %v761_v33  ;;  %470 = vmatpush.bf16.msra.mxu2 %v765_v34  ;;  %v732_v52 = vld [vmem:[%s1170_s1 + $0x68] sm:$0xf]  ;;  %v824_v53 = vld [vmem:[%s1170_s1 + $0x74] sm:$0xf0]  ;;  %v822_v54 = vld [vmem:[%s1170_s1 + $0x6c] sm:$0xf]  ;;  %v725_v56 = vor.u32 %v823_v48, %v724_v47  ;;  %v729_v57 = vor.u32 %v821_v49, %v726_v51 }
  0x18   : > { %499 = vmatpush.bf16.msra.mxu3 %v769_v38  ;;  %v734_v55 = vld [vmem:[%s1170_s1 + $0x78] sm:$0xf0]  ;;  %v733_v58 = vor.u32 %v824_v53, %v732_v52  ;;  %v708_v59 = vld [vmem:[%s1170_s1 + $0x40] sm:$0xf]  ;;  %v819_v60 = vld [vmem:[%s1170_s1 + $0x4c] sm:$0xf0] }
  0x19   : > { %v817_v61 = vld [vmem:[%s1170_s1 + $0x44] sm:$0xf]  ;;  %v737_v62 = vor.u32 %v822_v54, %v734_v55  ;;  %v710_v63 = vld [vmem:[%s1170_s1 + $0x50] sm:$0xf0]  ;;  %v716_v0 = vld [vmem:[%s1170_s1 + $0x48] sm:$0xf]  ;;  %v709_v4 = vor.u32 %v819_v60, %v708_v59 }
  0x1a   : > { %413 = vmatpush.bf16.msra.mxu0 %v741_v44  ;;  %v820_v1 = vld [vmem:[%s1170_s1 + $0x54] sm:$0xf0]  ;;  %v818_v2 = vld [vmem:[%s1170_s1 + $0x4c] sm:$0xf]  ;;  %v718_v3 = vld [vmem:[%s1170_s1 + $0x58] sm:$0xf0]  ;;  %v713_v6 = vor.u32 %v817_v61, %v710_v63 }
  0x1b   : > { %442 = vmatpush.bf16.msra.mxu1 %v745_v45  ;;  %471 = vmatpush.bf16.msra.mxu2 %v749_v46  ;;  %v692_v5 = vld [vmem:[%s1170_s1 + $0x20] sm:$0xf]  ;;  %v717_v7 = vor.u32 %v820_v1, %v716_v0  ;;  %v815_v8 = vld [vmem:[%s1170_s1 + $0x2c] sm:$0xf0]  ;;  %v813_v9 = vld [vmem:[%s1170_s1 + $0x24] sm:$0xf]  ;;  %v721_v11 = vor.u32 %v818_v2, %v718_v3 }
  0x1c   : > { %500 = vmatpush.bf16.msra.mxu3 %v753_v50  ;;  %v694_v10 = vld [vmem:[%s1170_s1 + $0x30] sm:$0xf0]  ;;  %v700_v12 = vld [vmem:[%s1170_s1 + $0x28] sm:$0xf]  ;;  %v816_v13 = vld [vmem:[%s1170_s1 + $0x34] sm:$0xf0]  ;;  %v693_v16 = vor.u32 %v815_v8, %v692_v5 }
  0x1d   : > { %v814_v14 = vld [vmem:[%s1170_s1 + $0x2c] sm:$0xf]  ;;  %v702_v15 = vld [vmem:[%s1170_s1 + $0x38] sm:$0xf0]  ;;  %v676_v17 = vld [vmem:[%s1170_s1] sm:$0xf]  ;;  %v697_v18 = vor.u32 %v813_v9, %v694_v10  ;;  %v701_v19 = vor.u32 %v816_v13, %v700_v12 }
  0x1e   : > { %414 = vmatpush.bf16.msra.mxu0 %v725_v56  ;;  %v811_v20 = vld [vmem:[%s1170_s1 + $0xc] sm:$0xf0]  ;;  %v809_v21 = vld [vmem:[%s1170_s1 + $0x4] sm:$0xf]  ;;  %s1174_s22 = smov (!%p164_p3, %s653_s22), 15  ;;  %v705_v22 = vor.u32 %v814_v14, %v702_v15 }
  0x1f   : > { %443 = vmatpush.bf16.msra.mxu1 %v729_v57  ;;  %472 = vmatpush.bf16.msra.mxu2 %v733_v58  ;;  %v678_v23 = vld [vmem:[%s1170_s1 + $0x10] sm:$0xf0]  ;;  %v684_v24 = vld [vmem:[%s1170_s1 + $0x8] sm:$0xf]  ;;  %v812_v25 = vld [vmem:[%s1170_s1 + $0x14] sm:$0xf0]  ;;  %v677_v28 = vor.u32 %v811_v20, %v676_v17 }
  0x20   : > { %501 = vmatpush.bf16.msra.mxu3 %v737_v62  ;;  %v810_v26 = vld [vmem:[%s1170_s1 + $0xc] sm:$0xf]  ;;  %v686_v27 = vld [vmem:[%s1170_s1 + $0x18] sm:$0xf0]  ;;  %s654_s17 = sshll.u32 %s1174_s22, 2  ;;  %v681_v29 = vor.u32 %v809_v21, %v678_v23  ;;  %v685_v30 = vor.u32 %v812_v25, %v684_v24  ;;  %s804_s24 = sshll.u32 %s1174_s22, 5 }
  0x21   : > { %s167_s20 = scalar_lea.vmem %s1169_s0, %s654_s17  ;;  %v689_v31 = vor.u32 %v810_v26, %v686_v27  ;;  %v216_v36 = vld [vmem:[%s1171_s2] sm:$0xf]  ;;  %s1097_s27 = scalar_lea.vmem %s1172_s3, %s804_s24 }
  0x22   : > { %415 = vmatpush.bf16.msra.mxu0 %v709_v4  ;;  %v805_v32 = vld [vmem:[%s167_s20] sm:$0xff]  ;;  %v806_v33 = vld [vmem:[%s167_s20 + $0x8] sm:$0xff]  ;;  %v807_v34 = vld [vmem:[%s167_s20 + $0x10] sm:$0xff]  ;;  %v1088_v37 = vperm.slane %v216_v36, 0  ;;  %v1090_v38 = vperm.slane %v216_v36, 1  ;;  %v1100_v45 = vperm.slane %v216_v36, 2 }
  0x23   : > { %444 = vmatpush.bf16.msra.mxu1 %v713_v6  ;;  %473 = vmatpush.bf16.msra.mxu2 %v717_v7  ;;  %v808_v35 = vld [vmem:[%s167_s20 + $0x18] sm:$0xff]  ;;  %v1103_v46 = vperm.slane %v216_v36, 3 }
  0x24   : > { %502 = vmatpush.bf16.msra.mxu3 %v721_v11 }
  0x26   : > { %416 = vmatpush.bf16.msra.mxu0 %v693_v16 }
  0x27   : > { %445 = vmatpush.bf16.msra.mxu1 %v697_v18  ;;  %474 = vmatpush.bf16.msra.mxu2 %v701_v19 }
  0x28   : > { %503 = vmatpush.bf16.msra.mxu3 %v705_v22 }
  0x2a   : > { %417 = vmatpush.bf16.msra.mxu0 %v677_v28 }
  0x2b   : > { %446 = vmatpush.bf16.msra.mxu1 %v681_v29  ;;  %475 = vmatpush.bf16.msra.mxu2 %v685_v30 }
  0x2c   : > { %504 = vmatpush.bf16.msra.mxu3 %v689_v31 }
  0x2d   : > { %418 = vmatmul.bf16.vlgmr.msra.gmra.mxu0 %v805_v32 }
  0x2e   : > { %447 = vmatmul.bf16.vlgmr.msra.gmra.mxu1 %v805_v32  ;;  %476 = vmatmul.bf16.vlgmr.msra.gmra.mxu2 %v805_v32 }
  0x2f   : > { %505 = vmatmul.bf16.vlgmr.msra.gmra.mxu3 %v805_v32 }
  0x3d   : > { %423 = vmatmul.bf16.gmra.mxu0 %v806_v33 }
  0x3e   : > { %452 = vmatmul.bf16.gmra.mxu1 %v806_v33  ;;  %481 = vmatmul.bf16.gmra.mxu2 %v806_v33 }
  0x3f   : > { %510 = vmatmul.bf16.gmra.mxu3 %v806_v33 }
  0x4d   : > { %428 = vmatmul.bf16.gmra.mxu0 %v807_v34 }
  0x4e   : > { %457 = vmatmul.bf16.gmra.mxu1 %v807_v34  ;;  %486 = vmatmul.bf16.gmra.mxu2 %v807_v34 }
  0x4f   : > { %515 = vmatmul.bf16.gmra.mxu3 %v807_v34 }
  0x5d   : > { %433 = vmatmul.bf16.gmra.mxu0 %v808_v35 }
  0x5e   : > { %462 = vmatmul.bf16.gmra.mxu1 %v808_v35  ;;  %491 = vmatmul.bf16.gmra.mxu2 %v808_v35 }
  0x5f   : > { %520 = vmatmul.bf16.gmra.mxu3 %v808_v35 }
  0xaa   : > { %v419_v39 = vpop.f32.mrf.mxu0 }
  0xab   : > { %v420_v40 = vadd.f32 %v419_v39, %v1088_v37  ;;  %v448_v41 = vpop.f32.mrf.mxu1 }
  0xac   : > { %v449_v42 = vadd.f32 %v448_v41, %v1090_v38 }
  0xad   : > { %v526_v43 = vmax.f32 %v420_v40, 0.0 }
  0xae   : > { %v527_v44 = vmax.f32 %v449_v42, 0.0 }
  0xaf   : > { %558 = vst [vmem:[%s1097_s27] sm:$0xff] %v526_v43 }
  0xb0   : > { %559 = vst [vmem:[%s1097_s27 + $0x8] sm:$0xff] %v527_v44 }
  0xb1   : > { %v477_v47 = vpop.f32.mrf.mxu2 }
  0xb2   : > { %v478_v48 = vadd.f32 %v477_v47, %v1100_v45  ;;  %v506_v49 = vpop.f32.mrf.mxu3  ;;  %v421_v50 = vpop.f32.mrf.mxu0 }
  0xb3   : > { %v507_v51 = vadd.f32 %v506_v49, %v1103_v46  ;;  %v422_v52 = vadd.f32 %v421_v50, %v1088_v37  ;;  %v450_v53 = vpop.f32.mrf.mxu1 }
  0xb4   : > { %v528_v54 = vmax.f32 %v478_v48, 0.0  ;;  %v451_v55 = vadd.f32 %v450_v53, %v1090_v38 }
  0xb5   : > { %v529_v56 = vmax.f32 %v507_v51, 0.0  ;;  %v530_v57 = vmax.f32 %v422_v52, 0.0 }
  0xb6   : > { %560 = vst [vmem:[%s1097_s27 + $0x10] sm:$0xff] %v528_v54  ;;  %v531_v58 = vmax.f32 %v451_v55, 0.0 }
  0xb7   : > { %561 = vst [vmem:[%s1097_s27 + $0x18] sm:$0xff] %v529_v56 }
  0xb8   : > { %562 = vst [vmem:[%s1097_s27 + $0x20] sm:$0xff] %v530_v57 }
  0xb9   : > { %563 = vst [vmem:[%s1097_s27 + $0x28] sm:$0xff] %v531_v58  ;;  %v479_v59 = vpop.f32.mrf.mxu2 }
  0xba   : > { %v480_v60 = vadd.f32 %v479_v59, %v1100_v45  ;;  %v508_v61 = vpop.f32.mrf.mxu3  ;;  %v424_v62 = vpop.f32.mrf.mxu0 }
  0xbb   : > { %v509_v63 = vadd.f32 %v508_v61, %v1103_v46  ;;  %v425_v0 = vadd.f32 %v424_v62, %v1088_v37  ;;  %v453_v1 = vpop.f32.mrf.mxu1 }
  0xbc   : > { %v532_v2 = vmax.f32 %v480_v60, 0.0  ;;  %v454_v3 = vadd.f32 %v453_v1, %v1090_v38 }
  0xbd   : > { %v533_v4 = vmax.f32 %v509_v63, 0.0  ;;  %v534_v5 = vmax.f32 %v425_v0, 0.0 }
  0xbe   : > { %564 = vst [vmem:[%s1097_s27 + $0x30] sm:$0xff] %v532_v2  ;;  %v535_v6 = vmax.f32 %v454_v3, 0.0 }
  0xbf   : > { %565 = vst [vmem:[%s1097_s27 + $0x38] sm:$0xff] %v533_v4 }
  0xc0   : > { %566 = vst [vmem:[%s1097_s27 + $0x40] sm:$0xff] %v534_v5 }
  0xc1   : > { %567 = vst [vmem:[%s1097_s27 + $0x48] sm:$0xff] %v535_v6  ;;  %v482_v7 = vpop.f32.mrf.mxu2 }
  0xc2   : > { %v483_v8 = vadd.f32 %v482_v7, %v1100_v45  ;;  %v511_v9 = vpop.f32.mrf.mxu3  ;;  %v426_v10 = vpop.f32.mrf.mxu0 }
  0xc3   : > { %v512_v11 = vadd.f32 %v511_v9, %v1103_v46  ;;  %v427_v12 = vadd.f32 %v426_v10, %v1088_v37  ;;  %v455_v13 = vpop.f32.mrf.mxu1 }
  0xc4   : > { %v536_v14 = vmax.f32 %v483_v8, 0.0  ;;  %v456_v15 = vadd.f32 %v455_v13, %v1090_v38 }
  0xc5   : > { %v537_v16 = vmax.f32 %v512_v11, 0.0  ;;  %v538_v17 = vmax.f32 %v427_v12, 0.0 }
  0xc6   : > { %568 = vst [vmem:[%s1097_s27 + $0x50] sm:$0xff] %v536_v14  ;;  %v539_v18 = vmax.f32 %v456_v15, 0.0 }
  0xc7   : > { %569 = vst [vmem:[%s1097_s27 + $0x58] sm:$0xff] %v537_v16 }
  0xc8   : > { %570 = vst [vmem:[%s1097_s27 + $0x60] sm:$0xff] %v538_v17 }
  0xc9   : > { %571 = vst [vmem:[%s1097_s27 + $0x68] sm:$0xff] %v539_v18  ;;  %v484_v19 = vpop.f32.mrf.mxu2 }
  0xca   : > { %v485_v20 = vadd.f32 %v484_v19, %v1100_v45  ;;  %v513_v21 = vpop.f32.mrf.mxu3  ;;  %v429_v22 = vpop.f32.mrf.mxu0 }
  0xcb   : > { %v514_v23 = vadd.f32 %v513_v21, %v1103_v46  ;;  %v430_v24 = vadd.f32 %v429_v22, %v1088_v37  ;;  %v458_v25 = vpop.f32.mrf.mxu1 }
  0xcc   : > { %v540_v26 = vmax.f32 %v485_v20, 0.0  ;;  %v459_v27 = vadd.f32 %v458_v25, %v1090_v38 }
  0xcd   : > { %v541_v28 = vmax.f32 %v514_v23, 0.0  ;;  %v542_v29 = vmax.f32 %v430_v24, 0.0 }
  0xce   : > { %572 = vst [vmem:[%s1097_s27 + $0x70] sm:$0xff] %v540_v26  ;;  %v543_v30 = vmax.f32 %v459_v27, 0.0 }
  0xcf   : > { %573 = vst [vmem:[%s1097_s27 + $0x78] sm:$0xff] %v541_v28 }
  0xd0   : > { %574 = vst [vmem:[%s1097_s27 + $0x80] sm:$0xff] %v542_v29 }
  0xd1   : > { %575 = vst [vmem:[%s1097_s27 + $0x88] sm:$0xff] %v543_v30  ;;  %v487_v31 = vpop.f32.mrf.mxu2 }
  0xd2   : > { %v488_v32 = vadd.f32 %v487_v31, %v1100_v45  ;;  %v516_v33 = vpop.f32.mrf.mxu3  ;;  %v431_v34 = vpop.f32.mrf.mxu0 }
  0xd3   : > { %v517_v35 = vadd.f32 %v516_v33, %v1103_v46  ;;  %v432_v36 = vadd.f32 %v431_v34, %v1088_v37  ;;  %v460_v39 = vpop.f32.mrf.mxu1 }
  0xd4   : > { %v544_v40 = vmax.f32 %v488_v32, 0.0  ;;  %v461_v41 = vadd.f32 %v460_v39, %v1090_v38 }
  0xd5   : > { %v545_v42 = vmax.f32 %v517_v35, 0.0  ;;  %v546_v43 = vmax.f32 %v432_v36, 0.0 }
  0xd6   : > { %576 = vst [vmem:[%s1097_s27 + $0x90] sm:$0xff] %v544_v40  ;;  %v547_v44 = vmax.f32 %v461_v41, 0.0 }
  0xd7   : > { %577 = vst [vmem:[%s1097_s27 + $0x98] sm:$0xff] %v545_v42 }
  0xd8   : > { %578 = vst [vmem:[%s1097_s27 + $0xa0] sm:$0xff] %v546_v43 }
  0xd9   : > { %579 = vst [vmem:[%s1097_s27 + $0xa8] sm:$0xff] %v547_v44  ;;  %v489_v47 = vpop.f32.mrf.mxu2 }
  0xda   : > { %v490_v48 = vadd.f32 %v489_v47, %v1100_v45  ;;  %v518_v49 = vpop.f32.mrf.mxu3  ;;  %v434_v50 = vpop.f32.mrf.mxu0 }
  0xdb   : > { %v519_v51 = vadd.f32 %v518_v49, %v1103_v46  ;;  %v435_v52 = vadd.f32 %v434_v50, %v1088_v37  ;;  %v463_v53 = vpop.f32.mrf.mxu1 }
  0xdc   : > { %v548_v54 = vmax.f32 %v490_v48, 0.0  ;;  %v464_v55 = vadd.f32 %v463_v53, %v1090_v38 }
  0xdd   : > { %v549_v56 = vmax.f32 %v519_v51, 0.0  ;;  %v550_v57 = vmax.f32 %v435_v52, 0.0 }
  0xde   : > { %580 = vst [vmem:[%s1097_s27 + $0xb0] sm:$0xff] %v548_v54  ;;  %v551_v58 = vmax.f32 %v464_v55, 0.0 }
  0xdf   : > { %581 = vst [vmem:[%s1097_s27 + $0xb8] sm:$0xff] %v549_v56 }
  0xe0   : > { %582 = vst [vmem:[%s1097_s27 + $0xc0] sm:$0xff] %v550_v57 }
  0xe1   : > { %583 = vst [vmem:[%s1097_s27 + $0xc8] sm:$0xff] %v551_v58  ;;  %v492_v59 = vpop.f32.mrf.mxu2 }
  0xe2   : > { %v493_v60 = vadd.f32 %v492_v59, %v1100_v45  ;;  %v521_v61 = vpop.f32.mrf.mxu3  ;;  %v436_v62 = vpop.f32.mrf.mxu0 }
  0xe3   : > { %v522_v63 = vadd.f32 %v521_v61, %v1103_v46  ;;  %v437_v0 = vadd.f32 %v436_v62, %v1088_v37  ;;  %v465_v1 = vpop.f32.mrf.mxu1 }
  0xe4   : > { %v552_v2 = vmax.f32 %v493_v60, 0.0  ;;  %v466_v3 = vadd.f32 %v465_v1, %v1090_v38 }
  0xe5   : > { %v553_v4 = vmax.f32 %v522_v63, 0.0  ;;  %v554_v5 = vmax.f32 %v437_v0, 0.0 }
  0xe6   : > { %584 = vst [vmem:[%s1097_s27 + $0xd0] sm:$0xff] %v552_v2  ;;  %v555_v6 = vmax.f32 %v466_v3, 0.0 }
  0xe7   : > { %585 = vst [vmem:[%s1097_s27 + $0xd8] sm:$0xff] %v553_v4 }
  0xe8   : > { %586 = vst [vmem:[%s1097_s27 + $0xe0] sm:$0xff] %v554_v5 }
  0xe9   : > { %587 = vst [vmem:[%s1097_s27 + $0xe8] sm:$0xff] %v555_v6  ;;  %v494_v7 = vpop.f32.mrf.mxu2 }
  0xea   : > { %v495_v8 = vadd.f32 %v494_v7, %v1100_v45  ;;  %v523_v9 = vpop.f32.mrf.mxu3 }
  0xeb   : > { %v524_v10 = vadd.f32 %v523_v9, %v1103_v46 }
  0xec   : > { %v556_v37 = vmax.f32 %v495_v8, 0.0 }
  0xed   : > { %v557_v11 = vmax.f32 %v524_v10, 0.0 }
  0xee   : > { %588 = vst [vmem:[%s1097_s27 + $0xf0] sm:$0xff] %v556_v37 }
  0xef   : > { %589 = vst [vmem:[%s1097_s27 + $0xf8] sm:$0xff] %v557_v11 }
  0xf0 PF: > { %s13_s12 = sadd.s32 1, %s855_s12  }
  0xf1   : > { %p10_p4 = scmp.ge.s32.totalorder %s13_s12, 4  }
  0xf3   :  { %12 = sbr.rel (!%p10_p4) target bundleno = 1 (0x1), region = 62 }

// kernel: edbhead_forward.21
= control target key start
LH: loop header
LB: loop body
LE: loop exit
PB: predicated region body
PF: predicated region fallthrough
CT: control target
= control target key end

     0   :  { %s1509_s12 = smov 0   ;;  %s2103_s0 = inlined_call_operand.vmem [shape: bf16[512,128], index: 0, kind: input, shape index: {}]   ;;  %s2104_s1 = inlined_call_operand.vmem [shape: bf16[128,8], index: 1, kind: input, shape index: {}]   ;;  %s2105_s2 = inlined_call_operand.vmem [shape: f32[1,8], index: 2, kind: input, shape index: {}]   ;;  %s2106_s3 = inlined_call_operand.vmem [shape: f32[512,8], index: 3, kind: output, shape index: {}]  }
   0x1 LB: > { %s1156_s13 = sadd.s32 4294967295, %s1487_s12   ;;  %p1160_p0 = scmp.ge.s32.totalorder %s1487_s12, 1  ;;  %s1487_s12 = sphi %s1509_s12, %s13_s12  }
   0x2   : > { %p138_p1 = scmp.lt.s32.totalorder %s1487_s12, 3 }
   0x4   : > { %p139_p2 = pnand %p1160_p0, %p138_p1 }
   0x5   : > { %s1161_s22 = sshll.u32 (!%p139_p2), %s1156_s13, 5 }
   0x6   : > { %142 = sbr.rel (%p139_p2) target bundleno = 323 (0x143), region = 32  ;;  %p163_p3 = scmp.lt.s32.totalorder (!%p139_p2), %s1161_s22, 63 }
   0xb   : > { %v1318_v0 = vld [vmem:[%s2104_s1 + $0x38] sm:$0xff]  ;;  %v1317_v1 = vld [vmem:[%s2104_s1 + $0x30] sm:$0xff]  ;;  %v1316_v2 = vld [vmem:[%s2104_s1 + $0x28] sm:$0xff]  ;;  %s2154_s22 = smov (!%p163_p3, %s1161_s22), 63  ;;  %vm1067_vm1 = vcmask 64512  }
   0xc   : > { %370 = vmatpush.bf16.msra.mxu0 %v1318_v0  ;;  %1319 = vmatpush.bf16.msra.mxu1 %v1318_v0  ;;  %v1315_v3 = vld [vmem:[%s2104_s1 + $0x20] sm:$0xff]  ;;  %v1314_v4 = vld [vmem:[%s2104_s1 + $0x18] sm:$0xff]  ;;  %v1313_v5 = vld [vmem:[%s2104_s1 + $0x10] sm:$0xff]  ;;  %s1162_s29 = sshll.u32 %s2154_s22, 2  ;;  %s1164_s10 = sshll.u32 %s2154_s22, 3 }
   0xd   : > { %1320 = vmatpush.bf16.msra.mxu2 %v1318_v0  ;;  %1321 = vmatpush.bf16.msra.mxu3 %v1318_v0  ;;  %v1312_v6 = vld [vmem:[%s2104_s1 + $0x8] sm:$0xff]  ;;  %v1311_v7 = vld [vmem:[%s2104_s1] sm:$0xff]  ;;  %s1547_s7 = scalar_lea.vmem %s2103_s0, %s1162_s29  ;;  %s1623_s14 = scalar_lea.vmem %s2106_s3, %s1164_s10 }
   0xe   : > { %v1295_v8 = vld [vmem:[%s1547_s7] sm:$0xff]  ;;  %v1296_v12 = vld [vmem:[%s1547_s7 + $0x8] sm:$0xff]  ;;  %v1297_v16 = vld [vmem:[%s1547_s7 + $0x10] sm:$0xff] }
   0xf   : > { %v1299_v9 = vld [vmem:[%s1547_s7 + $0x20] sm:$0xff]  ;;  %v1300_v13 = vld [vmem:[%s1547_s7 + $0x28] sm:$0xff]  ;;  %v1301_v17 = vld [vmem:[%s1547_s7 + $0x30] sm:$0xff] }
  0x10   : > { %371 = vmatpush.bf16.msra.mxu0 %v1317_v1  ;;  %1322 = vmatpush.bf16.msra.mxu1 %v1317_v1  ;;  %v1303_v10 = vld [vmem:[%s1547_s7 + $0x40] sm:$0xff]  ;;  %v1304_v14 = vld [vmem:[%s1547_s7 + $0x48] sm:$0xff]  ;;  %v1305_v18 = vld [vmem:[%s1547_s7 + $0x50] sm:$0xff] }
  0x11   : > { %1323 = vmatpush.bf16.msra.mxu2 %v1317_v1  ;;  %1324 = vmatpush.bf16.msra.mxu3 %v1317_v1  ;;  %v1307_v11 = vld [vmem:[%s1547_s7 + $0x60] sm:$0xff]  ;;  %v1308_v15 = vld [vmem:[%s1547_s7 + $0x68] sm:$0xff]  ;;  %v1309_v19 = vld [vmem:[%s1547_s7 + $0x70] sm:$0xff] }
  0x12   : > { %v1298_v20 = vld [vmem:[%s1547_s7 + $0x18] sm:$0xff]  ;;  %v1568_v24 = vld [vmem:[%s2105_s2] ss:$0 sm:$0xff] }
  0x13   : > { %v1302_v21 = vld [vmem:[%s1547_s7 + $0x38] sm:$0xff] }
  0x14   : > { %372 = vmatpush.bf16.msra.mxu0 %v1316_v2  ;;  %1325 = vmatpush.bf16.msra.mxu1 %v1316_v2  ;;  %v1306_v22 = vld [vmem:[%s1547_s7 + $0x58] sm:$0xff] }
  0x15   : > { %1326 = vmatpush.bf16.msra.mxu2 %v1316_v2  ;;  %1327 = vmatpush.bf16.msra.mxu3 %v1316_v2  ;;  %v1310_v23 = vld [vmem:[%s1547_s7 + $0x78] sm:$0xff] }
  0x18   : > { %373 = vmatpush.bf16.msra.mxu0 %v1315_v3  ;;  %1328 = vmatpush.bf16.msra.mxu1 %v1315_v3 }
  0x19   : > { %1329 = vmatpush.bf16.msra.mxu2 %v1315_v3  ;;  %1330 = vmatpush.bf16.msra.mxu3 %v1315_v3 }
  0x1c   : > { %374 = vmatpush.bf16.msra.mxu0 %v1314_v4  ;;  %1331 = vmatpush.bf16.msra.mxu1 %v1314_v4 }
  0x1d   : > { %1332 = vmatpush.bf16.msra.mxu2 %v1314_v4  ;;  %1333 = vmatpush.bf16.msra.mxu3 %v1314_v4 }
  0x20   : > { %375 = vmatpush.bf16.msra.mxu0 %v1313_v5  ;;  %1334 = vmatpush.bf16.msra.mxu1 %v1313_v5 }
  0x21   : > { %1335 = vmatpush.bf16.msra.mxu2 %v1313_v5  ;;  %1336 = vmatpush.bf16.msra.mxu3 %v1313_v5 }
  0x24   : > { %376 = vmatpush.bf16.msra.mxu0 %v1312_v6  ;;  %1337 = vmatpush.bf16.msra.mxu1 %v1312_v6 }
  0x25   : > { %1338 = vmatpush.bf16.msra.mxu2 %v1312_v6  ;;  %1339 = vmatpush.bf16.msra.mxu3 %v1312_v6 }
  0x28   : > { %377 = vmatpush.bf16.msra.mxu0 %v1311_v7  ;;  %1340 = vmatpush.bf16.msra.mxu1 %v1311_v7 }
  0x29   : > { %1341 = vmatpush.bf16.msra.mxu2 %v1311_v7  ;;  %1342 = vmatpush.bf16.msra.mxu3 %v1311_v7 }
  0x2b   : > { %378 = vmatmul.bf16.vlgmr.msra.gmra.mxu0 %v1295_v8  ;;  %398 = vmatmul.bf16.vlgmr.msra.gmra.mxu1 %v1299_v9 }
  0x2c   : > { %418 = vmatmul.bf16.vlgmr.msra.gmra.mxu2 %v1303_v10  ;;  %438 = vmatmul.bf16.vlgmr.msra.gmra.mxu3 %v1307_v11 }
  0x3b   : > { %383 = vmatmul.bf16.gmra.mxu0 %v1296_v12  ;;  %403 = vmatmul.bf16.gmra.mxu1 %v1300_v13 }
  0x3c   : > { %423 = vmatmul.bf16.gmra.mxu2 %v1304_v14  ;;  %443 = vmatmul.bf16.gmra.mxu3 %v1308_v15 }
  0x4b   : > { %388 = vmatmul.bf16.gmra.mxu0 %v1297_v16  ;;  %408 = vmatmul.bf16.gmra.mxu1 %v1301_v17 }
  0x4c   : > { %428 = vmatmul.bf16.gmra.mxu2 %v1305_v18  ;;  %448 = vmatmul.bf16.gmra.mxu3 %v1309_v19 }
  0x5b   : > { %393 = vmatmul.bf16.gmra.mxu0 %v1298_v20  ;;  %413 = vmatmul.bf16.gmra.mxu1 %v1302_v21 }
  0x5c   : > { %433 = vmatmul.bf16.gmra.mxu2 %v1306_v22  ;;  %453 = vmatmul.bf16.gmra.mxu3 %v1310_v23 }
  0xa8   : > { %v379_v25 = vpop.f32.mrf.mxu0  ;;  %v399_v26 = vpop.f32.mrf.mxu1 }
  0xa9   : > { %v380_v27 = vadd.f32 %v1568_v24, %v379_v25  ;;  %v400_v28 = vadd.f32 %v1568_v24, %v399_v26 }
  0xab   : > { %v1261_v29 = vmul.f32 -1.442695, %v380_v27  ;;  %v1269_v30 = vmul.f32 -1.442695, %v400_v28 }
  0xad   : > { %1352 = vpow2.f32 %v1261_v29 }
  0xae   : > { %1354 = vpow2.f32 %v1269_v30 }
  0xaf   : > { %v419_v31 = vpop.f32.mrf.mxu2  ;;  %v439_v32 = vpop.f32.mrf.mxu3 }
  0xb0   : > { %v420_v33 = vadd.f32 %v1568_v24, %v419_v31  ;;  %v440_v34 = vadd.f32 %v1568_v24, %v439_v32  ;;  %v381_v35 = vpop.f32.mrf.mxu0  ;;  %v401_v36 = vpop.f32.mrf.mxu1 }
  0xb1   : > { %v382_v37 = vadd.f32 %v1568_v24, %v381_v35  ;;  %v402_v38 = vadd.f32 %v1568_v24, %v401_v36 }
  0xb2   : > { %v1277_v39 = vmul.f32 -1.442695, %v420_v33  ;;  %v1285_v40 = vmul.f32 -1.442695, %v440_v34 }
  0xb3   : > { %v1353_v41 = vpop.eup %1352  ;;  %v1262_v44 = vmul.f32 -1.442695, %v382_v37  ;;  %v1270_v46 = vmul.f32 -1.442695, %v402_v38 }
  0xb4   : > { %v1355_v42 = vpop.eup %1354  ;;  %v1576_v43 = vadd.f32 1.0, %v1353_v41  ;;  %1356 = vpow2.f32 %v1277_v39 }
  0xb5   : > { %v1578_v45 = vadd.f32 1.0, %v1355_v42  ;;  %1358 = vpow2.f32 %v1285_v40 }
  0xb6   : > { %1360 = vrcp.f32 %v1576_v43  ;;  %v596_v50 = vand.u32 2147483647, %v1576_v43  ;;  %v598_v51 = vand.u32 2147483648, %v1576_v43  ;;  %vm592_vm0 = vweird.f32 %v1576_v43 }
  0xb7   : > { %1362 = vrcp.f32 %v1578_v45  ;;  %v421_v47 = vpop.f32.mrf.mxu2  ;;  %v441_v48 = vpop.f32.mrf.mxu3  ;;  %v716_v54 = vand.u32 2147483647, %v1578_v45  ;;  %v718_v58 = vand.u32 2147483648, %v1578_v45  ;;  %vm712_vm2 = vweird.f32 %v1578_v45 }
  0xb8   : > { %1364 = vpow2.f32 %v1262_v44  ;;  %v422_v49 = vadd.f32 %v1568_v24, %v421_v47  ;;  %v384_v52 = vpop.f32.mrf.mxu0  ;;  %v442_v56 = vadd.f32 %v1568_v24, %v441_v48  ;;  %v404_v63 = vpop.f32.mrf.mxu1  ;;  %vm1596_vm3 = vcmp.eq.f32.partialorder %v596_v50, 8.507059e+37 }
  0xb9   : > { %1366 = vpow2.f32 %v1270_v46  ;;  %v385_v62 = vadd.f32 %v1568_v24, %v384_v52  ;;  %v599_v3 = vor.u32 1.1754944e-38, %v598_v51  ;;  %vm1602_vm4 = vcmp.eq.f32.partialorder %v716_v54, 8.507059e+37 }
  0xba   : > { %v1357_v53 = vpop.eup %1356  ;;  %v1278_v55 = vmul.f32 -1.442695, %v422_v49  ;;  %v1286_v7 = vmul.f32 -1.442695, %v442_v56  ;;  %v719_v10 = vor.u32 1.1754944e-38, %v718_v58  ;;  %v405_v11 = vadd.f32 %v1568_v24, %v404_v63 }
  0xbb   : > { %v1359_v57 = vpop.eup %1358  ;;  %v1588_v59 = vadd.f32 1.0, %v1357_v53  ;;  %v1263_v14 = vmul.f32 -1.442695, %v385_v62 }
  0xbc   : > { %v1361_v60 = vpop.eup %1360  ;;  %v1592_v61 = vadd.f32 1.0, %v1359_v57  ;;  %v1618_v25 = vmul.f32 -1.442695, %v405_v11 }
  0xbd   : > { %v1363_v0 = vpop.eup %1362  ;;  %v588_v1 = vmul.f32 %v1361_v60, %v1576_v43  ;;  %1368 = vrcp.f32 %v1588_v59  ;;  %vm593_vm5 = vweird.f32 %v1361_v60  ;;  %v836_v13 = vand.u32 2147483647, %v1588_v59 }
  0xbe   : > { %v1365_v4 = vpop.eup %1364  ;;  %v708_v5 = vmul.f32 %v1363_v0, %v1578_v45  ;;  %1370 = vpow2.f32 %v1278_v55  ;;  %v838_v16 = vand.u32 2147483648, %v1588_v59  ;;  %vm713_vm6 = vweird.f32 %v1363_v0  ;;  %vm594_vm7 = vmor %vm592_vm0, %vm593_vm5 }
  0xbf   : > { %v1367_v8 = vpop.eup %1366  ;;  %v589_v9 = vsub.f32 1.0, %v588_v1  ;;  %1372 = vrcp.f32 %v1592_v61  ;;  %v1611_v17 = vadd.f32 1.0, %v1365_v4  ;;  %v956_v20 = vand.u32 2147483647, %v1592_v61  ;;  %v424_v29 = vpop.f32.mrf.mxu2  ;;  %vm714_vm10 = vmor %vm712_vm2, %vm713_vm6 }
  0xc0   : > { %v709_v12 = vsub.f32 1.0, %v708_v5  ;;  %v1613_v18 = vadd.f32 1.0, %v1367_v8  ;;  %1374 = vpow2.f32 %v1286_v7  ;;  %v958_v23 = vand.u32 2147483648, %v1592_v61  ;;  %v444_v56 = vpop.f32.mrf.mxu3  ;;  %v386_v11 = vpop.f32.mrf.mxu0 }
  0xc1   : > { %v590_v15 = vmul.f32 %v1361_v60, %v589_v9  ;;  %1376 = vrcp.f32 %v1611_v17  ;;  %vm832_vm8 = vweird.f32 %v1588_v59  ;;  %vm952_vm9 = vweird.f32 %v1592_v61 }
  0xc2   : > { %v710_v19 = vmul.f32 %v1363_v0, %v709_v12  ;;  %vm1634_vm11 = vcmp.eq.f32.partialorder %v836_v13, 8.507059e+37  ;;  %v839_v33 = vor.u32 1.1754944e-38, %v838_v16  ;;  %1378 = vrcp.f32 %v1613_v18 }
  0xc3   : > { %v1369_v21 = vpop.eup %1368  ;;  %v591_v22 = vadd.f32 %v1361_v60, %v590_v15  ;;  %vm1642_vm12 = vcmp.eq.f32.partialorder %v956_v20, 8.507059e+37  ;;  %v959_v40 = vor.u32 1.1754944e-38, %v958_v23  ;;  %v611_v41 = vand.u32 2147483647, %v1611_v17 }
  0xc4   : > { %v1371_v26 = vpop.eup %1370  ;;  %v711_v27 = vadd.f32 %v1363_v0, %v710_v19  ;;  %v828_v28 = vmul.f32 %v1369_v21, %v1588_v59  ;;  %v425_v42 = vadd.f32 %v1568_v24, %v424_v29  ;;  %vm833_vm13 = vweird.f32 %v1369_v21  ;;  %v406_v29 = vpop.f32.mrf.mxu1 }
  0xc5   : > { %v1373_v30 = vpop.eup %1372  ;;  %v595_v31 = vsel %vm594_vm7, %v1361_v60, %v591_v22  ;;  %v1654_v46 = vadd.f32 1.0, %v1371_v26  ;;  %vm607_vm15 = vweird.f32 %v1611_v17  ;;  %v613_v48 = vand.u32 2147483648, %v1611_v17  ;;  %vm834_vm0 = vmor %vm832_vm8, %vm833_vm13 }
  0xc6   : > { %v600_v34 = vsel %vm1596_vm3, %v599_v3, %v595_v31  ;;  %v715_v35 = vsel %vm714_vm10, %v1363_v0, %v711_v27  ;;  %v829_v36 = vsub.f32 1.0, %v828_v28  ;;  %v948_v37 = vmul.f32 %v1373_v30, %v1592_v61  ;;  %v1375_v43 = vpop.eup %1374 }
  0xc7   : > { %1068 = vst.msk [vmem:[%s1623_s14] sm:$0xff] %vm1067_vm1, %v600_v34  ;;  %v720_v39 = vsel %vm1602_vm4, %v719_v10, %v715_v35  ;;  %v1377_v47 = vpop.eup %1376  ;;  %vm953_vm14 = vweird.f32 %v1373_v30  ;;  %1380 = vpow2.f32 %v1263_v14  ;;  %v1659_v52 = vadd.f32 1.0, %v1375_v43 }
  0xc8   : > { %1076 = vst.msk [vmem:[%s1623_s14 + $0x40] sm:$0xff] %vm1067_vm1, %v720_v39  ;;  %v830_v44 = vmul.f32 %v1369_v21, %v829_v36  ;;  %v949_v45 = vsub.f32 1.0, %v948_v37  ;;  %v603_v51 = vmul.f32 %v1377_v47, %v1611_v17  ;;  %v1379_v53 = vpop.eup %1378  ;;  %vm1663_vm2 = vcmp.eq.f32.partialorder %v611_v41, 8.507059e+37  ;;  %vm954_vm4 = vmor %vm952_vm9, %vm953_vm14 }
  0xc9   : > { %vm727_vm3 = vweird.f32 %v1613_v18  ;;  %v731_v55 = vand.u32 2147483647, %v1613_v18  ;;  %1382 = vrcp.f32 %v1654_v46  ;;  %v723_v62 = vmul.f32 %v1379_v53, %v1613_v18 }
  0xca   : > { %v831_v49 = vadd.f32 %v1369_v21, %v830_v44  ;;  %v950_v50 = vmul.f32 %v1373_v30, %v949_v45  ;;  %v604_v60 = vsub.f32 1.0, %v603_v51  ;;  %vm608_vm5 = vweird.f32 %v1377_v47 }
  0xcb   : > { %v733_v63 = vand.u32 2147483648, %v1613_v18  ;;  %v851_v0 = vand.u32 2147483647, %v1654_v46  ;;  %v724_v3 = vsub.f32 1.0, %v723_v62  ;;  %1384 = vrcp.f32 %v1659_v52  ;;  %vm609_vm8 = vmor %vm607_vm15, %vm608_vm5 }
  0xcc   : > { %v835_v57 = vsel %vm834_vm0, %v1369_v21, %v831_v49  ;;  %v951_v58 = vadd.f32 %v1373_v30, %v950_v50  ;;  %v605_v2 = vmul.f32 %v1377_v47, %v604_v60  ;;  %v614_v6 = vor.u32 1.1754944e-38, %v613_v48 }
  0xcd   : > { %v840_v59 = vsel %vm1634_vm11, %v839_v33, %v835_v57  ;;  %v1381_v4 = vpop.eup %1380  ;;  %vm1683_vm6 = vcmp.eq.f32.partialorder %v731_v55, 8.507059e+37  ;;  %v853_v7 = vand.u32 2147483648, %v1654_v46  ;;  %v725_v9 = vmul.f32 %v1379_v53, %v724_v3  ;;  %v446_v33 = vpop.f32.mrf.mxu3 }
  0xce   : > { %1084 = vst.msk [vmem:[%s1623_s14 + $0x80] sm:$0xff] %vm1067_vm1, %v840_v59  ;;  %v955_v1 = vsel %vm954_vm4, %v1373_v30, %v951_v58  ;;  %v606_v8 = vadd.f32 %v1377_v47, %v605_v2  ;;  %vm728_vm7 = vweird.f32 %v1379_v53  ;;  %v1690_v10 = vadd.f32 1.0, %v1381_v4  ;;  %v426_v30 = vpop.f32.mrf.mxu2 }
  0xcf   : > { %v960_v5 = vsel %vm1642_vm12, %v959_v40, %v955_v1  ;;  %v1383_v12 = vpop.eup %1382  ;;  %v734_v13 = vor.u32 1.1754944e-38, %v733_v63  ;;  %vm847_vm9 = vweird.f32 %v1654_v46  ;;  %1386 = vpow2.f32 %v1618_v25  ;;  %vm729_vm11 = vmor %vm727_vm3, %vm728_vm7 }
  0xd0   : > { %1092 = vst.msk [vmem:[%s1623_s14 + $0xc0] sm:$0xff] %vm1067_vm1, %v960_v5  ;;  %v1279_v14 = vmul.f32 -1.442695, %v425_v42  ;;  %v610_v15 = vsel %vm609_vm8, %v1377_v47, %v606_v8  ;;  %v726_v16 = vadd.f32 %v1379_v53, %v725_v9  ;;  %v843_v19 = vmul.f32 %v1383_v12, %v1654_v46  ;;  %v389_v9 = vpop.f32.mrf.mxu0 }
  0xd1   : > { %vm1698_vm10 = vcmp.eq.f32.partialorder %v851_v0, 8.507059e+37  ;;  %v445_v21 = vadd.f32 %v1568_v24, %v444_v56  ;;  %v615_v17 = vsel %vm1663_vm2, %v614_v6, %v610_v15  ;;  %v854_v22 = vor.u32 1.1754944e-38, %v853_v7  ;;  %v1385_v25 = vpop.eup %1384 }
  0xd2   : > { %1388 = vrcp.f32 %v1690_v10  ;;  %v387_v23 = vadd.f32 %v1568_v24, %v386_v11  ;;  %1069 = vst.msk [vmem:[%s1623_s14 + $0x8] sm:$0xff] %vm1067_vm1, %v615_v17  ;;  %v730_v26 = vsel %vm729_vm11, %v1379_v53, %v726_v16  ;;  %v844_v27 = vsub.f32 1.0, %v843_v19 }
  0xd3   : > { %vm967_vm12 = vweird.f32 %v1659_v52  ;;  %v971_v28 = vand.u32 2147483647, %v1659_v52  ;;  %v735_v18 = vsel %vm1683_vm6, %v734_v13, %v730_v26  ;;  %v963_v31 = vmul.f32 %v1385_v25, %v1659_v52 }
  0xd4   : > { %v973_v32 = vand.u32 2147483648, %v1659_v52  ;;  %1390 = vpow2.f32 %v1279_v14  ;;  %1077 = vst.msk [vmem:[%s1623_s14 + $0x48] sm:$0xff] %vm1067_vm1, %v735_v18  ;;  %v845_v34 = vmul.f32 %v1383_v12, %v844_v27  ;;  %vm848_vm13 = vweird.f32 %v1383_v12 }
  0xd5   : > { %vm968_vm14 = vweird.f32 %v1385_v25  ;;  %v1287_v35 = vmul.f32 -1.442695, %v445_v21  ;;  %v1387_v36 = vpop.eup %1386  ;;  %v964_v37 = vsub.f32 1.0, %v963_v31  ;;  %v1264_v38 = vmul.f32 -1.442695, %v387_v23  ;;  %vm849_vm15 = vmor %vm847_vm9, %vm848_vm13 }
  0xd6   : > { %v407_v39 = vadd.f32 %v1568_v24, %v406_v29  ;;  %v427_v40 = vadd.f32 %v1568_v24, %v426_v30  ;;  %v846_v41 = vadd.f32 %v1383_v12, %v845_v34  ;;  %v1722_v42 = vadd.f32 1.0, %v1387_v36  ;;  %vm969_vm3 = vmor %vm967_vm12, %vm968_vm14 }
  0xd7   : > { %1392 = vpow2.f32 %v1287_v35  ;;  %v447_v43 = vadd.f32 %v1568_v24, %v446_v33  ;;  %v965_v45 = vmul.f32 %v1385_v25, %v964_v37  ;;  %vm1727_vm0 = vcmp.eq.f32.partialorder %v971_v28, 8.507059e+37 }
  0xd8   : > { %v1389_v44 = vpop.eup %1388  ;;  %1394 = vpow2.f32 %v1264_v38  ;;  %v1272_v47 = vmul.f32 -1.442695, %v407_v39  ;;  %v1280_v48 = vmul.f32 -1.442695, %v427_v40  ;;  %v850_v49 = vsel %vm849_vm15, %v1383_v12, %v846_v41 }
  0xd9   : > { %v618_v51 = vmul.f32 %v1389_v44, %v1690_v10  ;;  %1396 = vrcp.f32 %v1722_v42  ;;  %v855_v54 = vsel %vm1698_vm10, %v854_v22, %v850_v49  ;;  %v966_v55 = vadd.f32 %v1385_v25, %v965_v45 }
  0xda   : > { %v1391_v53 = vpop.eup %1390  ;;  %v974_v46 = vor.u32 1.1754944e-38, %v973_v32  ;;  %vm622_vm2 = vweird.f32 %v1690_v10  ;;  %1085 = vst.msk [vmem:[%s1623_s14 + $0x88] sm:$0xff] %vm1067_vm1, %v855_v54  ;;  %v626_v57 = vand.u32 2147483647, %v1690_v10  ;;  %1398 = vpow2.f32 %v1272_v47 }
  0xdb   : > { %v619_v56 = vsub.f32 1.0, %v618_v51  ;;  %v1742_v58 = vadd.f32 1.0, %v1391_v53  ;;  %v970_v60 = vsel %vm969_vm3, %v1385_v25, %v966_v55  ;;  %v628_v62 = vand.u32 2147483648, %v1690_v10 }
  0xdc   : > { %1400 = vpow2.f32 %v1280_v48  ;;  %v1288_v59 = vmul.f32 -1.442695, %v447_v43  ;;  %v975_v0 = vsel %vm1727_vm0, %v974_v46, %v970_v60  ;;  %vm623_vm4 = vweird.f32 %v1389_v44 }
  0xdd   : > { %v1393_v63 = vpop.eup %1392  ;;  %v620_v1 = vmul.f32 %v1389_v44, %v619_v56  ;;  %1402 = vrcp.f32 %v1742_v58  ;;  %1093 = vst.msk [vmem:[%s1623_s14 + $0xc8] sm:$0xff] %vm1067_vm1, %v975_v0  ;;  %v746_v2 = vand.u32 2147483647, %v1722_v42  ;;  %v748_v6 = vand.u32 2147483648, %v1722_v42  ;;  %vm624_vm5 = vmor %vm622_vm2, %vm623_vm4 }
  0xde   : > { %v1395_v52 = vpop.eup %1394  ;;  %v1751_v3 = vadd.f32 1.0, %v1393_v63  ;;  %1404 = vpow2.f32 %v1288_v59  ;;  %vm627_vm6 = vcmp.eq.f32.partialorder %v626_v57, 8.507059e+37  ;;  %v629_v7 = vor.u32 1.1754944e-38, %v628_v62  ;;  %v429_v57 = vpop.f32.mrf.mxu2 }
  0xdf   : > { %v1397_v4 = vpop.eup %1396  ;;  %v621_v5 = vadd.f32 %v1389_v44, %v620_v1  ;;  %v1754_v61 = vadd.f32 1.0, %v1395_v52  ;;  %v866_v13 = vand.u32 2147483647, %v1742_v58  ;;  %v868_v14 = vand.u32 2147483648, %v1742_v58 }
  0xe0   : > { %v738_v8 = vmul.f32 %v1397_v4, %v1722_v42  ;;  %v1399_v11 = vpop.eup %1398  ;;  %1406 = vrcp.f32 %v1751_v3  ;;  %vm742_vm7 = vweird.f32 %v1722_v42  ;;  %vm1766_vm8 = vcmp.eq.f32.partialorder %v746_v2, 8.507059e+37  ;;  %v409_v42 = vpop.f32.mrf.mxu1 }
  0xe1   : > { %v625_v12 = vsel %vm624_vm5, %v1389_v44, %v621_v5  ;;  %1408 = vrcp.f32 %v1754_v61  ;;  %v749_v21 = vor.u32 1.1754944e-38, %v748_v6  ;;  %vm862_vm9 = vweird.f32 %v1742_v58 }
  0xe2   : > { %v1401_v15 = vpop.eup %1400  ;;  %v630_v16 = vsel %vm627_vm6, %v629_v7, %v625_v12  ;;  %v739_v19 = vsub.f32 1.0, %v738_v8  ;;  %v390_v17 = vadd.f32 %v1568_v24, %v389_v9  ;;  %vm743_vm10 = vweird.f32 %v1397_v4 }
  0xe3   : > { %v1403_v10 = vpop.eup %1402  ;;  %1070 = vst.msk [vmem:[%s1623_s14 + $0x10] sm:$0xff] %vm1067_vm1, %v630_v16  ;;  %v986_v25 = vand.u32 2147483647, %v1751_v3  ;;  %vm1774_vm11 = vcmp.eq.f32.partialorder %v866_v13, 8.507059e+37  ;;  %v869_v28 = vor.u32 1.1754944e-38, %v868_v14  ;;  %v988_v29 = vand.u32 2147483648, %v1751_v3  ;;  %vm744_vm13 = vmor %vm742_vm7, %vm743_vm10  ;;  %v449_v14 = vpop.f32.mrf.mxu3 }
  0xe4   : > { %v740_v22 = vmul.f32 %v1397_v4, %v739_v19  ;;  %v858_v23 = vmul.f32 %v1403_v10, %v1742_v58  ;;  %v1405_v26 = vpop.eup %1404  ;;  %v1779_v30 = vadd.f32 1.0, %v1399_v11  ;;  %vm982_vm12 = vweird.f32 %v1751_v3 }
  0xe5   : > { %v1782_v32 = vadd.f32 1.0, %v1401_v15  ;;  %vm863_vm14 = vweird.f32 %v1403_v10  ;;  %vm637_vm15 = vweird.f32 %v1754_v61  ;;  %v641_v34 = vand.u32 2147483647, %v1754_v61  ;;  %v391_v15 = vpop.f32.mrf.mxu0 }
  0xe6   : > { %v741_v18 = vadd.f32 %v1397_v4, %v740_v22  ;;  %v859_v31 = vsub.f32 1.0, %v858_v23  ;;  %v1407_v33 = vpop.eup %1406  ;;  %v643_v35 = vand.u32 2147483648, %v1754_v61  ;;  %1410 = vrcp.f32 %v1779_v30  ;;  %vm864_vm2 = vmor %vm862_vm9, %vm863_vm14 }
  0xe7   : > { %v1409_v36 = vpop.eup %1408  ;;  %v978_v39 = vmul.f32 %v1407_v33, %v1751_v3  ;;  %vm1791_vm0 = vcmp.eq.f32.partialorder %v986_v25, 8.507059e+37  ;;  %v1795_v41 = vadd.f32 1.0, %v1405_v26  ;;  %v989_v44 = vor.u32 1.1754944e-38, %v988_v29 }
  0xe8   : > { %v745_v37 = vsel %vm744_vm13, %v1397_v4, %v741_v18  ;;  %v860_v38 = vmul.f32 %v1403_v10, %v859_v31  ;;  %v633_v45 = vmul.f32 %v1409_v36, %v1754_v61  ;;  %v761_v47 = vand.u32 2147483647, %v1779_v30 }
  0xe9   : > { %v750_v43 = vsel %vm1766_vm8, %v749_v21, %v745_v37  ;;  %v979_v49 = vsub.f32 1.0, %v978_v39  ;;  %v763_v50 = vand.u32 2147483648, %v1779_v30  ;;  %1412 = vrcp.f32 %v1782_v32  ;;  %v411_v21 = vpop.f32.mrf.mxu1  ;;  %v431_v37 = vpop.f32.mrf.mxu2 }
  0xea   : > { %1078 = vst.msk [vmem:[%s1623_s14 + $0x50] sm:$0xff] %vm1067_vm1, %v750_v43  ;;  %v861_v48 = vadd.f32 %v1403_v10, %v860_v38  ;;  %v634_v51 = vsub.f32 1.0, %v633_v45  ;;  %vm1808_vm3 = vcmp.eq.f32.partialorder %v641_v34, 8.507059e+37  ;;  %v644_v54 = vor.u32 1.1754944e-38, %v643_v35 }
  0xeb   : > { %v1265_v55 = vmul.f32 -1.442695, %v390_v17  ;;  %v980_v56 = vmul.f32 %v1407_v33, %v979_v49  ;;  %vm983_vm4 = vweird.f32 %v1407_v33  ;;  %1414 = vrcp.f32 %v1795_v41 }
  0xec   : > { %v865_v46 = vsel %vm864_vm2, %v1403_v10, %v861_v48  ;;  %v1411_v60 = vpop.eup %1410  ;;  %v635_v58 = vmul.f32 %v1409_v36, %v634_v51  ;;  %vm638_vm5 = vweird.f32 %v1409_v36  ;;  %vm757_vm6 = vweird.f32 %v1779_v30  ;;  %vm984_vm8 = vmor %vm982_vm12, %vm983_vm4 }
  0xed   : > { %v870_v62 = vsel %vm1774_vm11, %v869_v28, %v865_v46  ;;  %v981_v59 = vadd.f32 %v1407_v33, %v980_v56  ;;  %v753_v63 = vmul.f32 %v1411_v60, %v1779_v30  ;;  %vm1819_vm7 = vcmp.eq.f32.partialorder %v761_v47, 8.507059e+37  ;;  %vm639_vm10 = vmor %vm637_vm15, %vm638_vm5 }
  0xee   : > { %1086 = vst.msk [vmem:[%s1623_s14 + $0x90] sm:$0xff] %vm1067_vm1, %v870_v62  ;;  %v764_v1 = vor.u32 1.1754944e-38, %v763_v50  ;;  %v881_v52 = vand.u32 2147483647, %v1782_v32  ;;  %v636_v2 = vadd.f32 %v1409_v36, %v635_v58  ;;  %vm877_vm9 = vweird.f32 %v1782_v32 }
  0xef   : > { %v883_v4 = vand.u32 2147483648, %v1782_v32  ;;  %1416 = vpow2.f32 %v1265_v55  ;;  %v410_v5 = vadd.f32 %v1568_v24, %v409_v42  ;;  %v1413_v6 = vpop.eup %1412  ;;  %v985_v7 = vsel %vm984_vm8, %v1407_v33, %v981_v59 }
  0xf0   : > { %v754_v8 = vsub.f32 1.0, %v753_v63  ;;  %vm758_vm11 = vweird.f32 %v1411_v60  ;;  %v430_v3 = vadd.f32 %v1568_v24, %v429_v57  ;;  %v990_v9 = vsel %vm1791_vm0, %v989_v44, %v985_v7 }
  0xf1   : > { %v640_v11 = vsel %vm639_vm10, %v1409_v36, %v636_v2  ;;  %v873_v12 = vmul.f32 %v1413_v6, %v1782_v32  ;;  %vm997_vm12 = vweird.f32 %v1795_v41  ;;  %v1001_v13 = vand.u32 2147483647, %v1795_v41  ;;  %v1415_v16 = vpop.eup %1414  ;;  %1094 = vst.msk [vmem:[%s1623_s14 + $0xd0] sm:$0xff] %vm1067_vm1, %v990_v9  ;;  %vm759_vm14 = vmor %vm757_vm6, %vm758_vm11 }
  0xf2   : > { %v645_v61 = vsel %vm1808_vm3, %v644_v54, %v640_v11  ;;  %v755_v19 = vmul.f32 %v1411_v60, %v754_v8  ;;  %v1003_v10 = vand.u32 2147483648, %v1795_v41  ;;  %v1273_v20 = vmul.f32 -1.442695, %v410_v5  ;;  %v451_v54 = vpop.f32.mrf.mxu3 }
  0xf3   : > { %1071 = vst.msk [vmem:[%s1623_s14 + $0x18] sm:$0xff] %vm1067_vm1, %v645_v61  ;;  %v874_v17 = vsub.f32 1.0, %v873_v12  ;;  %vm878_vm13 = vweird.f32 %v1413_v6  ;;  %v993_v22 = vmul.f32 %v1415_v16, %v1795_v41  ;;  %v1281_v23 = vmul.f32 -1.442695, %v430_v3  ;;  %v394_v41 = vpop.f32.mrf.mxu0 }
  0xf4   : > { %v756_v25 = vadd.f32 %v1411_v60, %v755_v19  ;;  %1418 = vpow2.f32 %v1273_v20  ;;  %v450_v26 = vadd.f32 %v1568_v24, %v449_v14  ;;  %v392_v27 = vadd.f32 %v1568_v24, %v391_v15  ;;  %vm879_vm0 = vmor %vm877_vm9, %vm878_vm13 }
  0xf5   : > { %v1417_v28 = vpop.eup %1416  ;;  %v875_v29 = vmul.f32 %v1413_v6, %v874_v17  ;;  %v994_v18 = vsub.f32 1.0, %v993_v22  ;;  %1420 = vpow2.f32 %v1281_v23  ;;  %v412_v31 = vadd.f32 %v1568_v24, %v411_v21 }
  0xf6   : > { %v760_v33 = vsel %vm759_vm14, %v1411_v60, %v756_v25  ;;  %v1852_v34 = vadd.f32 1.0, %v1417_v28  ;;  %v1289_v35 = vmul.f32 -1.442695, %v450_v26  ;;  %v1266_v36 = vmul.f32 -1.442695, %v392_v27 }
  0xf7   : > { %v765_v38 = vsel %vm1819_vm7, %v764_v1, %v760_v33  ;;  %v876_v39 = vadd.f32 %v1413_v6, %v875_v29  ;;  %v995_v40 = vmul.f32 %v1415_v16, %v994_v18  ;;  %vm998_vm15 = vweird.f32 %v1415_v16 }
  0xf8   : > { %1079 = vst.msk [vmem:[%s1623_s14 + $0x58] sm:$0xff] %vm1067_vm1, %v765_v38  ;;  %vm882_vm2 = vcmp.eq.f32.partialorder %v881_v52, 8.507059e+37  ;;  %v884_v30 = vor.u32 1.1754944e-38, %v883_v4  ;;  %1422 = vrcp.f32 %v1852_v34  ;;  %v1274_v42 = vmul.f32 -1.442695, %v412_v31  ;;  %vm999_vm3 = vmor %vm997_vm12, %vm998_vm15 }
  0xf9   : > { %v880_v43 = vsel %vm879_vm0, %v1413_v6, %v876_v39  ;;  %v996_v44 = vadd.f32 %v1415_v16, %v995_v40  ;;  %1424 = vpow2.f32 %v1289_v35  ;;  %v432_v45 = vadd.f32 %v1568_v24, %v431_v37 }
  0xfa   : > { %v1419_v47 = vpop.eup %1418  ;;  %v885_v48 = vsel %vm882_vm2, %v884_v30, %v880_v43  ;;  %v1004_v49 = vor.u32 1.1754944e-38, %v1003_v10  ;;  %1426 = vpow2.f32 %v1266_v36  ;;  %vm1002_vm4 = vcmp.eq.f32.partialorder %v1001_v13, 8.507059e+37 }
  0xfb   : > { %v1421_v32 = vpop.eup %1420  ;;  %1087 = vst.msk [vmem:[%s1623_s14 + $0x98] sm:$0xff] %vm1067_vm1, %v885_v48  ;;  %v1000_v50 = vsel %vm999_vm3, %v1415_v16, %v996_v44  ;;  %v656_v51 = vand.u32 2147483647, %v1852_v34  ;;  %v1868_v53 = vadd.f32 1.0, %v1419_v47  ;;  %1428 = vpow2.f32 %v1274_v42 }
  0xfc   : > { %v1005_v55 = vsel %vm1002_vm4, %v1004_v49, %v1000_v50  ;;  %v1870_v46 = vadd.f32 1.0, %v1421_v32  ;;  %v1282_v56 = vmul.f32 -1.442695, %v432_v45  ;;  %v658_v60 = vand.u32 2147483648, %v1852_v34  ;;  %v414_v49 = vpop.f32.mrf.mxu1  ;;  %v434_v32 = vpop.f32.mrf.mxu2 }
  0xfd   : > { %1095 = vst.msk [vmem:[%s1623_s14 + $0xd8] sm:$0xff] %vm1067_vm1, %v1005_v55  ;;  %1430 = vrcp.f32 %v1868_v53  ;;  %v452_v62 = vadd.f32 %v1568_v24, %v451_v54  ;;  %vm652_vm5 = vweird.f32 %v1852_v34  ;;  %vm1880_vm6 = vcmp.eq.f32.partialorder %v656_v51, 8.507059e+37 }
  0xfe   : > { %v1423_v57 = vpop.eup %1422  ;;  %1432 = vrcp.f32 %v1870_v46  ;;  %v395_v0 = vadd.f32 %v1568_v24, %v394_v41  ;;  %v776_v52 = vand.u32 2147483647, %v1868_v53  ;;  %v778_v2 = vand.u32 2147483648, %v1868_v53 }
  0xff   : > { %v1425_v58 = vpop.eup %1424  ;;  %v648_v59 = vmul.f32 %v1423_v57, %v1852_v34  ;;  %1434 = vpow2.f32 %v1282_v56  ;;  %v896_v6 = vand.u32 2147483647, %v1870_v46  ;;  %v898_v7 = vand.u32 2147483648, %v1870_v46 }
 0x100   : > { %v1427_v1 = vpop.eup %1426  ;;  %v1887_v4 = vadd.f32 1.0, %v1425_v58  ;;  %v659_v9 = vor.u32 1.1754944e-38, %v658_v60  ;;  %vm772_vm7 = vweird.f32 %v1868_v53  ;;  %v1290_v24 = vmul.f32 -1.442695, %v452_v62 }
 0x101   : > { %v649_v5 = vsub.f32 1.0, %v648_v59  ;;  %v1891_v8 = vadd.f32 1.0, %v1427_v1  ;;  %v1429_v3 = vpop.eup %1428  ;;  %vm653_vm8 = vweird.f32 %v1423_v57  ;;  %v1267_v13 = vmul.f32 -1.442695, %v395_v0 }
 0x102   : > { %1436 = vrcp.f32 %v1887_v4  ;;  %vm1897_vm9 = vcmp.eq.f32.partialorder %v776_v52, 8.507059e+37  ;;  %v779_v61 = vor.u32 1.1754944e-38, %v778_v2  ;;  %vm892_vm10 = vweird.f32 %v1870_v46  ;;  %vm654_vm12 = vmor %vm652_vm5, %vm653_vm8 }
 0x103   : > { %v1431_v11 = vpop.eup %1430  ;;  %v650_v12 = vmul.f32 %v1423_v57, %v649_v5  ;;  %1438 = vrcp.f32 %v1891_v8  ;;  %vm1903_vm11 = vcmp.eq.f32.partialorder %v896_v6, 8.507059e+37  ;;  %v899_v21 = vor.u32 1.1754944e-38, %v898_v7 }
 0x104   : > { %v1433_v14 = vpop.eup %1432  ;;  %v768_v15 = vmul.f32 %v1431_v11, %v1868_v53  ;;  %v1016_v17 = vand.u32 2147483647, %v1887_v4  ;;  %v1018_v25 = vand.u32 2147483648, %v1887_v4  ;;  %v1911_v26 = vadd.f32 1.0, %v1429_v3 }
 0x105   : > { %v651_v19 = vadd.f32 %v1423_v57, %v650_v12  ;;  %v888_v10 = vmul.f32 %v1433_v14, %v1870_v46  ;;  %v1435_v22 = vpop.eup %1434  ;;  %1440 = vpow2.f32 %v1290_v24  ;;  %vm773_vm13 = vweird.f32 %v1431_v11 }
 0x106   : > { %v769_v23 = vsub.f32 1.0, %v768_v15  ;;  %v1913_v29 = vadd.f32 1.0, %v1435_v22  ;;  %1442 = vpow2.f32 %v1267_v13  ;;  %vm893_vm14 = vweird.f32 %v1433_v14  ;;  %vm774_vm2 = vmor %vm772_vm7, %vm773_vm13  ;;  %v396_v13 = vpop.f32.mrf.mxu0  ;;  %v436_v22 = vpop.f32.mrf.mxu2 }
 0x107   : > { %v655_v27 = vsel %vm654_vm12, %v1423_v57, %v651_v19  ;;  %v889_v28 = vsub.f32 1.0, %v888_v10  ;;  %1444 = vrcp.f32 %v1911_v26  ;;  %vm1012_vm15 = vweird.f32 %v1887_v4  ;;  %vm894_vm3 = vmor %vm892_vm10, %vm893_vm14  ;;  %v1480_v10 = vld [vmem:[%s2105_s2] ss:$0 sm:$0xff] }
 0x108   : > { %v1437_v18 = vpop.eup %1436  ;;  %v660_v31 = vsel %vm1880_vm6, %v659_v9, %v655_v27  ;;  %v770_v33 = vmul.f32 %v1431_v11, %v769_v23  ;;  %vm667_vm0 = vweird.f32 %v1891_v8  ;;  %v673_v39 = vand.u32 2147483648, %v1891_v8  ;;  %v454_v9 = vpop.f32.mrf.mxu3 }
 0x109   : > { %v1439_v34 = vpop.eup %1438  ;;  %1072 = vst.msk [vmem:[%s1623_s14 + $0x20] sm:$0xff] %vm1067_vm1, %v660_v31  ;;  %v890_v35 = vmul.f32 %v1433_v14, %v889_v28  ;;  %v1008_v36 = vmul.f32 %v1437_v18, %v1887_v4  ;;  %v671_v42 = vand.u32 2147483647, %v1891_v8  ;;  %1446 = vrcp.f32 %v1913_v29 }
 0x10a   : > { %v771_v37 = vadd.f32 %v1431_v11, %v770_v33  ;;  %v663_v38 = vmul.f32 %v1439_v34, %v1891_v8  ;;  %vm1931_vm4 = vcmp.eq.f32.partialorder %v1016_v17, 8.507059e+37  ;;  %v1019_v47 = vor.u32 1.1754944e-38, %v1018_v25  ;;  %v416_v17 = vpop.f32.mrf.mxu1 }
 0x10b   : > { %v891_v40 = vadd.f32 %v1433_v14, %v890_v35  ;;  %v1009_v30 = vsub.f32 1.0, %v1008_v36  ;;  %v1441_v43 = vpop.eup %1440  ;;  %vm1013_vm5 = vweird.f32 %v1437_v18  ;;  %vm668_vm6 = vweird.f32 %v1439_v34 }
 0x10c   : > { %v775_v44 = vsel %vm774_vm2, %v1431_v11, %v771_v37  ;;  %v664_v48 = vsub.f32 1.0, %v663_v38  ;;  %v1443_v50 = vpop.eup %1442  ;;  %v674_v41 = vor.u32 1.1754944e-38, %v673_v39  ;;  %v791_v62 = vand.u32 2147483647, %v1911_v26  ;;  %vm1014_vm7 = vmor %vm1012_vm15, %vm1013_vm5 }
 0x10d   : > { %v780_v51 = vsel %vm1897_vm9, %v779_v61, %v775_v44  ;;  %v895_v53 = vsel %vm894_vm3, %v1433_v14, %v891_v40  ;;  %v1010_v54 = vmul.f32 %v1437_v18, %v1009_v30  ;;  %v1445_v55 = vpop.eup %1444  ;;  %v1945_v58 = vadd.f32 1.0, %v1441_v43  ;;  %vm669_vm8 = vmor %vm667_vm0, %vm668_vm6 }
 0x10e   : > { %1080 = vst.msk [vmem:[%s1623_s14 + $0x60] sm:$0xff] %vm1067_vm1, %v780_v51  ;;  %v900_v46 = vsel %vm1903_vm11, %v899_v21, %v895_v53  ;;  %v665_v56 = vmul.f32 %v1439_v34, %v664_v48  ;;  %v783_v60 = vmul.f32 %v1445_v55, %v1911_v26  ;;  %v793_v63 = vand.u32 2147483648, %v1911_v26 }
 0x10f   : > { %1088 = vst.msk [vmem:[%s1623_s14 + $0xa0] sm:$0xff] %vm1067_vm1, %v900_v46  ;;  %v1011_v57 = vadd.f32 %v1437_v18, %v1010_v54  ;;  %v911_v0 = vand.u32 2147483647, %v1913_v29  ;;  %v1951_v1 = vadd.f32 1.0, %v1443_v50  ;;  %v1447_v52 = vpop.eup %1446  ;;  %v913_v6 = vand.u32 2147483648, %v1913_v29 }
 0x110   : > { %v666_v59 = vadd.f32 %v1439_v34, %v665_v56  ;;  %v784_v5 = vsub.f32 1.0, %v783_v60  ;;  %1448 = vrcp.f32 %v1945_v58  ;;  %vm672_vm9 = vcmp.eq.f32.partialorder %v671_v42, 8.507059e+37 }
 0x111   : > { %v1015_v2 = vsel %vm1014_vm7, %v1437_v18, %v1011_v57  ;;  %v903_v3 = vmul.f32 %v1447_v52, %v1913_v29  ;;  %vm787_vm10 = vweird.f32 %v1911_v26  ;;  %vm788_vm11 = vweird.f32 %v1445_v55 }
 0x112   : > { %v1020_v4 = vsel %vm1931_vm4, %v1019_v47, %v1015_v2  ;;  %v670_v7 = vsel %vm669_vm8, %v1439_v34, %v666_v59  ;;  %v785_v11 = vmul.f32 %v1445_v55, %v784_v5  ;;  %vm1965_vm12 = vcmp.eq.f32.partialorder %v791_v62, 8.507059e+37  ;;  %vm789_vm15 = vmor %vm787_vm10, %vm788_vm11 }
 0x113   : > { %1096 = vst.msk [vmem:[%s1623_s14 + $0xe0] sm:$0xff] %vm1067_vm1, %v1020_v4  ;;  %v675_v24 = vsel %vm672_vm9, %v674_v41, %v670_v7  ;;  %v904_v12 = vsub.f32 1.0, %v903_v3  ;;  %vm907_vm13 = vweird.f32 %v1913_v29  ;;  %1450 = vrcp.f32 %v1951_v1 }
 0x114   : > { %1073 = vst.msk [vmem:[%s1623_s14 + $0x28] sm:$0xff] %vm1067_vm1, %v675_v24  ;;  %v786_v14 = vadd.f32 %v1445_v55, %v785_v11  ;;  %v794_v15 = vor.u32 1.1754944e-38, %v793_v63  ;;  %vm1971_vm14 = vcmp.eq.f32.partialorder %v911_v0, 8.507059e+37  ;;  %v914_v61 = vor.u32 1.1754944e-38, %v913_v6 }
 0x115   : > { %v905_v19 = vmul.f32 %v1447_v52, %v904_v12  ;;  %vm908_vm0 = vweird.f32 %v1447_v52  ;;  %vm1027_vm2 = vweird.f32 %v1945_v58  ;;  %v415_v20 = vadd.f32 %v1480_v10, %v414_v49  ;;  %v456_v49 = vpop.f32.mrf.mxu3 }
 0x116   : > { %v435_v21 = vadd.f32 %v1480_v10, %v434_v32  ;;  %v1449_v23 = vpop.eup %1448  ;;  %v790_v25 = vsel %vm789_vm15, %v1445_v55, %v786_v14  ;;  %v1031_v26 = vand.u32 2147483647, %v1945_v58  ;;  %v455_v27 = vadd.f32 %v1480_v10, %v454_v9  ;;  %vm909_vm3 = vmor %vm907_vm13, %vm908_vm0 }
 0x117   : > { %v397_v28 = vadd.f32 %v1480_v10, %v396_v13  ;;  %v795_v18 = vsel %vm1965_vm12, %v794_v15, %v790_v25  ;;  %v906_v31 = vadd.f32 %v1447_v52, %v905_v19  ;;  %v1023_v33 = vmul.f32 %v1449_v23, %v1945_v58 }
 0x118   : > { %v1033_v34 = vand.u32 2147483648, %v1945_v58  ;;  %1081 = vst.msk [vmem:[%s1623_s14 + $0x68] sm:$0xff] %vm1067_vm1, %v795_v18  ;;  %v1275_v35 = vmul.f32 -1.442695, %v415_v20  ;;  %v1283_v36 = vmul.f32 -1.442695, %v435_v21  ;;  %v417_v37 = vadd.f32 %v1480_v10, %v416_v17 }
 0x119   : > { %v437_v38 = vadd.f32 %v1480_v10, %v436_v22  ;;  %v1451_v39 = vpop.eup %1450  ;;  %v910_v40 = vsel %vm909_vm3, %v1447_v52, %v906_v31  ;;  %v1024_v30 = vsub.f32 1.0, %v1023_v33  ;;  %v1291_v42 = vmul.f32 -1.442695, %v455_v27 }
 0x11a   : > { %v1268_v43 = vmul.f32 -1.442695, %v397_v28  ;;  %v915_v44 = vsel %vm1971_vm14, %v914_v61, %v910_v40  ;;  %vm1028_vm4 = vweird.f32 %v1449_v23  ;;  %v678_v45 = vmul.f32 %v1451_v39, %v1951_v1 }
 0x11b   : > { %1452 = vpow2.f32 %v1275_v35  ;;  %1089 = vst.msk [vmem:[%s1623_s14 + $0xa8] sm:$0xff] %vm1067_vm1, %v915_v44  ;;  %v1025_v29 = vmul.f32 %v1449_v23, %v1024_v30  ;;  %v1276_v47 = vmul.f32 -1.442695, %v417_v37  ;;  %v1284_v48 = vmul.f32 -1.442695, %v437_v38  ;;  %vm1029_vm6 = vmor %vm1027_vm2, %vm1028_vm4 }
 0x11c   : > { %1454 = vpow2.f32 %v1283_v36  ;;  %v679_v32 = vsub.f32 1.0, %v678_v45  ;;  %vm682_vm5 = vweird.f32 %v1951_v1  ;;  %v686_v50 = vand.u32 2147483647, %v1951_v1 }
 0x11d   : > { %1456 = vpow2.f32 %v1291_v42  ;;  %v1026_v51 = vadd.f32 %v1449_v23, %v1025_v29  ;;  %v1034_v53 = vor.u32 1.1754944e-38, %v1033_v34  ;;  %v688_v54 = vand.u32 2147483648, %v1951_v1 }
 0x11e   : > { %1458 = vpow2.f32 %v1268_v43  ;;  %v680_v55 = vmul.f32 %v1451_v39, %v679_v32  ;;  %vm683_vm7 = vweird.f32 %v1451_v39  ;;  %v457_v46 = vadd.f32 %v1480_v10, %v456_v49 }
 0x11f   : > { %1460 = vpow2.f32 %v1276_v47  ;;  %v1030_v56 = vsel %vm1029_vm6, %v1449_v23, %v1026_v51  ;;  %vm1032_vm8 = vcmp.eq.f32.partialorder %v1031_v26, 8.507059e+37  ;;  %vm684_vm9 = vmor %vm682_vm5, %vm683_vm7  ;;  %v689_v59 = vor.u32 1.1754944e-38, %v688_v54 }
 0x120   : > { %1462 = vpow2.f32 %v1284_v48  ;;  %v1035_v57 = vsel %vm1032_vm8, %v1034_v53, %v1030_v56  ;;  %v681_v60 = vadd.f32 %v1451_v39, %v680_v55  ;;  %vm687_vm10 = vcmp.eq.f32.partialorder %v686_v50, 8.507059e+37 }
 0x121   : > { %v1453_v41 = vpop.eup %1452  ;;  %1097 = vst.msk [vmem:[%s1623_s14 + $0xe8] sm:$0xff] %vm1067_vm1, %v1035_v57  ;;  %v1292_v2 = vmul.f32 -1.442695, %v457_v46 }
 0x122   : > { %v1455_v62 = vpop.eup %1454  ;;  %v2004_v58 = vadd.f32 1.0, %v1453_v41  ;;  %v685_v0 = vsel %vm684_vm9, %v1451_v39, %v681_v60 }
 0x123   : > { %v1457_v63 = vpop.eup %1456  ;;  %v2006_v52 = vadd.f32 1.0, %v1455_v62  ;;  %v690_v6 = vsel %vm687_vm10, %v689_v59, %v685_v0 }
 0x124   : > { %v1459_v5 = vpop.eup %1458  ;;  %1464 = vrcp.f32 %v2004_v58  ;;  %1074 = vst.msk [vmem:[%s1623_s14 + $0x30] sm:$0xff] %vm1067_vm1, %v690_v6  ;;  %v2012_v7 = vadd.f32 1.0, %v1457_v63  ;;  %v806_v9 = vand.u32 2147483647, %v2004_v58  ;;  %v808_v11 = vand.u32 2147483648, %v2004_v58 }
 0x125   : > { %v1461_v4 = vpop.eup %1460  ;;  %1466 = vrcp.f32 %v2006_v52  ;;  %v2014_v3 = vadd.f32 1.0, %v1459_v5  ;;  %v926_v8 = vand.u32 2147483647, %v2006_v52  ;;  %v928_v12 = vand.u32 2147483648, %v2006_v52 }
 0x126   : > { %v1463_v1 = vpop.eup %1462  ;;  %v2017_v24 = vadd.f32 1.0, %v1461_v4  ;;  %1468 = vpow2.f32 %v1292_v2  ;;  %vm802_vm11 = vweird.f32 %v2004_v58  ;;  %vm922_vm12 = vweird.f32 %v2006_v52 }
 0x127   : > { %1470 = vrcp.f32 %v2012_v7  ;;  %v2024_v13 = vadd.f32 1.0, %v1463_v1  ;;  %vm2030_vm13 = vcmp.eq.f32.partialorder %v806_v9, 8.507059e+37  ;;  %v1046_v19 = vand.u32 2147483647, %v2012_v7 }
 0x128   : > { %1472 = vrcp.f32 %v2014_v3  ;;  %v1048_v10 = vand.u32 2147483648, %v2012_v7  ;;  %v809_v20 = vor.u32 1.1754944e-38, %v808_v11  ;;  %v701_v17 = vand.u32 2147483647, %v2014_v3 }
 0x129   : > { %1474 = vrcp.f32 %v2017_v24  ;;  %v703_v22 = vand.u32 2147483648, %v2014_v3  ;;  %vm2039_vm14 = vcmp.eq.f32.partialorder %v926_v8, 8.507059e+37  ;;  %v929_v27 = vor.u32 1.1754944e-38, %v928_v12 }
 0x12a   : > { %v1465_v14 = vpop.eup %1464  ;;  %1476 = vrcp.f32 %v2024_v13  ;;  %vm1042_vm0 = vweird.f32 %v2012_v7  ;;  %vm697_vm2 = vweird.f32 %v2014_v3  ;;  %vm2047_vm4 = vcmp.eq.f32.partialorder %v1046_v19, 8.507059e+37 }
 0x12b   : > { %v1467_v15 = vpop.eup %1466  ;;  %v798_v16 = vmul.f32 %v1465_v14, %v2004_v58  ;;  %vm803_vm15 = vweird.f32 %v1465_v14  ;;  %v1049_v36 = vor.u32 1.1754944e-38, %v1048_v10  ;;  %vm817_vm5 = vweird.f32 %v2017_v24 }
 0x12c   : > { %v918_v21 = vmul.f32 %v1467_v15, %v2006_v52  ;;  %v1469_v23 = vpop.eup %1468  ;;  %vm923_vm3 = vweird.f32 %v1467_v15  ;;  %vm2053_vm6 = vcmp.eq.f32.partialorder %v701_v17, 8.507059e+37  ;;  %v704_v30 = vor.u32 1.1754944e-38, %v703_v22  ;;  %vm804_vm7 = vmor %vm802_vm11, %vm803_vm15 }
 0x12d   : > { %v799_v25 = vsub.f32 1.0, %v798_v16  ;;  %v1471_v28 = vpop.eup %1470  ;;  %v821_v42 = vand.u32 2147483647, %v2017_v24  ;;  %v823_v29 = vand.u32 2147483648, %v2017_v24  ;;  %v586_v49 = vadd.f32 1.0, %v1469_v23  ;;  %vm924_vm9 = vmor %vm922_vm12, %vm923_vm3 }
 0x12e   : > { %v919_v18 = vsub.f32 1.0, %v918_v21  ;;  %v1473_v31 = vpop.eup %1472  ;;  %v1038_v34 = vmul.f32 %v1471_v28, %v2012_v7  ;;  %vm1043_vm8 = vweird.f32 %v1471_v28  ;;  %v941_v58 = vand.u32 2147483647, %v2024_v13 }
 0x12f   : > { %v800_v33 = vmul.f32 %v1465_v14, %v799_v25  ;;  %v1475_v37 = vpop.eup %1474  ;;  %v693_v39 = vmul.f32 %v1473_v31, %v2014_v3  ;;  %vm698_vm10 = vweird.f32 %v1473_v31  ;;  %vm1044_vm12 = vmor %vm1042_vm0, %vm1043_vm8  ;;  %1478 = vrcp.f32 %v586_v49 }
 0x130   : > { %v920_v38 = vmul.f32 %v1467_v15, %v919_v18  ;;  %v1039_v44 = vsub.f32 1.0, %v1038_v34  ;;  %v813_v45 = vmul.f32 %v1475_v37, %v2017_v24  ;;  %v1477_v32 = vpop.eup %1476  ;;  %vm818_vm11 = vweird.f32 %v1475_v37 }
 0x131   : > { %v801_v43 = vadd.f32 %v1465_v14, %v800_v33  ;;  %v694_v48 = vsub.f32 1.0, %v693_v39  ;;  %v933_v56 = vmul.f32 %v1477_v32, %v2024_v13  ;;  %v824_v52 = vor.u32 1.1754944e-38, %v823_v29 }
 0x132   : > { %v921_v47 = vadd.f32 %v1467_v15, %v920_v38  ;;  %v1040_v51 = vmul.f32 %v1471_v28, %v1039_v44  ;;  %v814_v53 = vsub.f32 1.0, %v813_v45  ;;  %v943_v2 = vand.u32 2147483648, %v2024_v13 }
 0x133   : > { %v805_v50 = vsel %vm804_vm7, %v1465_v14, %v801_v43  ;;  %v695_v46 = vmul.f32 %v1473_v31, %v694_v48  ;;  %v934_v59 = vsub.f32 1.0, %v933_v56  ;;  %vm938_vm15 = vweird.f32 %v1477_v32 }
 0x134   : > { %v810_v54 = vsel %vm2030_vm13, %v809_v20, %v805_v50  ;;  %v925_v55 = vsel %vm924_vm9, %v1467_v15, %v921_v47  ;;  %v1041_v57 = vadd.f32 %v1471_v28, %v1040_v51  ;;  %v815_v60 = vmul.f32 %v1475_v37, %v814_v53  ;;  %vm699_vm13 = vmor %vm697_vm2, %vm698_vm10 }
 0x135   : > { %1082 = vst.msk [vmem:[%s1623_s14 + $0x70] sm:$0xff] %vm1067_vm1, %v810_v54  ;;  %v930_v41 = vsel %vm2039_vm14, %v929_v27, %v925_v55  ;;  %v696_v62 = vadd.f32 %v1473_v31, %v695_v46  ;;  %vm819_vm14 = vmor %vm817_vm5, %vm818_vm11  ;;  %v935_v4 = vmul.f32 %v1477_v32, %v934_v59  ;;  %vm822_vm0 = vcmp.eq.f32.partialorder %v821_v42, 8.507059e+37  ;;  %v1479_v11 = vpop.eup %1478 }
 0x136   : > { %1090 = vst.msk [vmem:[%s1623_s14 + $0xb0] sm:$0xff] %vm1067_vm1, %v930_v41  ;;  %v1045_v63 = vsel %vm1044_vm12, %v1471_v28, %v1041_v57  ;;  %v816_v0 = vadd.f32 %v1475_v37, %v815_v60  ;;  %vm937_vm2 = vweird.f32 %v2024_v13  ;;  %v944_v24 = vor.u32 1.1754944e-38, %v943_v2 }
 0x137   : > { %v1050_v5 = vsel %vm2047_vm4, %v1049_v36, %v1045_v63  ;;  %v700_v6 = vsel %vm699_vm13, %v1473_v31, %v696_v62  ;;  %v936_v9 = vadd.f32 %v1477_v32, %v935_v4  ;;  %vm939_vm3 = vmor %vm937_vm2, %vm938_vm15  ;;  %vm942_vm4 = vcmp.eq.f32.partialorder %v941_v58, 8.507059e+37 }
 0x138   : > { %1098 = vst.msk [vmem:[%s1623_s14 + $0xf0] sm:$0xff] %vm1067_vm1, %v1050_v5  ;;  %v705_v1 = vsel %vm2053_vm6, %v704_v30, %v700_v6  ;;  %v820_v7 = vsel %vm819_vm14, %v1475_v37, %v816_v0  ;;  %v1053_v14 = vmul.f32 %v1479_v11, %v586_v49  ;;  %v1063_v16 = vand.u32 2147483648, %v586_v49 }
 0x139   : > { %1075 = vst.msk [vmem:[%s1623_s14 + $0x38] sm:$0xff] %vm1067_vm1, %v705_v1  ;;  %v825_v3 = vsel %vm822_vm0, %v824_v52, %v820_v7  ;;  %v940_v8 = vsel %vm939_vm3, %v1477_v32, %v936_v9  ;;  %vm1058_vm5 = vweird.f32 %v1479_v11  ;;  %v1061_v19 = vand.u32 2147483647, %v586_v49 }
 0x13a   : > { %1083 = vst.msk [vmem:[%s1623_s14 + $0x78] sm:$0xff] %vm1067_vm1, %v825_v3  ;;  %v945_v12 = vsel %vm942_vm4, %v944_v24, %v940_v8  ;;  %v1054_v15 = vsub.f32 1.0, %v1053_v14  ;;  %vm1057_vm6 = vweird.f32 %v586_v49  ;;  %v1064_v13 = vor.u32 1.1754944e-38, %v1063_v16 }
 0x13b   : > { %1091 = vst.msk [vmem:[%s1623_s14 + $0xb8] sm:$0xff] %vm1067_vm1, %v945_v12  ;;  %vm1059_vm7 = vmor %vm1057_vm6, %vm1058_vm5  ;;  %vm1062_vm8 = vcmp.eq.f32.partialorder %v1061_v19, 8.507059e+37 }
 0x13c   : > { %v1055_v61 = vmul.f32 %v1479_v11, %v1054_v15 }
 0x13e   : > { %v1056_v10 = vadd.f32 %v1479_v11, %v1055_v61 }
 0x140   : > { %v1060_v20 = vsel %vm1059_vm7, %v1479_v11, %v1056_v10 }
 0x141   : > { %v1065_v21 = vsel %vm1062_vm8, %v1064_v13, %v1060_v20 }
 0x142   : > { %1099 = vst.msk [vmem:[%s1623_s14 + $0xf8] sm:$0xff] %vm1067_vm1, %v1065_v21 }
 0x143 PF: > { %s13_s12 = sadd.s32 1, %s1487_s12  }
 0x144   : > { %p10_p4 = scmp.ge.s32.totalorder %s13_s12, 4  }
 0x146   :  { %12 = sbr.rel (!%p10_p4) target bundleno = 1 (0x1), region = 62 }

</bundles_post_ra>
